<compile_context>
chip_gen: v5e
topology: v5e:2x2
jax: 0.10.0
libtpu: 0.0.40
codegen_flags: <defaults>
</compile_context>

<pallas_src>
import jax
import jax.numpy as jnp
from jax.experimental import pallas as pl
from jax.experimental.pallas import tpu as pltpu


def _round_up(x, m):
    return (x + m - 1) // m * m


def _make_kernel(Wpp, Cp, M1, M2):
    def kernel(x_ref, w1_ref, b1_ref, w2_ref, b2_ref, mask_ref, o_ref,
               mid_ref, cat_ref):
        # ---- layer 1: single K = 9*Cin matmul on the pre-packed im2col ------
        y1 = jnp.dot(x_ref[0, 0], w1_ref[...],
                     preferred_element_type=jnp.float32)
        y1 = jnp.maximum(y1 + b1_ref[...], 0.0)
        # REQUIRED for correctness: the mask zeroes (a) the Wpp-W junk columns
        # of the wide grid and (b) the out-of-image halo rows of this row
        # block, so the y1 slab stored at offset 1 below doubles as the
        # zero-padded layer-2 input (left/right/top/bottom halos).
        y1 = y1 * mask_ref[0]

        # ---- re-pad layer-1 activation entirely inside VMEM -----------------
        zrow = jnp.zeros((1, Cp), mid_ref.dtype)
        mid_ref[pl.ds(0, 1), :] = zrow
        mid_ref[pl.ds(M1 + 1, 1), :] = zrow
        mid_ref[pl.ds(1, M1), :] = y1.astype(mid_ref.dtype)

        # ---- layer 2: 3 matmuls with K = 3*Cp (column taps packed in lanes) -
        acc = None
        for r in range(3):
            for c in range(3):
                # 128-lane-aligned group writes; reads are static sublane
                # offsets r*Wpp + c (r*Wpp is aligned by construction).
                cat_ref[:, pl.ds(c * Cp, Cp)] = \
                    mid_ref[pl.ds(r * Wpp + c, M2), :]
            part = jnp.dot(cat_ref[...], w2_ref[r],
                           preferred_element_type=jnp.float32)
            acc = part if acc is None else acc + part
        y2 = jnp.maximum(acc + b2_ref[...], 0.0)
        # Lane-dense (Cp = multiple of 128) store in the compute dtype.
        o_ref[...] = y2.reshape(o_ref.shape).astype(o_ref.dtype)

    return kernel


def double_conv(x_nchw, params, *, compute_dtype=jnp.bfloat16,
                row_block=None, vmem_limit_bytes=48 * 1024 * 1024):
    """DoubleConv forward: (Conv3x3(pad=1) -> BN(eval) -> ReLU) x 2.

    x_nchw : (N, Cin, H, W) float32 (PyTorch layout at the module boundary).
    params : (w1, s1, b1, w2, s2, b2); w* in HWIO layout (3,3,Ci,Co),
             s*/b* the folded BatchNorm scale/bias (conv bias absorbed).
    vmem_limit_bytes: keep <= ~48 MiB for v7x; raise toward ~96 MiB and use
             larger row blocks on v5e/v6e (128 MiB VMEM).
    """
    w1, s1, b1, w2, s2, b2 = params
    N, Cin, H, W = x_nchw.shape
    Cout = w1.shape[-1]
    Cp = _round_up(Cout, 128)                       # lane-dense channels
    itemsize = jnp.dtype(compute_dtype).itemsize
    align = 8 * (4 // itemsize)                     # 8 (f32) / 16 (bf16)
    Wpp = _round_up(W + 2, align)                   # sublane-aligned row pitch

    # Row-block selection (halo rows are recomputed per block).
    if row_block is None:
        row_block = H
        for cand in (64, 32, 16, 8):
            if H % cand == 0 and H > cand:
                row_block = cand
                break
    RB = row_block
    if H % RB != 0:
        raise ValueError(f"row_block={RB} must divide H={H}")
        # TODO(synk): support a remainder row block.
    nrb = H // RB

    K1 = 9 * Cin
    M1 = (RB + 2) * Wpp            # layer-1 rows per block (incl. halo rows)
    M2 = RB * Wpp                  # output rows per block

    # ---- wrapper-side layer-1 im2col (K = 9*Cin) -----------------------------
    # Padded frame: 2 extra rows top/bottom (1-row conv halo + 1 finite row for
    # the masked out-of-image block rows), 1 left col, Wpp+1-W right cols.
    xT = jnp.transpose(x_nchw, (0, 2, 3, 1)).astype(jnp.float32)   # (N,H,W,Ci)
    xp = jnp.pad(xT, ((0, 0), (2, 2), (1, Wpp + 1 - W), (0, 0)))
    taps = [xp[:, r:r + H + 2, c:c + Wpp, :] for r in range(3) for c in range(3)]
    xcol = jnp.stack(taps, axis=-2).reshape(N, H + 2, Wpp, K1)
    xcol = jnp.concatenate(
        [xcol[:, rb * RB:rb * RB + RB + 2][:, None] for rb in range(nrb)],
        axis=1)                                                    # (N,nrb,RB+2,Wpp,K1)
    xcol = xcol.reshape(N, nrb, M1, K1).astype(compute_dtype)

    # ---- fold BN scale into conv weights; pad channels to Cp -----------------
    w1f = w1 * s1[None, None, None, :]
    w1p = jnp.zeros((3, 3, Cin, Cp), jnp.float32).at[..., :Cout].set(w1f)
    w1p = w1p.reshape(K1, Cp).astype(compute_dtype)
    w2f = w2 * s2[None, None, None, :]
    w2p = jnp.zeros((3, 3, Cp, Cp), jnp.float32).at[:, :, :Cout, :Cout].set(w2f)
    w2p = w2p.reshape(3, 3 * Cp, Cp).astype(compute_dtype)
    b1p = jnp.zeros((1, Cp), jnp.float32).at[0, :Cout].set(b1.astype(jnp.float32))
    b2p = jnp.zeros((1, Cp), jnp.float32).at[0, :Cout].set(b2.astype(jnp.float32))

    # ---- validity mask: junk columns + out-of-image halo rows per row block --
    p = jnp.arange(RB + 2)
    wcol = jnp.arange(Wpp)
    rbs = jnp.arange(nrb)
    hrow = rbs[:, None, None] * RB - 1 + p[None, :, None]
    valid = (hrow >= 0) & (hrow < H) & (wcol[None, None, :] < W)
    mask = valid.astype(jnp.float32).reshape(nrb, M1, 1)

    kernel = _make_kernel(Wpp, Cp, M1, M2)

    out = pl.pallas_call(
        kernel,
        out_shape=jax.ShapeDtypeStruct((N, nrb * M2, Cp), compute_dtype),
        grid_spec=pltpu.PrefetchScalarGridSpec(
            num_scalar_prefetch=0,
            grid=(N, nrb),
            in_specs=[
                pl.BlockSpec((1, 1, M1, K1), lambda n, rb: (n, rb, 0, 0)),
                pl.BlockSpec((K1, Cp), lambda n, rb: (0, 0)),
                pl.BlockSpec((1, Cp), lambda n, rb: (0, 0)),
                pl.BlockSpec((3, 3 * Cp, Cp), lambda n, rb: (0, 0, 0)),
                pl.BlockSpec((1, Cp), lambda n, rb: (0, 0)),
                pl.BlockSpec((1, M1, 1), lambda n, rb: (rb, 0, 0)),
            ],
            out_specs=pl.BlockSpec((1, M2, Cp), lambda n, rb: (n, rb, 0)),
            scratch_shapes=[
                pltpu.VMEM((M1 + 2, Cp), compute_dtype),   # re-padded mid act
                pltpu.VMEM((M2, 3 * Cp), compute_dtype),   # layer-2 K=3*Cp lhs
            ],
        ),
        compiler_params=pltpu.CompilerParams(
            dimension_semantics=("parallel", "parallel"),
            vmem_limit_bytes=vmem_limit_bytes,
        ),
    )(xcol, w1p, b1p, w2p, b2p, mask)

    # Drop junk columns + channel padding, back to NCHW float32.
    out = out.reshape(N, H, Wpp, Cp)[:, :, :W, :Cout].astype(jnp.float32)
    return jnp.transpose(out, (0, 3, 1, 2))


def make_double_conv_params(key, in_channels, out_channels):
    """Deterministic synthetic parameters for DoubleConv (eval-mode BN).
    Conv bias is absorbed into the folded BN bias."""
    ks = jax.random.split(key, 10)
    eps = 1e-5

    def bn_fold(kg, kb, km, kv, c):
        gamma = jax.random.uniform(kg, (c,), jnp.float32, 0.5, 1.5)
        beta = jax.random.normal(kb, (c,)) * 0.1
        running_mean = jax.random.normal(km, (c,)) * 0.1
        running_var = jax.random.uniform(kv, (c,), jnp.float32, 0.5, 1.5)
        scale = gamma / jnp.sqrt(running_var + eps)
        bias = beta - running_mean * scale
        return scale, bias

    w1 = jax.random.normal(ks[0], (3, 3, in_channels, out_channels),
                           jnp.float32) * 0.1
    s1, b1 = bn_fold(ks[1], ks[2], ks[3], ks[4], out_channels)
    w2 = jax.random.normal(ks[5], (3, 3, out_channels, out_channels),
                           jnp.float32) * 0.1
    s2, b2 = bn_fold(ks[6], ks[7], ks[8], ks[9], out_channels)
    return (w1, s1, b1, w2, s2, b2)


def reference_double_conv(x_nchw, params):
    """Pure-XLA float32 reference for correctness checks."""
    w1, s1, b1, w2, s2, b2 = params
    dn = ("NHWC", "HWIO", "NHWC")
    hi = jax.lax.Precision.HIGHEST
    x = jnp.transpose(x_nchw, (0, 2, 3, 1))
    y = jax.lax.conv_general_dilated(x, w1, (1, 1), "SAME",
                                     dimension_numbers=dn, precision=hi)
    y = jnp.maximum(y * s1 + b1, 0.0)
    y = jax.lax.conv_general_dilated(y, w2, (1, 1), "SAME",
                                     dimension_numbers=dn, precision=hi)
    y = jnp.maximum(y * s2 + b2, 0.0)
    return jnp.transpose(y, (0, 3, 1, 2))


if __name__ == "__main__":
    key = jax.random.PRNGKey(0)
    k_x, k_p = jax.random.split(key)

    in_channels, out_channels = 4, 8
    x = jax.random.normal(k_x, (2, in_channels, 16, 16), jnp.float32)  # NCHW
    params = make_double_conv_params(k_p, in_channels, out_channels)

    # Performance path: bf16 MXU operands, f32 accumulation, bf16 output.
    # Default row_block picks 8 here -> 2 row blocks, exercising the
    # block-halo / masking path.
    y = double_conv(x, params)
    jax.block_until_ready(y)
    assert y.shape == (2, out_channels, 16, 16), y.shape

    # Sanity check against the XLA conv reference (loose tolerance for bf16).
    y_ref = reference_double_conv(x, params)
    max_err = float(jnp.max(jnp.abs(y - y_ref)))
    assert max_err < 0.3, f"max abs err vs reference: {max_err}"

    print("KERNEL_OK")
</pallas_src>

<mosaic_0001>
module attributes {stable_mosaic.version = 11 : i64} {
  func.func @kernel(%arg0: i32, %arg1: i32, %arg2: memref<1x1x320x36xbf16, #tpu.memory_space<vmem>>, %arg3: memref<36x128xbf16, #tpu.memory_space<vmem>>, %arg4: memref<1x128xf32, #tpu.memory_space<vmem>>, %arg5: memref<3x384x128xbf16, #tpu.memory_space<vmem>>, %arg6: memref<1x128xf32, #tpu.memory_space<vmem>>, %arg7: memref<1x320x1xf32, #tpu.memory_space<vmem>>, %arg8: memref<1x256x128xbf16, #tpu.memory_space<vmem>>, %arg9: memref<322x128xbf16, #tpu.memory_space<vmem>>, %arg10: memref<256x384xbf16, #tpu.memory_space<vmem>>) attributes {dimension_semantics = [#tpu.dimension_semantics<parallel>, #tpu.dimension_semantics<parallel>], iteration_bounds = array<i64: 2, 2>, scalar_prefetch = 0 : i64, scratch_operands = 2 : i64, tpu.core_type = #tpu.core_type<tc>, window_params = [{transform_indices = @transform_0, window_bounds = array<i64: 1, 1, 320, 36>}, {pipeline_mode = #tpu.pipeline_mode<synchronous>, transform_indices = @transform_1, window_bounds = array<i64: 36, 128>}, {pipeline_mode = #tpu.pipeline_mode<synchronous>, transform_indices = @transform_2, window_bounds = array<i64: 1, 128>}, {pipeline_mode = #tpu.pipeline_mode<synchronous>, transform_indices = @transform_3, window_bounds = array<i64: 3, 384, 128>}, {pipeline_mode = #tpu.pipeline_mode<synchronous>, transform_indices = @transform_4, window_bounds = array<i64: 1, 128>}, {transform_indices = @transform_5, window_bounds = array<i64: 1, 320, 1>}, {transform_indices = @transform_6, window_bounds = array<i64: 1, 256, 128>}]} {
    %c0 = arith.constant 0 : index
    %c0_0 = arith.constant 0 : index
    %c0_1 = arith.constant 0 : index
    %c0_2 = arith.constant 0 : index
    %0 = vector.load %arg2[%c0, %c0_0, %c0_1, %c0_2] : memref<1x1x320x36xbf16, #tpu.memory_space<vmem>>, vector<1x1x320x36xbf16>
    %1 = vector.shape_cast %0 : vector<1x1x320x36xbf16> to vector<320x36xbf16>
    %c0_3 = arith.constant 0 : index
    %c0_4 = arith.constant 0 : index
    %2 = vector.load %arg3[%c0_3, %c0_4] : memref<36x128xbf16, #tpu.memory_space<vmem>>, vector<36x128xbf16>
    %cst = arith.constant dense<0.000000e+00> : vector<320x128xf32>
    %3 = tpu.matmul %1, %2, %cst {dimension_numbers = #tpu.dot_dimension_numbers<[1], [0], [0], [1], [0, 0, 1, 1], [], []>} : vector<320x36xbf16>, vector<36x128xbf16>, vector<320x128xf32> -> vector<320x128xf32>
    %c0_5 = arith.constant 0 : index
    %c0_6 = arith.constant 0 : index
    %4 = vector.load %arg4[%c0_5, %c0_6] : memref<1x128xf32, #tpu.memory_space<vmem>>, vector<1x128xf32>
    %5 = vector.broadcast %4 : vector<1x128xf32> to vector<320x128xf32>
    %6 = arith.addf %3, %5 : vector<320x128xf32>
    %cst_7 = arith.constant 0.000000e+00 : f32
    %7 = vector.broadcast %cst_7 : f32 to vector<320x128xf32>
    %8 = arith.maximumf %6, %7 : vector<320x128xf32>
    %c0_8 = arith.constant 0 : index
    %c0_9 = arith.constant 0 : index
    %c0_10 = arith.constant 0 : index
    %9 = vector.load %arg7[%c0_8, %c0_9, %c0_10] : memref<1x320x1xf32, #tpu.memory_space<vmem>>, vector<1x320x1xf32>
    %10 = vector.shape_cast %9 : vector<1x320x1xf32> to vector<320x1xf32>
    %11 = vector.broadcast %10 : vector<320x1xf32> to vector<320x128xf32>
    %12 = arith.mulf %8, %11 : vector<320x128xf32>
    %cst_11 = arith.constant 0.000000e+00 : bf16
    %13 = vector.broadcast %cst_11 : bf16 to vector<1x128xbf16>
    %c0_12 = arith.constant 0 : index
    %c0_13 = arith.constant 0 : index
    %14 = vector.load %arg9[%c0_12, %c0_13] : memref<322x128xbf16, #tpu.memory_space<vmem>>, vector<1x128xbf16>
    tpu.vector_store %arg9[%c0_12, %c0_13], %13 {strides = array<i32>} : memref<322x128xbf16, #tpu.memory_space<vmem>>, vector<1x128xbf16>,
    %c321 = arith.constant 321 : index
    %c0_14 = arith.constant 0 : index
    %15 = vector.load %arg9[%c321, %c0_14] : memref<322x128xbf16, #tpu.memory_space<vmem>>, vector<1x128xbf16>
    tpu.vector_store %arg9[%c321, %c0_14], %13 {strides = array<i32>} : memref<322x128xbf16, #tpu.memory_space<vmem>>, vector<1x128xbf16>,
    %16 = arith.truncf %12 : vector<320x128xf32> to vector<320x128xbf16>
    %c1 = arith.constant 1 : index
    %c0_15 = arith.constant 0 : index
    %17 = vector.load %arg9[%c1, %c0_15] : memref<322x128xbf16, #tpu.memory_space<vmem>>, vector<320x128xbf16>
    tpu.vector_store %arg9[%c1, %c0_15], %16 {strides = array<i32>} : memref<322x128xbf16, #tpu.memory_space<vmem>>, vector<320x128xbf16>,
    %c0_16 = arith.constant 0 : index
    %c0_17 = arith.constant 0 : index
    %18 = vector.load %arg9[%c0_16, %c0_17] : memref<322x128xbf16, #tpu.memory_space<vmem>>, vector<256x128xbf16>
    %c0_18 = arith.constant 0 : index
    %c0_19 = arith.constant 0 : index
    %19 = vector.load %arg10[%c0_18, %c0_19] : memref<256x384xbf16, #tpu.memory_space<vmem>>, vector<256x128xbf16>
    tpu.vector_store %arg10[%c0_18, %c0_19], %18 {strides = array<i32>} : memref<256x384xbf16, #tpu.memory_space<vmem>>, vector<256x128xbf16>,
    %c1_20 = arith.constant 1 : index
    %c0_21 = arith.constant 0 : index
    %20 = vector.load %arg9[%c1_20, %c0_21] : memref<322x128xbf16, #tpu.memory_space<vmem>>, vector<256x128xbf16>
    %c0_22 = arith.constant 0 : index
    %c128 = arith.constant 128 : index
    %21 = vector.load %arg10[%c0_22, %c128] : memref<256x384xbf16, #tpu.memory_space<vmem>>, vector<256x128xbf16>
    tpu.vector_store %arg10[%c0_22, %c128], %20 {strides = array<i32>} : memref<256x384xbf16, #tpu.memory_space<vmem>>, vector<256x128xbf16>,
    %c2 = arith.constant 2 : index
    %c0_23 = arith.constant 0 : index
    %22 = vector.load %arg9[%c2, %c0_23] : memref<322x128xbf16, #tpu.memory_space<vmem>>, vector<256x128xbf16>
    %c0_24 = arith.constant 0 : index
    %c256 = arith.constant 256 : index
    %23 = vector.load %arg10[%c0_24, %c256] : memref<256x384xbf16, #tpu.memory_space<vmem>>, vector<256x128xbf16>
    tpu.vector_store %arg10[%c0_24, %c256], %22 {strides = array<i32>} : memref<256x384xbf16, #tpu.memory_space<vmem>>, vector<256x128xbf16>,
    %c0_25 = arith.constant 0 : index
    %c0_26 = arith.constant 0 : index
    %24 = vector.load %arg10[%c0_25, %c0_26] : memref<256x384xbf16, #tpu.memory_space<vmem>>, vector<256x384xbf16>
    %c0_27 = arith.constant 0 : index
    %c0_28 = arith.constant 0 : index
    %c0_29 = arith.constant 0 : index
    %25 = vector.load %arg5[%c0_27, %c0_28, %c0_29] : memref<3x384x128xbf16, #tpu.memory_space<vmem>>, vector<1x384x128xbf16>
    %26 = vector.shape_cast %25 : vector<1x384x128xbf16> to vector<384x128xbf16>
    %cst_30 = arith.constant dense<0.000000e+00> : vector<256x128xf32>
    %27 = tpu.matmul %24, %26, %cst_30 {dimension_numbers = #tpu.dot_dimension_numbers<[1], [0], [0], [1], [0, 0, 1, 1], [], []>} : vector<256x384xbf16>, vector<384x128xbf16>, vector<256x128xf32> -> vector<256x128xf32>
    %c32 = arith.constant 32 : index
    %c0_31 = arith.constant 0 : index
    %28 = vector.load %arg9[%c32, %c0_31] : memref<322x128xbf16, #tpu.memory_space<vmem>>, vector<256x128xbf16>
    %c0_32 = arith.constant 0 : index
    %c0_33 = arith.constant 0 : index
    %29 = vector.load %arg10[%c0_32, %c0_33] : memref<256x384xbf16, #tpu.memory_space<vmem>>, vector<256x128xbf16>
    tpu.vector_store %arg10[%c0_32, %c0_33], %28 {strides = array<i32>} : memref<256x384xbf16, #tpu.memory_space<vmem>>, vector<256x128xbf16>,
    %c33 = arith.constant 33 : index
    %c0_34 = arith.constant 0 : index
    %30 = vector.load %arg9[%c33, %c0_34] : memref<322x128xbf16, #tpu.memory_space<vmem>>, vector<256x128xbf16>
    %c0_35 = arith.constant 0 : index
    %c128_36 = arith.constant 128 : index
    %31 = vector.load %arg10[%c0_35, %c128_36] : memref<256x384xbf16, #tpu.memory_space<vmem>>, vector<256x128xbf16>
    tpu.vector_store %arg10[%c0_35, %c128_36], %30 {strides = array<i32>} : memref<256x384xbf16, #tpu.memory_space<vmem>>, vector<256x128xbf16>,
    %c34 = arith.constant 34 : index
    %c0_37 = arith.constant 0 : index
    %32 = vector.load %arg9[%c34, %c0_37] : memref<322x128xbf16, #tpu.memory_space<vmem>>, vector<256x128xbf16>
    %c0_38 = arith.constant 0 : index
    %c256_39 = arith.constant 256 : index
    %33 = vector.load %arg10[%c0_38, %c256_39] : memref<256x384xbf16, #tpu.memory_space<vmem>>, vector<256x128xbf16>
    tpu.vector_store %arg10[%c0_38, %c256_39], %32 {strides = array<i32>} : memref<256x384xbf16, #tpu.memory_space<vmem>>, vector<256x128xbf16>,
    %c0_40 = arith.constant 0 : index
    %c0_41 = arith.constant 0 : index
    %34 = vector.load %arg10[%c0_40, %c0_41] : memref<256x384xbf16, #tpu.memory_space<vmem>>, vector<256x384xbf16>
    %c1_42 = arith.constant 1 : index
    %c0_43 = arith.constant 0 : index
    %c0_44 = arith.constant 0 : index
    %35 = vector.load %arg5[%c1_42, %c0_43, %c0_44] : memref<3x384x128xbf16, #tpu.memory_space<vmem>>, vector<1x384x128xbf16>
    %36 = vector.shape_cast %35 : vector<1x384x128xbf16> to vector<384x128xbf16>
    %cst_45 = arith.constant dense<0.000000e+00> : vector<256x128xf32>
    %37 = tpu.matmul %34, %36, %cst_45 {dimension_numbers = #tpu.dot_dimension_numbers<[1], [0], [0], [1], [0, 0, 1, 1], [], []>} : vector<256x384xbf16>, vector<384x128xbf16>, vector<256x128xf32> -> vector<256x128xf32>
    %38 = arith.addf %27, %37 : vector<256x128xf32>
    %c64 = arith.constant 64 : index
    %c0_46 = arith.constant 0 : index
    %39 = vector.load %arg9[%c64, %c0_46] : memref<322x128xbf16, #tpu.memory_space<vmem>>, vector<256x128xbf16>
    %c0_47 = arith.constant 0 : index
    %c0_48 = arith.constant 0 : index
    %40 = vector.load %arg10[%c0_47, %c0_48] : memref<256x384xbf16, #tpu.memory_space<vmem>>, vector<256x128xbf16>
    tpu.vector_store %arg10[%c0_47, %c0_48], %39 {strides = array<i32>} : memref<256x384xbf16, #tpu.memory_space<vmem>>, vector<256x128xbf16>,
    %c65 = arith.constant 65 : index
    %c0_49 = arith.constant 0 : index
    %41 = vector.load %arg9[%c65, %c0_49] : memref<322x128xbf16, #tpu.memory_space<vmem>>, vector<256x128xbf16>
    %c0_50 = arith.constant 0 : index
    %c128_51 = arith.constant 128 : index
    %42 = vector.load %arg10[%c0_50, %c128_51] : memref<256x384xbf16, #tpu.memory_space<vmem>>, vector<256x128xbf16>
    tpu.vector_store %arg10[%c0_50, %c128_51], %41 {strides = array<i32>} : memref<256x384xbf16, #tpu.memory_space<vmem>>, vector<256x128xbf16>,
    %c66 = arith.constant 66 : index
    %c0_52 = arith.constant 0 : index
    %43 = vector.load %arg9[%c66, %c0_52] : memref<322x128xbf16, #tpu.memory_space<vmem>>, vector<256x128xbf16>
    %c0_53 = arith.constant 0 : index
    %c256_54 = arith.constant 256 : index
    %44 = vector.load %arg10[%c0_53, %c256_54] : memref<256x384xbf16, #tpu.memory_space<vmem>>, vector<256x128xbf16>
    tpu.vector_store %arg10[%c0_53, %c256_54], %43 {strides = array<i32>} : memref<256x384xbf16, #tpu.memory_space<vmem>>, vector<256x128xbf16>,
    %c0_55 = arith.constant 0 : index
    %c0_56 = arith.constant 0 : index
    %45 = vector.load %arg10[%c0_55, %c0_56] : memref<256x384xbf16, #tpu.memory_space<vmem>>, vector<256x384xbf16>
    %c2_57 = arith.constant 2 : index
    %c0_58 = arith.constant 0 : index
    %c0_59 = arith.constant 0 : index
    %46 = vector.load %arg5[%c2_57, %c0_58, %c0_59] : memref<3x384x128xbf16, #tpu.memory_space<vmem>>, vector<1x384x128xbf16>
    %47 = vector.shape_cast %46 : vector<1x384x128xbf16> to vector<384x128xbf16>
    %cst_60 = arith.constant dense<0.000000e+00> : vector<256x128xf32>
    %48 = tpu.matmul %45, %47, %cst_60 {dimension_numbers = #tpu.dot_dimension_numbers<[1], [0], [0], [1], [0, 0, 1, 1], [], []>} : vector<256x384xbf16>, vector<384x128xbf16>, vector<256x128xf32> -> vector<256x128xf32>
    %49 = arith.addf %38, %48 : vector<256x128xf32>
    %c0_61 = arith.constant 0 : index
    %c0_62 = arith.constant 0 : index
    %50 = vector.load %arg6[%c0_61, %c0_62] : memref<1x128xf32, #tpu.memory_space<vmem>>, vector<1x128xf32>
    %51 = vector.broadcast %50 : vector<1x128xf32> to vector<256x128xf32>
    %52 = arith.addf %49, %51 : vector<256x128xf32>
    %cst_63 = arith.constant 0.000000e+00 : f32
    %53 = vector.broadcast %cst_63 : f32 to vector<256x128xf32>
    %54 = arith.maximumf %52, %53 : vector<256x128xf32>
    %55 = vector.shape_cast %54 : vector<256x128xf32> to vector<1x256x128xf32>
    %56 = arith.truncf %55 : vector<1x256x128xf32> to vector<1x256x128xbf16>
    %c0_64 = arith.constant 0 : index
    %c0_65 = arith.constant 0 : index
    %c0_66 = arith.constant 0 : index
    %57 = vector.load %arg8[%c0_64, %c0_65, %c0_66] : memref<1x256x128xbf16, #tpu.memory_space<vmem>>, vector<1x256x128xbf16>
    tpu.vector_store %arg8[%c0_64, %c0_65, %c0_66], %56 {strides = array<i32>} : memref<1x256x128xbf16, #tpu.memory_space<vmem>>, vector<1x256x128xbf16>,
    return
  }
  func.func @transform_0(%arg0: i32, %arg1: i32) -> (i32, i32, i32, i32) {
    %c0_i32 = arith.constant 0 : i32
    %c0_i32_0 = arith.constant 0 : i32
    %c0_i32_1 = arith.constant 0 : i32
    return %arg0, %arg1, %c0_i32, %c0_i32_0 : i32, i32, i32, i32
  }
  func.func @transform_1(%arg0: i32, %arg1: i32) -> (i32, i32) {
    %c0_i32 = arith.constant 0 : i32
    %c0_i32_0 = arith.constant 0 : i32
    %c0_i32_1 = arith.constant 0 : i32
    return %c0_i32, %c0_i32_0 : i32, i32
  }
  func.func @transform_2(%arg0: i32, %arg1: i32) -> (i32, i32) {
    %c0_i32 = arith.constant 0 : i32
    %c0_i32_0 = arith.constant 0 : i32
    %c0_i32_1 = arith.constant 0 : i32
    return %c0_i32, %c0_i32_0 : i32, i32
  }
  func.func @transform_3(%arg0: i32, %arg1: i32) -> (i32, i32, i32) {
    %c0_i32 = arith.constant 0 : i32
    %c0_i32_0 = arith.constant 0 : i32
    %c0_i32_1 = arith.constant 0 : i32
    %c0_i32_2 = arith.constant 0 : i32
    return %c0_i32, %c0_i32_0, %c0_i32_1 : i32, i32, i32
  }
  func.func @transform_4(%arg0: i32, %arg1: i32) -> (i32, i32) {
    %c0_i32 = arith.constant 0 : i32
    %c0_i32_0 = arith.constant 0 : i32
    %c0_i32_1 = arith.constant 0 : i32
    return %c0_i32, %c0_i32_0 : i32, i32
  }
  func.func @transform_5(%arg0: i32, %arg1: i32) -> (i32, i32, i32) {
    %c0_i32 = arith.constant 0 : i32
    %c0_i32_0 = arith.constant 0 : i32
    %c0_i32_1 = arith.constant 0 : i32
    return %arg1, %c0_i32, %c0_i32_0 : i32, i32, i32
  }
  func.func @transform_6(%arg0: i32, %arg1: i32) -> (i32, i32, i32) {
    %c0_i32 = arith.constant 0 : i32
    %c0_i32_0 = arith.constant 0 : i32
    return %arg0, %arg1, %c0_i32 : i32, i32, i32
  }
}

</mosaic_0001>

<bundles_post_ra>
// kernel: tpu_custom_call.1
= control target key start
LH: loop header
LB: loop body
LE: loop exit
PB: predicated region body
PF: predicated region fallthrough
CT: control target
= control target key end

     0   :  { %11 = vsyncpa [#allocation5], 0  ;;  %s10380_s0 = inlined_call_operand.vmem [shape: bf16[2,2,320,36], index: 0, kind: input, shape index: {}]   ;;  %s10381_s1 = inlined_call_operand.vmem [shape: bf16[36,128], index: 1, kind: input, shape index: {}]   ;;  %s10382_s2 = inlined_call_operand.vmem [shape: f32[1,128], index: 2, kind: input, shape index: {}]   ;;  %s10383_s3 = inlined_call_operand.vmem [shape: bf16[3,384,128], index: 3, kind: input, shape index: {}]   ;;  %s10384_s4 = inlined_call_operand.vmem [shape: f32[1,128], index: 4, kind: input, shape index: {}]   ;;  %s10385_s5 = inlined_call_operand.vmem [shape: f32[2,320,1], index: 5, kind: input, shape index: {}]   ;;  %s10386_s6 = inlined_call_operand.hbm [shape: bf16[2,512,128], index: 6, kind: output, shape index: {}]  }
   0x1   :  { %13 = vsyncpa [#allocation5 + $0x1], 0  ;;  %s7887_s21 = smov 0   ;;  %s7889_s22 = smov 0  }
   0x2   :  { %s7891_s23 = smov 0   ;;  %s7893_s24 = smov 0  }
   0x3   :  { %s7895_s25 = smov 0   ;;  %s7897_s26 = smov 0  }
   0x4   :  { %s7899_s27 = smov 0   ;;  %s7901_s28 = smov 0  }
   0x5 LB: > { %s6218_s29 = sadd.s32 4294967295, %s7847_s28   ;;  %s6219_s30 = sadd.s32 4294967294, %s7847_s28   ;;  %s7847_s28 = sphi %s7901_s28, %s19_s28   ;;  %s7843_s27 = sphi %s7899_s27, %s10669_s27   ;;  %s7839_s26 = sphi %s7897_s26, %s10668_s26   ;;  %s7835_s25 = sphi %s7895_s25, %s10667_s25   ;;  %s7831_s24 = sphi %s7893_s24, %s10666_s24   ;;  %s7827_s23 = sphi %s7891_s23, %s10665_s23   ;;  %s7823_s22 = sphi %s7889_s22, %s10664_s22   ;;  %s7819_s21 = sphi %s7887_s21, %s10663_s21  }
   0x6   : > { %s28_s7 = sadd.s32 1, %s7839_s26  ;;  %s31_s8 = sadd.s32 1, %s7843_s27 }
   0x7   : > { %p29_p0 = scmp.ge.s32.totalorder %s28_s7, 2  ;;  %p188_p1 = scmp.ne.s32.totalorder %s7827_s23, %s7823_s22 }
   0x8   : > { %p189_p2 = scmp.eq.s32.totalorder %s6218_s29, 3  ;;  %p194_p5 = scmp.ne.s32.totalorder %s7823_s22, %s7819_s21 }
   0x9   : > { %s10671_s7 = smov (%p29_p0, %s28_s7), 0  ;;  %s10673_s8 = smov (!%p29_p0, %s31_s8), %s7843_s27 }
   0xa   : > { %s174_s9 = ssub.s32 %s7839_s26, %s10671_s7  ;;  %p7938_p3 = por %p189_p2, %p188_p1 }
   0xb   : > { %p33_p4 = scmp.ge.s32.totalorder %s10673_s8, 2  ;;  %p195_p6 = scmp.eq.s32.totalorder %s6219_s30, 3 }
   0xc   : > { %p6222_p7 = scmp.ge.s32.totalorder %s7847_s28, 1  ;;  %p245_p9 = scmp.lt.s32.totalorder %s7847_s28, 5 }
   0xd   : > { %s10675_s8 = smov (%p33_p4, %s10673_s8), 0  ;;  %p7947_p8 = por %p195_p6, %p194_p5 }
   0xe   : > { %s173_s12 = ssub.s32 %s7843_s27, %s10675_s8  ;;  %s178_s13 = sadd.s32 1, %s7827_s23 }
   0xf   : > { %s175_s14 = sor.u32 %s174_s9, %s173_s12  ;;  %p246_p10 = pnand %p6222_p7, %p245_p9 }
  0x10   : > { %p176_p11 = scmp.eq.s32.totalorder %s175_s14, 0 }
  0x11   : > { %249 = sbr.rel (%p246_p10) target bundleno = 1235 (0x4d3), region = 44 }
  0x12   : > { %s7956_s15 = scalar_select %p176_p11, %s7827_s23, %s178_s13  }
  0x16   : > { %v344_v0 = vld [vmem:[%s10381_s1 + $0x10] sm:$0x3]  ;;  %p286_p12 = scmp.lt.s32.totalorder %s7831_s24, 1  ;;  %v7849_v2 = vmov 0   ;;  %p284_p13 = scmp.lt.s32.totalorder %s7835_s25, 1  ;;  %vm525_vm0 = vcmask 1041408  }
  0x17   : > { %v458_v1 = vunpack.c.l.b16 %v344_v0  ;;  %7737 = vset.pattern.permute.xlu0 %v7849_v2  ;;  %7738 = vset.pattern.permute.xlu1 %v7849_v2  ;;  %v7324_v5 = vld [vmem:[%s10381_s1 + $0x8] sm:$0xff]  ;;  %v7323_v9 = vld [vmem:[%s10381_s1] sm:$0xff]  ;;  %vm464_vm1 = vcmask 293888   ;;  %vm958_vm2 = vcmask 1040384   ;;  %vm959_vm3 = vsmask.f32 256 }
  0x18   : > { %s287_s18 = scalar_select %p286_p12, %s7831_s24, 1  ;;  %7739 = vset.pattern.permute.xlu2 %v7849_v2  ;;  %v961_v42 = vld [vmem:[#allocation2] sm:$0x1]  ;;  %vm8024_vm4 = vmand %vm958_vm2, %vm959_vm3  ;;  %v10416_v43 = vmov 0  ;;  %vm964_vm5 = vsmask.f32 7938 }
  0x19   : > { %v461_v3 = vpack.c.b16 %v458_v1, %v458_v1  ;;  %s285_s19 = scalar_select %p284_p13, %s7835_s25, 1  ;;  %v10417_v43 = vsel %vm8024_vm4, 4294967295, %v10416_v43  ;;  %v966_v44 = vld [vmem:[#allocation2 + $0xa0] sm:$0x1]  ;;  %v962_v45 = vsel %vm8024_vm4, 0, %v961_v42  ;;  %vm965_vm6 = vmand %vm958_vm2, %vm964_vm5  ;;  %vm1411_vm7 = vcmask 1043456  }
  0x1a   : > { %s7662_s20 = smul.u32 320, %s287_s18  ;;  %10418 = vst [vmem:[#allocation7_spill] sm:$0xff] %v10417_v43  ;;  %v967_v46 = vsel %vm965_vm6, 0, %v966_v44  ;;  %v8055_v61 = vld [vmem:[%s10382_s2] ss:$0 sm:$0xff]  ;;  %vm1412_vm8 = vmand %vm1411_vm7, %vm964_vm5  ;;  %vm2012_vm14 = vcmask 1042432  }
  0x1b   : > { %v527_v4 = vsel %vm525_vm0, %v461_v3, 0  ;;  %s7660_s29 = smul.u32 40, %s287_s18  ;;  %963 = vst [vmem:[#allocation2] sm:$0x1] %v962_v45  ;;  %vm1009_vm9 = vsmask.f32 4368 }
  0x1c   : > { %534 = vmatpush.bf16.msra.mxu0 %v527_v4  ;;  %s7968_s12 = scalar_lea.vmem %s10385_s5, %s7662_s20  ;;  %s7661_s16 = smul.u32 80, %s285_s19  ;;  %968 = vst [vmem:[#allocation2 + $0xa0] sm:$0x1] %v967_v46  ;;  %vm8084_vm10 = vmor %vm959_vm3, %vm1009_vm9  ;;  %vm1555_vm11 = vsmask.f32 3328  ;;  %vm2013_vm15 = vcmask 1046532  }
  0x1d   : > { %v691_v6 = vld [vmem:[%s7968_s12 + $0x68] sm:$0xff]  ;;  %v693_v7 = vld [vmem:[%s7968_s12 + $0x78] sm:$0xff]  ;;  %v692_v10 = vld [vmem:[%s7968_s12 + $0x70] sm:$0xff]  ;;  %vm1556_vm12 = vsmask.f32 7440  ;;  %s281_s19 = sand.u32 1, %s7823_s22  }
  0x1e   : > { %785 = vperm.xlu0 %7737, %v691_v6   ;;  %s290_s17 = sadd.s32 %s7661_s16, %s7660_s29  ;;  %v695_v8 = vld [vmem:[%s7968_s12 + $0x88] sm:$0xff]  ;;  %795 = vperm.xlu1 %7738, %v693_v7   ;;  %v694_v12 = vld [vmem:[%s7968_s12 + $0x80] sm:$0xff]  ;;  %v696_v13 = vld [vmem:[%s7968_s12 + $0x90] sm:$0xff]  ;;  %s6223_s29 = sshll.u32 %s281_s19, 7 }
  0x1f   : > { %s6224_s18 = sshll.u32 %s290_s17, 2  ;;  %805 = vperm.xlu2 %7739, %v695_v8   ;;  %v697_v14 = vld [vmem:[%s7968_s12 + $0x98] sm:$0xff]  ;;  %v698_v15 = vld [vmem:[%s7968_s12 + $0xa0] sm:$0xff]  ;;  %v679_v17 = vld [vmem:[%s7968_s12 + $0x8] sm:$0xff]  ;;  %s10210_s14 = scalar_lea.vmem [#allocation4], %s6223_s29 }
  0x20   : > { %535 = vmatpush.bf16.msra.mxu0 %v7324_v5  ;;  %s7982_s13 = scalar_lea.vmem %s10380_s0, %s6224_s18  ;;  %v678_v16 = vld [vmem:[%s7968_s12] sm:$0xff]  ;;  %v681_v19 = vld [vmem:[%s7968_s12 + $0x18] sm:$0xff]  ;;  %v683_v20 = vld [vmem:[%s7968_s12 + $0x28] sm:$0xff]  ;;  %s7298_s16 = sshll.u32 %s7831_s24, 5 }
  0x21   : > { %v7303_v11 = vld [vmem:[%s7982_s13] sm:$0xff]  ;;  %v7304_v18 = vld [vmem:[%s7982_s13 + $0x8] sm:$0xff]  ;;  %v680_v22 = vld [vmem:[%s7968_s12 + $0x10] sm:$0xff]  ;;  %s7299_s17 = sshll.u32 %s7835_s25, 6  ;;  %s6118_s20 = sshll.u32 %s10210_s14, 4  ;;  %s6119_s20 = int_to_ptr.vmem [resolvable:$true] %s6118_s20 }
  0x22   : > { %v699_v21 = vld [vmem:[%s7968_s12 + $0xa8] sm:$0xff]  ;;  %v7305_v23 = vld [vmem:[%s7982_s13 + $0x10] sm:$0xff]  ;;  %v701_v24 = vld [vmem:[%s7968_s12 + $0xb8] sm:$0xff]  ;;  %s6115_s18 = sadd.s32 %s7299_s17, %s7298_s16  ;;  %s6104_s9 = scalar_lea.sflag [#allocation5], %s281_s19 }
  0x23   : > { %v682_v25 = vld [vmem:[%s7968_s12 + $0x20] sm:$0xff]  ;;  %v685_v26 = vld [vmem:[%s7968_s12 + $0x38] sm:$0xff]  ;;  %v700_v28 = vld [vmem:[%s7968_s12 + $0xb0] sm:$0xff] }
  0x24   : > { %536 = vmatpush.bf16.msra.mxu0 %v7323_v9  ;;  %v702_v27 = vld [vmem:[%s7968_s12 + $0xc0] sm:$0xff]  ;;  %v7306_v29 = vld [vmem:[%s7982_s13 + $0x18] sm:$0xff]  ;;  %v687_v31 = vld [vmem:[%s7968_s12 + $0x48] sm:$0xff] }
  0x25   : > { %v686_v30 = vld [vmem:[%s7968_s12 + $0x40] sm:$0xff]  ;;  %v684_v32 = vld [vmem:[%s7968_s12 + $0x30] sm:$0xff]  ;;  %v703_v35 = vld [vmem:[%s7968_s12 + $0xc8] sm:$0xff] }
  0x26   : > { %790 = vperm.xlu0 %7737, %v692_v10   ;;  %800 = vperm.xlu1 %7738, %v694_v12   ;;  %v688_v33 = vld [vmem:[%s7968_s12 + $0x50] sm:$0xff]  ;;  %v7307_v34 = vld [vmem:[%s7982_s13 + $0x20] sm:$0xff]  ;;  %v7308_v36 = vld [vmem:[%s7982_s13 + $0x28] sm:$0xff] }
  0x27   : > { %6314 = vmatmul.msk.bf16.vlgmr.msra.gmra.mxu0 %vm464_vm1, %v7303_v11  ;;  %810 = vperm.xlu2 %7739, %v696_v13   ;;  %v705_v37 = vld [vmem:[%s7968_s12 + $0xd8] sm:$0xff]  ;;  %v704_v38 = vld [vmem:[%s7968_s12 + $0xd0] sm:$0xff]  ;;  %v706_v39 = vld [vmem:[%s7968_s12 + $0xe0] sm:$0xff] }
  0x28   : > { %v7309_v40 = vld [vmem:[%s7982_s13 + $0x30] sm:$0xff]  ;;  %v689_v41 = vld [vmem:[%s7968_s12 + $0x58] sm:$0xff]  ;;  %v707_v48 = vld [vmem:[%s7968_s12 + $0xe8] sm:$0xff] }
  0x29   : > { %v708_v47 = vld [vmem:[%s7968_s12 + $0xf0] sm:$0xff]  ;;  %v690_v49 = vld [vmem:[%s7968_s12 + $0x60] sm:$0xff]  ;;  %v7310_v52 = vld [vmem:[%s7982_s13 + $0x38] sm:$0xff] }
  0x2a   : > { %v711_v53 = vld [vmem:[%s7968_s12 + $0x108] sm:$0xff]  ;;  %v709_v54 = vld [vmem:[%s7968_s12 + $0xf8] sm:$0xff]  ;;  %v714_v56 = vld [vmem:[%s7968_s12 + $0x120] sm:$0xff] }
  0x2b   : > { %v712_v58 = vld [vmem:[%s7968_s12 + $0x110] sm:$0xff]  ;;  %v7311_v62 = vld [vmem:[%s7982_s13 + $0x40] sm:$0xff]  ;;  %v717_v63 = vld [vmem:[%s7968_s12 + $0x138] sm:$0xff] }
  0x2c   : > { %v715_v2 = vld [vmem:[%s7968_s12 + $0x128] sm:$0xff]  ;;  %v7452_v12 = vld [vmem:[%s10383_s3 + $0xf8] sm:$0xff]  ;;  %vm8111_vm13 = vmor %vm1555_vm11, %vm1556_vm12 }
  0x2d   : > { %3513 = vmatpush.bf16.msra.mxu1 %v7452_v12  ;;  %7636 = vmatpush.bf16.msra.mxu3 %v7452_v12  ;;  %vm9254_vm0 = vmor %vm2012_vm14, %vm2013_vm15 }
  0x2e   : > { %815 = vperm.xlu0 %7737, %v697_v14   ;;  %820 = vperm.xlu1 %7738, %v698_v15  }
  0x2f   : > { %720 = vperm.xlu2 %7739, %v678_v16   ;;  %v1413_v16 = vld [vmem:[#allocation2] sm:$0xf] }
  0x36   : > { %725 = vperm.xlu0 %7737, %v679_v17   ;;  %735 = vperm.xlu1 %7738, %v681_v19  }
  0x37   : > { %6315 = vmatmul.msk.bf16.gmra.mxu0 %vm464_vm1, %v7304_v18  ;;  %740 = vperm.xlu2 %7739, %v682_v25  }
  0x3e   : > { %745 = vperm.xlu0 %7737, %v683_v20   ;;  %825 = vperm.xlu1 %7738, %v699_v21   ;;  %v7451_v20 = vld [vmem:[%s10383_s3 + $0xf0] sm:$0xff]  ;;  %v710_v21 = vld [vmem:[%s7968_s12 + $0x100] sm:$0xff] }
  0x3f   : > { %830 = vperm.xlu2 %7739, %v700_v28   ;;  %3514 = vmatpush.bf16.msra.mxu1 %v7451_v20 }
  0x40   : > { %7637 = vmatpush.bf16.msra.mxu3 %v7451_v20 }
  0x46   : > { %730 = vperm.xlu0 %7737, %v680_v22   ;;  %835 = vperm.xlu1 %7738, %v701_v24   ;;  %v7312_v24 = vld [vmem:[%s7982_s13 + $0x48] sm:$0xff] }
  0x47   : > { %6316 = vmatmul.msk.bf16.gmra.mxu0 %vm464_vm1, %v7305_v23  ;;  %750 = vperm.xlu2 %7739, %v684_v32  }
  0x4e   : > { %755 = vperm.xlu0 %7737, %v685_v26   ;;  %840 = vperm.xlu1 %7738, %v702_v27  }
  0x4f   : > { %845 = vperm.xlu2 %7739, %v703_v35  }
  0x56   : > { %760 = vperm.xlu0 %7737, %v686_v30   ;;  %765 = vperm.xlu1 %7738, %v687_v31  }
  0x57   : > { %6317 = vmatmul.msk.bf16.gmra.mxu0 %vm464_vm1, %v7306_v29  ;;  %850 = vperm.xlu2 %7739, %v704_v38   ;;  %v7450_v29 = vld [vmem:[%s10383_s3 + $0xe8] sm:$0xff]  ;;  %v7449_v38 = vld [vmem:[%s10383_s3 + $0xe0] sm:$0xff] }
  0x58   : > { %3515 = vmatpush.bf16.msra.mxu1 %v7450_v29  ;;  %7638 = vmatpush.bf16.msra.mxu3 %v7450_v29 }
  0x5c   : > { %3516 = vmatpush.bf16.msra.mxu1 %v7449_v38  ;;  %7639 = vmatpush.bf16.msra.mxu3 %v7449_v38 }
  0x5e   : > { %770 = vperm.xlu1 %7738, %v688_v33   ;;  %855 = vperm.xlu0 %7737, %v705_v37  }
  0x5f   : > { %775 = vperm.xlu2 %7739, %v689_v41  }
  0x66   : > { %860 = vperm.xlu0 %7737, %v706_v39   ;;  %865 = vperm.xlu1 %7738, %v707_v48   ;;  %v713_v39 = vld [vmem:[%s7968_s12 + $0x118] sm:$0xff] }
  0x67   : > { %6318 = vmatmul.msk.bf16.gmra.mxu0 %vm464_vm1, %v7307_v34  ;;  %780 = vperm.xlu2 %7739, %v690_v49  }
  0x6e   : > { %870 = vperm.xlu0 %7737, %v708_v47   ;;  %875 = vperm.xlu1 %7738, %v709_v54  }
  0x6f   : > { %880 = vperm.xlu2 %7739, %v710_v21  }
  0x76   : > { %885 = vperm.xlu0 %7737, %v711_v53   ;;  %890 = vperm.xlu1 %7738, %v712_v58  }
  0x77   : > { %6319 = vmatmul.msk.bf16.gmra.mxu0 %vm464_vm1, %v7308_v36  ;;  %895 = vperm.xlu2 %7739, %v713_v39  }
  0x79   : > { %v8036_v51 = vpop.permute.xlu2 %805 }
  0x7e   : > { %900 = vperm.xlu0 %7737, %v714_v56   ;;  %905 = vperm.xlu1 %7738, %v715_v2  }
  0x81   : > { %v8045_v57 = vpop.permute.xlu2 %810 }
  0x86   : > { %915 = vperm.xlu0 %7737, %v717_v63  }
  0x87   : > { %6320 = vmatmul.msk.bf16.gmra.mxu0 %vm464_vm1, %v7309_v40 }
  0x89   : > { %v721_v3 = vpop.permute.xlu2 %720 }
  0x90   : > { %v8034_v50 = vpop.permute.xlu0 %785  ;;  %v8050_v60 = vpop.permute.xlu1 %795 }
  0x97   : > { %6321 = vmatmul.msk.bf16.gmra.mxu0 %vm464_vm1, %v7310_v52  ;;  %v7448_v52 = vld [vmem:[%s10383_s3 + $0xd8] sm:$0xff] }
  0x98   : > { %v8042_v55 = vpop.permute.xlu0 %790  ;;  %v8062_v7 = vpop.permute.xlu1 %800  ;;  %3517 = vmatpush.bf16.msra.mxu1 %v7448_v52  ;;  %7640 = vmatpush.bf16.msra.mxu3 %v7448_v52 }
  0xa0   : > { %v8048_v59 = vpop.permute.xlu0 %815  ;;  %v8076_v26 = vpop.permute.xlu1 %820 }
  0xa4   : > { %v538_v0 = vpop.f32.mrf.mxu0 }
  0xa5   : > { %v539_v1 = vadd.f32 %v8055_v61, %v538_v0 }
  0xa7   : > { %v638_v4 = vmax.f32 %v539_v1, 0.0  ;;  %6322 = vmatmul.msk.bf16.gmra.mxu0 %vm464_vm1, %v7311_v62 }
  0xa8   : > { %v726_v5 = vpop.permute.xlu0 %725  ;;  %v736_v53 = vpop.permute.xlu1 %735 }
  0xa9   : > { %v918_v6 = vmul.f32 %v721_v3, %v638_v4  ;;  %v7447_v3 = vld [vmem:[%s10383_s3 + $0xd0] sm:$0xff]  ;;  %v741_v4 = vpop.permute.xlu2 %740 }
  0xaa   : > { %3518 = vmatpush.bf16.msra.mxu1 %v7447_v3  ;;  %7641 = vmatpush.bf16.msra.mxu3 %v7447_v3 }
  0xab   : > { %v969_v8 = vpack.c.bf16 %v918_v6, %v918_v6 }
  0xac   : > { %v540_v9 = vpop.f32.mrf.mxu0 }
  0xad   : > { %v1012_v10 = vshrl.u32 %v969_v8, 16  ;;  %v541_v11 = vadd.f32 %v8055_v61, %v540_v9  ;;  %v1015_v14 = vshll.u32 %v969_v8, 16 }
  0xaf   : > { %v1014_v13 = vrot.slane %v1012_v10, 7  ;;  %v639_v15 = vmax.f32 %v541_v11, 0.0  ;;  %v7313_v10 = vld [vmem:[%s7982_s13 + $0x50] sm:$0xff] }
  0xb0   : > { %v8069_v17 = vpop.permute.xlu0 %745 }
  0xb1   : > { %v1017_v18 = vor.u32 %v1015_v14, %v1014_v13  ;;  %v919_v19 = vmul.f32 %v726_v5, %v639_v15  ;;  %v1018_v35 = vrot.slane %v1014_v13, 4  ;;  %v716_v5 = vld [vmem:[%s7968_s12 + $0x130] sm:$0xff] }
  0xb2   : > { %910 = vperm.xlu2 %7739, %v716_v5  }
  0xb3   : > { %v1414_v22 = vsel %vm1412_vm8, %v1017_v18, %v1413_v16  ;;  %v970_v23 = vpack.c.bf16 %v919_v19, %v919_v19  ;;  %v7446_v19 = vld [vmem:[%s10383_s3 + $0xc8] sm:$0xff] }
  0xb4   : > { %1415 = vst [vmem:[#allocation2] sm:$0xf] %v1414_v22  ;;  %v543_v25 = vpop.f32.mrf.mxu0  ;;  %3519 = vmatpush.bf16.msra.mxu1 %v7446_v19  ;;  %7642 = vmatpush.bf16.msra.mxu3 %v7446_v19 }
  0xb5   : > { %v1020_v27 = vshrl.u32 %v970_v23, 16  ;;  %v544_v28 = vadd.f32 %v8055_v61, %v543_v25  ;;  %v1023_v31 = vshll.u32 %v970_v23, 16 }
  0xb7   : > { %v1022_v30 = vrot.slane %v1020_v27, 7  ;;  %v640_v32 = vmax.f32 %v544_v28, 0.0  ;;  %6323 = vmatmul.msk.bf16.gmra.mxu0 %vm464_vm1, %v7312_v24 }
  0xb8   : > { %v731_v34 = vpop.permute.xlu0 %730 }
  0xb9   : > { %v1025_v36 = vor.u32 %v1023_v31, %v1022_v30  ;;  %v920_v37 = vmul.f32 %v731_v34, %v640_v32  ;;  %v1027_v0 = vrot.slane %v1022_v30, 4  ;;  %v7445_v32 = vld [vmem:[%s10383_s3 + $0xc0] sm:$0xff] }
  0xba   : > { %3520 = vmatpush.bf16.msra.mxu1 %v7445_v32  ;;  %7643 = vmatpush.bf16.msra.mxu3 %v7445_v32 }
  0xbb   : > { %v1026_v40 = vsel %vm8084_vm10, %v1018_v35, %v1025_v36  ;;  %v971_v41 = vpack.c.bf16 %v920_v37, %v920_v37  ;;  %v1458_v42 = vld [vmem:[#allocation2] sm:$0xf] }
  0xbc   : > { %v1522_v44 = vld [vmem:[#allocation2] sm:$0xf]  ;;  %1416 = vst [vmem:[#allocation2 + $0x4] sm:$0xf] %v1026_v40  ;;  %v545_v45 = vpop.f32.mrf.mxu0 }
  0xbd   : > { %v1559_v46 = vshrl.u32 %v1522_v44, 16  ;;  %v1562_v47 = vshll.u32 %v1522_v44, 16  ;;  %v1029_v48 = vshrl.u32 %v971_v41, 16  ;;  %v546_v49 = vadd.f32 %v8055_v61, %v545_v45  ;;  %1490 = vst [vmem:[#allocation3] sm:$0xf] %v1458_v42 }
  0xbe   : > { %v1032_v62 = vshll.u32 %v971_v41, 16  ;;  %v8125_v41 = vpop.permute.xlu2 %830  ;;  %v1946_v33 = vld [vmem:[#allocation2] sm:$0xe] }
  0xbf   : > { %v1561_v54 = vrot.slane %v1559_v46, 4  ;;  %v1564_v56 = vrot.slane %v1562_v47, 5  ;;  %v1031_v58 = vrot.slane %v1029_v48, 7  ;;  %v641_v63 = vmax.f32 %v546_v49, 0.0  ;;  %v8132_v49 = vpop.permute.xlu1 %825 }
  0xc1   : > { %v1034_v1 = vor.u32 %v1032_v62, %v1031_v58  ;;  %v921_v2 = vmul.f32 %v736_v53, %v641_v63  ;;  %v1565_v6 = vor.u32 %v1564_v56, %v1561_v54  ;;  %v1036_v29 = vrot.slane %v1031_v58, 4 }
  0xc3   : > { %v1035_v8 = vsel %vm8084_vm10, %v1027_v0, %v1034_v1  ;;  %v972_v9 = vpack.c.bf16 %v921_v2, %v921_v2  ;;  %v1459_v11 = vld [vmem:[#allocation2 + $0x4] sm:$0xf]  ;;  %v1566_v21 = vrot.slane %v1565_v6, 4  ;;  %v7314_v6 = vld [vmem:[%s7982_s13 + $0x58] sm:$0xff] }
  0xc4   : > { %v1523_v12 = vld [vmem:[#allocation2 + $0x4] sm:$0xf]  ;;  %1417 = vst [vmem:[#allocation2 + $0x8] sm:$0xf] %v1035_v8  ;;  %v548_v13 = vpop.f32.mrf.mxu0 }
  0xc5   : > { %v1568_v14 = vshll.u32 %v1523_v12, 16  ;;  %v1572_v15 = vshrl.u32 %v1523_v12, 16  ;;  %v1038_v16 = vshrl.u32 %v972_v9, 16  ;;  %v549_v18 = vadd.f32 %v8055_v61, %v548_v13  ;;  %1491 = vst [vmem:[#allocation3 + $0xc] sm:$0xf] %v1459_v11 }
  0xc6   : > { %v1041_v25 = vshll.u32 %v972_v9, 16  ;;  %v8123_v37 = vld [vmem:[#allocation3] sm:$0xf] }
  0xc7   : > { %v1570_v22 = vrot.slane %v1568_v14, 5  ;;  %v1574_v23 = vrot.slane %v1572_v15, 4  ;;  %v1040_v24 = vrot.slane %v1038_v16, 7  ;;  %v642_v27 = vmax.f32 %v549_v18, 0.0  ;;  %6324 = vmatmul.msk.bf16.gmra.mxu0 %vm464_vm1, %v7313_v10  ;;  %v751_v15 = vpop.permute.xlu2 %750 }
  0xc9   : > { %v1571_v28 = vsel %vm8111_vm13, %v1566_v21, %v1570_v22  ;;  %v1043_v30 = vor.u32 %v1041_v25, %v1040_v24  ;;  %v922_v31 = vmul.f32 %v741_v4, %v642_v27  ;;  %v1575_v34 = vor.u32 %v1574_v23, %v1570_v22  ;;  %v8142_v22 = vpop.permute.xlu1 %835 }
  0xca   : > { %1914 = vst [vmem:[#allocation3 + $0x4] sm:$0xf] %v1571_v28  ;;  %v1045_v0 = vrot.slane %v1040_v24, 4 }
  0xcb   : > { %v1044_v35 = vsel %vm8084_vm10, %v1036_v29, %v1043_v30  ;;  %v973_v36 = vpack.c.bf16 %v922_v31, %v922_v31  ;;  %v1460_v38 = vld [vmem:[#allocation2 + $0x8] sm:$0xf]  ;;  %v1576_v52 = vrot.slane %v1575_v34, 4 }
  0xcc   : > { %v1524_v39 = vld [vmem:[#allocation2 + $0x8] sm:$0xf]  ;;  %1418 = vst [vmem:[#allocation2 + $0xc] sm:$0xf] %v1044_v35  ;;  %v550_v40 = vpop.f32.mrf.mxu0  ;;  %v8127_v42 = vld [vmem:[#allocation3 + $0x8] sm:$0xf0] }
  0xcd   : > { %v1578_v44 = vshll.u32 %v1524_v39, 16  ;;  %v1582_v45 = vshrl.u32 %v1524_v39, 16  ;;  %v1047_v46 = vshrl.u32 %v973_v36, 16  ;;  %v551_v47 = vadd.f32 %v8055_v61, %v550_v40  ;;  %1492 = vst [vmem:[#allocation3 + $0x18] sm:$0xf] %v1460_v38 }
  0xce   : > { %v1050_v58 = vshll.u32 %v973_v36, 16  ;;  %v756_v36 = vpop.permute.xlu0 %755 }
  0xcf   : > { %v1580_v53 = vrot.slane %v1578_v44, 5  ;;  %v1584_v54 = vrot.slane %v1582_v45, 4  ;;  %v1049_v56 = vrot.slane %v1047_v46, 7  ;;  %v643_v62 = vmax.f32 %v551_v47, 0.0 }
  0xd1   : > { %v1581_v63 = vsel %vm8111_vm13, %v1576_v52, %v1580_v53  ;;  %v1052_v1 = vor.u32 %v1050_v58, %v1049_v56  ;;  %v923_v2 = vmul.f32 %v8069_v17, %v643_v62  ;;  %v1585_v3 = vor.u32 %v1584_v54, %v1580_v53 }
  0xd2   : > { %1915 = vst [vmem:[#allocation3 + $0x10] sm:$0xf] %v1581_v63  ;;  %v1054_v24 = vrot.slane %v1049_v56, 4 }
  0xd3   : > { %v1053_v4 = vsel %vm8084_vm10, %v1045_v0, %v1052_v1  ;;  %v974_v5 = vpack.c.bf16 %v923_v2, %v923_v2  ;;  %v1461_v8 = vld [vmem:[#allocation2 + $0xc] sm:$0xf]  ;;  %v1586_v16 = vrot.slane %v1585_v3, 4 }
  0xd4   : > { %v1525_v9 = vld [vmem:[#allocation2 + $0xc] sm:$0xf]  ;;  %1419 = vst [vmem:[#allocation2 + $0x10] sm:$0xf] %v1053_v4  ;;  %v553_v10 = vpop.f32.mrf.mxu0  ;;  %v7315_v4 = vld [vmem:[%s7982_s13 + $0x60] sm:$0xff] }
  0xd5   : > { %v1588_v11 = vshll.u32 %v1525_v9, 16  ;;  %v1056_v12 = vshrl.u32 %v974_v5, 16  ;;  %v554_v13 = vadd.f32 %v8055_v61, %v553_v10  ;;  %1493 = vst [vmem:[#allocation3 + $0x24] sm:$0xf] %v1461_v8  ;;  %v1592_v14 = vshrl.u32 %v1525_v9, 16 }
  0xd6   : > { %v1059_v19 = vshll.u32 %v974_v5, 16  ;;  %v8150_v5 = vpop.permute.xlu1 %840 }
  0xd7   : > { %v1590_v17 = vrot.slane %v1588_v11, 5  ;;  %v1058_v18 = vrot.slane %v1056_v12, 7  ;;  %v644_v21 = vmax.f32 %v554_v13, 0.0  ;;  %6325 = vmatmul.msk.bf16.gmra.mxu0 %vm464_vm1, %v7314_v6  ;;  %v1594_v28 = vrot.slane %v1592_v14, 4 }
  0xd9   : > { %v1591_v23 = vsel %vm8111_vm13, %v1586_v16, %v1590_v17  ;;  %v1061_v25 = vor.u32 %v1059_v19, %v1058_v18  ;;  %v924_v27 = vmul.f32 %v751_v15, %v644_v21  ;;  %v1595_v46 = vor.u32 %v1594_v28, %v1590_v17 }
  0xda   : > { %1916 = vst [vmem:[#allocation3 + $0x1c] sm:$0xf] %v1591_v23  ;;  %v1063_v0 = vrot.slane %v1058_v18, 4 }
  0xdb   : > { %v1062_v29 = vsel %vm8084_vm10, %v1054_v24, %v1061_v25  ;;  %v975_v30 = vpack.c.bf16 %v924_v27, %v924_v27  ;;  %v2288_v31 = vld [vmem:[#allocation2 + $0x10] sm:$0xf]  ;;  %v1596_v6 = vrot.slane %v1595_v46, 4  ;;  %v761_v24 = vpop.permute.xlu0 %760 }
  0xdc   : > { %v1462_v32 = vld [vmem:[#allocation2 + $0x10] sm:$0xf]  ;;  %1420 = vst [vmem:[#allocation2 + $0x14] sm:$0xf] %v1062_v29  ;;  %v555_v35 = vpop.f32.mrf.mxu0 }
  0xdd   : > { %v2352_v34 = vld [vmem:[#allocation2 + $0x10] sm:$0xf]  ;;  %v1065_v40 = vshrl.u32 %v975_v30, 16  ;;  %v556_v44 = vadd.f32 %v8055_v61, %v555_v35  ;;  %2320 = vst [vmem:[#allocation3] sm:$0xf] %v2288_v31  ;;  %v1068_v58 = vshll.u32 %v975_v30, 16 }
  0xde   : > { %v2386_v38 = vshrl.u32 %v2352_v34, 16  ;;  %v2389_v39 = vshll.u32 %v2352_v34, 16  ;;  %v1526_v45 = vld [vmem:[#allocation2 + $0x10] sm:$0xf]  ;;  %1494 = vst [vmem:[#allocation3 + $0x30] sm:$0xf] %v1462_v32  ;;  %v8160_v32 = vpop.permute.xlu2 %845 }
  0xdf   : > { %v1598_v53 = vshll.u32 %v1526_v45, 16  ;;  %v1602_v54 = vshrl.u32 %v1526_v45, 16  ;;  %v1067_v56 = vrot.slane %v1065_v40, 7  ;;  %v645_v62 = vmax.f32 %v556_v44, 0.0  ;;  %v8162_v34 = vld [vmem:[#allocation3 + $0x4] sm:$0xf] }
  0xe0   : > { %v2388_v47 = vrot.slane %v2386_v38, 4  ;;  %v2391_v52 = vrot.slane %v2389_v39, 5  ;;  %10423 = vst [vmem:[#allocation8_spill] sm:$0xff] %v8162_v34 }
  0xe1   : > { %v1600_v63 = vrot.slane %v1598_v53, 5  ;;  %v1070_v1 = vor.u32 %v1068_v58, %v1067_v56  ;;  %v925_v2 = vmul.f32 %v756_v36, %v645_v62  ;;  %v1604_v8 = vrot.slane %v1602_v54, 4 }
  0xe2   : > { %v2392_v3 = vor.u32 %v2391_v52, %v2388_v47  ;;  %v1072_v40 = vrot.slane %v1067_v56, 4  ;;  %v8167_v47 = vld [vmem:[#allocation3 + $0x18] sm:$0xf] }
  0xe3   : > { %v1071_v9 = vsel %vm8084_vm10, %v1063_v0, %v1070_v1  ;;  %v976_v10 = vpack.c.bf16 %v925_v2, %v925_v2  ;;  %v2289_v11 = vld [vmem:[#allocation2 + $0x14] sm:$0xf]  ;;  %v1601_v17 = vsel %vm8111_vm13, %v1596_v6, %v1600_v63  ;;  %v1605_v28 = vor.u32 %v1604_v8, %v1600_v63  ;;  %v766_v6 = vpop.permute.xlu1 %765 }
  0xe4   : > { %v1463_v12 = vld [vmem:[#allocation2 + $0x14] sm:$0xf]  ;;  %1421 = vst [vmem:[#allocation2 + $0x18] sm:$0xf] %v1071_v9  ;;  %v558_v14 = vpop.f32.mrf.mxu0  ;;  %v2393_v21 = vrot.slane %v2392_v3, 4 }
  0xe5   : > { %v2353_v13 = vld [vmem:[#allocation2 + $0x14] sm:$0xf]  ;;  %v1074_v18 = vshrl.u32 %v976_v10, 16  ;;  %v559_v19 = vadd.f32 %v8055_v61, %v558_v14  ;;  %2321 = vst [vmem:[#allocation3 + $0xc] sm:$0xf] %v2289_v11  ;;  %v1077_v23 = vshll.u32 %v976_v10, 16 }
  0xe6   : > { %v2395_v15 = vshll.u32 %v2353_v13, 16  ;;  %v2399_v16 = vshrl.u32 %v2353_v13, 16  ;;  %1495 = vst [vmem:[#allocation3 + $0x3c] sm:$0xf] %v1463_v12  ;;  %v1527_v31 = vld [vmem:[#allocation2 + $0x14] sm:$0xf] }
  0xe7   : > { %v8157_v29 = vrot.slane %v1074_v18, 7  ;;  %v646_v30 = vmax.f32 %v559_v19, 0.0  ;;  %6326 = vmatmul.msk.bf16.gmra.mxu0 %vm464_vm1, %v7315_v4  ;;  %1917 = vst [vmem:[#allocation3 + $0x28] sm:$0xf] %v1601_v17  ;;  %v1608_v38 = vshll.u32 %v1527_v31, 16  ;;  %v1612_v39 = vshrl.u32 %v1527_v31, 16 }
  0xe8   : > { %v2397_v25 = vrot.slane %v2395_v15, 5  ;;  %v2401_v27 = vrot.slane %v2399_v16, 4  ;;  %v6386_v46 = vld [vmem:[#allocation3] sm:$0xf]  ;;  %v1606_v53 = vrot.slane %v1605_v28, 4 }
  0xe9   : > { %v1079_v44 = vor.u32 %v1077_v23, %v8157_v29  ;;  %v926_v45 = vmul.f32 %v761_v24, %v646_v30  ;;  %v1610_v54 = vrot.slane %v1608_v38, 5  ;;  %v1614_v58 = vrot.slane %v1612_v39, 4  ;;  %v8171_v1 = vld [vmem:[#allocation3 + $0x30] sm:$0xf]  ;;  %v7316_v39 = vld [vmem:[%s7982_s13 + $0x68] sm:$0xff] }
  0xea   : > { %v2398_v35 = vsel %vm8111_vm13, %v2393_v21, %v2397_v25  ;;  %v2402_v36 = vor.u32 %v2401_v27, %v2397_v25  ;;  %v8180_v25 = vld [vmem:[#allocation3 + $0xc] sm:$0xf0]  ;;  %v1081_v31 = vrot.slane %v8157_v29, 4  ;;  %v8190_v29 = vld [vmem:[#allocation3 + $0x20] sm:$0xf0] }
  0xeb   : > { %2741 = vst [vmem:[#allocation3 + $0x4] sm:$0xf] %v2398_v35  ;;  %v1080_v62 = vsel %vm8084_vm10, %v1072_v40, %v1079_v44  ;;  %v977_v63 = vpack.c.bf16 %v926_v45, %v926_v45  ;;  %v2290_v0 = vld [vmem:[#allocation2 + $0x18] sm:$0xf]  ;;  %v1611_v14 = vsel %vm8111_vm13, %v1606_v53, %v1610_v54  ;;  %v1615_v17 = vor.u32 %v1614_v58, %v1610_v54  ;;  %v8186_v40 = vpop.permute.xlu2 %850 }
  0xec   : > { %v2403_v52 = vrot.slane %v2402_v36, 4  ;;  %v1464_v2 = vld [vmem:[#allocation2 + $0x18] sm:$0xf]  ;;  %1422 = vst [vmem:[#allocation2 + $0x1c] sm:$0xf] %v1080_v62  ;;  %v560_v3 = vpop.f32.mrf.mxu0 }
  0xed   : > { %v2354_v56 = vld [vmem:[#allocation2 + $0x18] sm:$0xf]  ;;  %v7398_v4 = vld [vmem:[#allocation3 + $0x8] sm:$0xf0]  ;;  %v1083_v10 = vshrl.u32 %v977_v63, 16  ;;  %v561_v11 = vadd.f32 %v8055_v61, %v560_v3  ;;  %v1086_v21 = vshll.u32 %v977_v63, 16 }
  0xee   : > { %v2405_v8 = vshll.u32 %v2354_v56, 16  ;;  %v2409_v9 = vshrl.u32 %v2354_v56, 16  ;;  %v6387_v12 = vor.u32 %v7398_v4, %v6386_v46  ;;  %2322 = vst [vmem:[#allocation3 + $0x18] sm:$0xf] %v2290_v0  ;;  %v8174_v13 = vld [vmem:[#allocation3 + $0x38] sm:$0xf0] }
  0xef   : > { %1496 = vst [vmem:[#allocation3 + $0x48] sm:$0xf] %v1464_v2  ;;  %v1085_v19 = vrot.slane %v1083_v10, 7  ;;  %v647_v23 = vmax.f32 %v561_v11, 0.0  ;;  %v1528_v24 = vld [vmem:[#allocation2 + $0x18] sm:$0xf] }
  0xf0   : > { %v2407_v15 = vrot.slane %v2405_v8, 5  ;;  %v2411_v16 = vrot.slane %v2409_v9, 4  ;;  %3521 = vmatmul.bf16.vlgmr.msra.gmra.mxu1 %v6387_v12  ;;  %10424 = vst [vmem:[#allocation9_spill] sm:$0xff] %v8180_v25  ;;  %v1618_v28 = vshll.u32 %v1528_v24, 16  ;;  %v1622_v30 = vshrl.u32 %v1528_v24, 16 }
  0xf1   : > { %1918 = vst [vmem:[#allocation3 + $0x34] sm:$0xf] %v1611_v14  ;;  %v1088_v35 = vor.u32 %v1086_v21, %v1085_v19  ;;  %v927_v36 = vmul.f32 %v766_v6, %v647_v23  ;;  %v1616_v44 = vrot.slane %v1615_v17, 4  ;;  %v771_v6 = vpop.permute.xlu1 %770  ;;  %v8195_v8 = vld [vmem:[#allocation3 + $0x1c] sm:$0xf] }
  0xf2   : > { %v2408_v27 = vsel %vm8111_vm13, %v2403_v52, %v2407_v15  ;;  %v2412_v38 = vor.u32 %v2411_v16, %v2407_v15  ;;  %v1620_v45 = vrot.slane %v1618_v28, 5  ;;  %v1624_v46 = vrot.slane %v1622_v30, 4  ;;  %10425 = vst [vmem:[#allocation10_spill] sm:$0xff] %v8195_v8  ;;  %v8200_v17 = vld [vmem:[#allocation3 + $0x4] sm:$0xf] }
  0xf3   : > { %2742 = vst [vmem:[#allocation3 + $0x10] sm:$0xf] %v2408_v27  ;;  %v1089_v53 = vsel %vm8084_vm10, %v1081_v31, %v1088_v35  ;;  %v978_v54 = vpack.c.bf16 %v927_v36, %v927_v36  ;;  %v2291_v52 = vld [vmem:[#allocation2 + $0x1c] sm:$0xf]  ;;  %v1090_v27 = vrot.slane %v1085_v19, 4 }
  0xf4   : > { %v1465_v58 = vld [vmem:[#allocation2 + $0x1c] sm:$0xf]  ;;  %1423 = vst [vmem:[#allocation2 + $0x20] sm:$0xf] %v1089_v53  ;;  %v563_v63 = vpop.f32.mrf.mxu0  ;;  %v1621_v2 = vsel %vm8111_vm13, %v1616_v44, %v1620_v45  ;;  %v2413_v4 = vrot.slane %v2412_v38, 4  ;;  %v1625_v12 = vor.u32 %v1624_v46, %v1620_v45 }
  0xf5   : > { %v2355_v62 = vld [vmem:[#allocation2 + $0x1c] sm:$0xf]  ;;  %v1092_v56 = vshrl.u32 %v978_v54, 16  ;;  %v564_v3 = vadd.f32 %v8055_v61, %v563_v63  ;;  %2323 = vst [vmem:[#allocation3 + $0x24] sm:$0xf] %v2291_v52  ;;  %v1095_v15 = vshll.u32 %v978_v54, 16 }
  0xf6   : > { %v2415_v0 = vshll.u32 %v2355_v62, 16  ;;  %1497 = vst [vmem:[#allocation3 + $0x54] sm:$0xf] %v1465_v58  ;;  %v2419_v10 = vshrl.u32 %v2355_v62, 16  ;;  %v8197_v11 = vld [vmem:[#allocation2 + $0x1c] sm:$0xf]  ;;  %v776_v58 = vpop.permute.xlu2 %775 }
  0xf7   : > { %v1094_v14 = vrot.slane %v1092_v56, 7  ;;  %v648_v16 = vmax.f32 %v564_v3, 0.0  ;;  %6327 = vmatmul.msk.bf16.gmra.mxu0 %vm464_vm1, %v7316_v39  ;;  %1919 = vst [vmem:[#allocation3 + $0x40] sm:$0xf] %v1621_v2  ;;  %v1628_v24 = vshll.u32 %v8197_v11, 16  ;;  %v1626_v38 = vrot.slane %v1625_v12, 4 }
  0xf8   : > { %v2417_v9 = vrot.slane %v2415_v0, 5  ;;  %v6398_v35 = vld [vmem:[#allocation3 + $0x18] sm:$0xf]  ;;  %v2421_v36 = vrot.slane %v2419_v10, 4 }
  0xf9   : > { %v1097_v28 = vor.u32 %v1095_v15, %v1094_v14  ;;  %v928_v30 = vmul.f32 %v771_v6, %v648_v16  ;;  %v8209_v39 = vrot.slane %v1628_v24, 5  ;;  %v1099_v24 = vrot.slane %v1094_v14, 4 }
  0xfa   : > { %v8202_v21 = vld [vmem:[#allocation3 + $0xc] sm:$0xf0]  ;;  %v2418_v23 = vsel %vm8111_vm13, %v2413_v4, %v2417_v9  ;;  %v2422_v6 = vor.u32 %v2421_v36, %v2417_v9  ;;  %v1632_v9 = vshrl.u32 %v8197_v11, 16 }
  0xfb   : > { %2743 = vst [vmem:[#allocation3 + $0x1c] sm:$0xf] %v2418_v23  ;;  %v4447_v44 = vld [vmem:[#allocation2 + $0x20] sm:$0xf]  ;;  %v1098_v45 = vsel %vm8084_vm10, %v1090_v27, %v1097_v28  ;;  %v979_v46 = vpack.c.bf16 %v928_v30, %v928_v30  ;;  %v1631_v10 = vsel %vm8111_vm13, %v1626_v38, %v8209_v39 }
  0xfc   : > { %v2292_v53 = vld [vmem:[#allocation2 + $0x20] sm:$0xf]  ;;  %4479 = vst [vmem:[#allocation3] sm:$0xf] %v4447_v44  ;;  %v565_v19 = vpop.f32.mrf.mxu0  ;;  %v7401_v52 = vld [vmem:[#allocation3 + $0x20] sm:$0xf0] }
  0xfd   : > { %v1466_v54 = vld [vmem:[#allocation2 + $0x20] sm:$0xf]  ;;  %1424 = vst [vmem:[#allocation2 + $0x24] sm:$0xf] %v1098_v45  ;;  %v1101_v63 = vshrl.u32 %v979_v46, 16  ;;  %v566_v0 = vadd.f32 %v8055_v61, %v565_v19  ;;  %v6399_v2 = vor.u32 %v7401_v52, %v6398_v35  ;;  %v1104_v15 = vshll.u32 %v979_v46, 16 }
  0xfe   : > { %v4511_v62 = vld [vmem:[#allocation2 + $0x20] sm:$0xf]  ;;  %2324 = vst [vmem:[#allocation3 + $0x30] sm:$0xf] %v2292_v53  ;;  %v7317_v45 = vld [vmem:[%s7982_s13 + $0x70] sm:$0xff]  ;;  %v2423_v46 = vrot.slane %v2422_v6, 4 }
  0xff   : > { %v4545_v56 = vshrl.u32 %v4511_v62, 16  ;;  %v4548_v3 = vshll.u32 %v4511_v62, 16  ;;  %v2356_v4 = vld [vmem:[#allocation2 + $0x20] sm:$0xf]  ;;  %v1103_v12 = vrot.slane %v1101_v63, 7  ;;  %v649_v16 = vmax.f32 %v566_v0, 0.0  ;;  %v781_v63 = vpop.permute.xlu2 %780 }
 0x100   : > { %3526 = vmatmul.bf16.gmra.mxu1 %v6399_v2  ;;  %1498 = vst [vmem:[#allocation3 + $0x60] sm:$0xf] %v1466_v54  ;;  %v2425_v23 = vshll.u32 %v2356_v4, 16  ;;  %v2429_v62 = vshrl.u32 %v2356_v4, 16 }
 0x101   : > { %v1106_v27 = vor.u32 %v1104_v15, %v1103_v12  ;;  %v929_v28 = vmul.f32 %v776_v58, %v649_v16  ;;  %1920 = vst [vmem:[#allocation3 + $0x4c] sm:$0xf] %v1631_v10  ;;  %v4547_v35 = vrot.slane %v4545_v56, 4  ;;  %v4550_v44 = vrot.slane %v4548_v3, 5  ;;  %v8224_v58 = vld [vmem:[#allocation3 + $0x24] sm:$0xf0] }
 0x102   : > { %v8217_v30 = vrot.slane %v2425_v23, 5  ;;  %10426 = vst [vmem:[#allocation11_spill] sm:$0xff] %v8224_v58  ;;  %v8229_v56 = vrot.slane %v1632_v9, 4  ;;  %v1108_v3 = vrot.slane %v1103_v12, 4  ;;  %v2431_v4 = vrot.slane %v2429_v62, 4 }
 0x103   : > { %v1107_v36 = vsel %vm8084_vm10, %v1099_v24, %v1106_v27  ;;  %v980_v38 = vpack.c.bf16 %v929_v28, %v929_v28  ;;  %v4551_v2 = vor.u32 %v4550_v44, %v4547_v35 }
 0x104   : > { %v4448_v53 = vld [vmem:[#allocation2 + $0x24] sm:$0xf]  ;;  %1425 = vst [vmem:[#allocation2 + $0x28] sm:$0xf] %v1107_v36  ;;  %v568_v54 = vpop.f32.mrf.mxu0  ;;  %v2428_v11 = vsel %vm8111_vm13, %v2423_v46, %v8217_v30 }
 0x105   : > { %v2293_v19 = vld [vmem:[#allocation2 + $0x24] sm:$0xf]  ;;  %4480 = vst [vmem:[#allocation3 + $0xc] sm:$0xf] %v4448_v53  ;;  %v1110_v14 = vshrl.u32 %v980_v38, 16  ;;  %v569_v52 = vadd.f32 %v8055_v61, %v568_v54  ;;  %v1113_v10 = vshll.u32 %v980_v38, 16 }
 0x106   : > { %2325 = vst [vmem:[#allocation3 + $0x3c] sm:$0xf] %v2293_v19  ;;  %v1467_v0 = vld [vmem:[#allocation2 + $0x24] sm:$0xf]  ;;  %v4552_v36 = vrot.slane %v4551_v2, 4 }
 0x107   : > { %v1112_v6 = vrot.slane %v1110_v14, 7  ;;  %v650_v15 = vmax.f32 %v569_v52, 0.0  ;;  %6328 = vmatmul.msk.bf16.gmra.mxu0 %vm464_vm1, %v7317_v45  ;;  %1499 = vst [vmem:[#allocation3 + $0x6c] sm:$0xf] %v1467_v0  ;;  %v4512_v16 = vld [vmem:[#allocation2 + $0x24] sm:$0xf] }
 0x108   : > { %2744 = vst [vmem:[#allocation3 + $0x28] sm:$0xf] %v2428_v11  ;;  %v2357_v23 = vld [vmem:[#allocation2 + $0x24] sm:$0xf]  ;;  %v4554_v28 = vshll.u32 %v4512_v16, 16  ;;  %v4558_v46 = vshrl.u32 %v4512_v16, 16 }
 0x109   : > { %v1115_v24 = vor.u32 %v1113_v10, %v1112_v6  ;;  %v930_v27 = vmul.f32 %v781_v63, %v650_v15  ;;  %v2435_v53 = vshll.u32 %v2357_v23, 16  ;;  %v2439_v35 = vshrl.u32 %v2357_v23, 16  ;;  %v6410_v38 = vld [vmem:[#allocation3 + $0x30] sm:$0xf]  ;;  %v8234_v54 = vld [vmem:[#allocation3 + $0x48] sm:$0xf] }
 0x10a   : > { %v4556_v11 = vrot.slane %v4554_v28, 5  ;;  %v4560_v63 = vrot.slane %v4558_v46, 4  ;;  %v2432_v15 = vor.u32 %v2431_v4, %v8217_v30 }
 0x10b   : > { %v4449_v44 = vld [vmem:[#allocation2 + $0x28] sm:$0xf]  ;;  %v1116_v12 = vsel %vm8084_vm10, %v1108_v3, %v1115_v24  ;;  %v981_v9 = vpack.c.bf16 %v930_v27, %v930_v27  ;;  %v8240_v27 = vld [vmem:[#allocation3 + $0x1c] sm:$0xf] }
 0x10c   : > { %v2294_v45 = vld [vmem:[#allocation2 + $0x28] sm:$0xf]  ;;  %4481 = vst [vmem:[#allocation3 + $0x18] sm:$0xf] %v4449_v44  ;;  %v570_v14 = vpop.f32.mrf.mxu0  ;;  %v4557_v16 = vsel %vm8111_vm13, %v4552_v36, %v4556_v11  ;;  %v4561_v23 = vor.u32 %v4560_v63, %v4556_v11  ;;  %v1117_v36 = vrot.slane %v1112_v6, 4  ;;  %v7318_v11 = vld [vmem:[%s7982_s13 + $0x78] sm:$0xff] }
 0x10d   : > { %v1468_v19 = vld [vmem:[#allocation2 + $0x28] sm:$0xf]  ;;  %1426 = vst [vmem:[#allocation2 + $0x2c] sm:$0xf] %v1116_v12  ;;  %v1119_v62 = vshrl.u32 %v981_v9, 16  ;;  %v1122_v0 = vshll.u32 %v981_v9, 16  ;;  %v571_v2 = vadd.f32 %v8055_v61, %v570_v14 }
 0x10e   : > { %v4513_v52 = vld [vmem:[#allocation2 + $0x28] sm:$0xf]  ;;  %v7404_v10 = vld [vmem:[#allocation3 + $0x38] sm:$0xf0]  ;;  %2326 = vst [vmem:[#allocation3 + $0x48] sm:$0xf] %v2294_v45 }
 0x10f   : > { %v6411_v3 = vor.u32 %v7404_v10, %v6410_v38  ;;  %v4564_v24 = vshll.u32 %v4513_v52, 16  ;;  %v8242_v28 = vrot.slane %v1119_v62, 7  ;;  %v651_v46 = vmax.f32 %v571_v2, 0.0  ;;  %1500 = vst [vmem:[#allocation3 + $0x78] sm:$0xf] %v1468_v19 }
 0x110   : > { %v8244_v44 = vld [vmem:[#allocation3 + $0x24] sm:$0xf0]  ;;  %v4562_v12 = vrot.slane %v4561_v23, 4  ;;  %4900 = vst [vmem:[#allocation3 + $0x4] sm:$0xf] %v4557_v16  ;;  %v4568_v4 = vshrl.u32 %v4513_v52, 16 }
 0x111   : > { %3531 = vmatmul.bf16.gmra.mxu1 %v6411_v3  ;;  %v4566_v9 = vrot.slane %v4564_v24, 5  ;;  %v1124_v38 = vor.u32 %v1122_v0, %v8242_v28  ;;  %v931_v45 = vmul.f32 %v8034_v50, %v651_v46  ;;  %v2437_v14 = vrot.slane %v2435_v53, 5  ;;  %v8253_v10 = vld [vmem:[#allocation2 + $0x20] sm:$0xf]  ;;  %v8257_v52 = vld [vmem:[#allocation3 + $0x50] sm:$0xf0] }
 0x112   : > { %v4570_v63 = vrot.slane %v4568_v4, 4  ;;  %v2433_v62 = vrot.slane %v2432_v15, 4  ;;  %v2441_v2 = vrot.slane %v2439_v35, 4  ;;  %v2358_v6 = vld [vmem:[#allocation2 + $0x28] sm:$0xf]  ;;  %v1635_v35 = vor.u32 %v8229_v56, %v8209_v39 }
 0x113   : > { %v4567_v19 = vsel %vm8111_vm13, %v4562_v12, %v4566_v9  ;;  %v1125_v3 = vsel %vm8084_vm10, %v1117_v36, %v1124_v38  ;;  %v982_v16 = vpack.c.bf16 %v931_v45, %v931_v45  ;;  %v8264_v12 = vld [vmem:[#allocation3 + $0x34] sm:$0xf]  ;;  %v1638_v36 = vshll.u32 %v8253_v10, 16 }
 0x114   : > { %4901 = vst [vmem:[#allocation3 + $0x10] sm:$0xf] %v4567_v19  ;;  %v573_v50 = vpop.f32.mrf.mxu0  ;;  %v2295_v53 = vld [vmem:[#allocation2 + $0x2c] sm:$0xf]  ;;  %v4571_v23 = vor.u32 %v4570_v63, %v4566_v9  ;;  %v2438_v24 = vsel %vm8111_vm13, %v2433_v62, %v2437_v14  ;;  %v2442_v4 = vor.u32 %v2441_v2, %v2437_v14  ;;  %v2445_v45 = vshll.u32 %v2358_v6, 16 }
 0x115   : > { %1427 = vst [vmem:[#allocation2 + $0x30] sm:$0xf] %v1125_v3  ;;  %v1469_v0 = vld [vmem:[#allocation2 + $0x2c] sm:$0xf]  ;;  %v1128_v15 = vshrl.u32 %v982_v16, 16  ;;  %v574_v46 = vadd.f32 %v8055_v61, %v573_v50  ;;  %v2449_v19 = vshrl.u32 %v2358_v6, 16 }
 0x116   : > { %2327 = vst [vmem:[#allocation3 + $0x54] sm:$0xf] %v2295_v53  ;;  %v4514_v38 = vld [vmem:[#allocation2 + $0x2c] sm:$0xf]  ;;  %v1131_v63 = vshll.u32 %v982_v16, 16  ;;  %v1126_v39 = vrot.slane %v8242_v28, 4 }
 0x117   : > { %10427 = vst [vmem:[#allocation12_spill] sm:$0xff] %v8264_v12  ;;  %v1130_v9 = vrot.slane %v1128_v15, 7  ;;  %v652_v3 = vmax.f32 %v574_v46, 0.0  ;;  %6329 = vmatmul.msk.bf16.gmra.mxu0 %vm464_vm1, %v7318_v11  ;;  %v4574_v62 = vshll.u32 %v4514_v38, 16  ;;  %v4572_v56 = vrot.slane %v4571_v23, 4 }
 0x118   : > { %1501 = vst [vmem:[#allocation3 + $0x84] sm:$0xf] %v1469_v0  ;;  %v4578_v50 = vshrl.u32 %v4514_v38, 16  ;;  %v1636_v53 = vrot.slane %v1635_v35, 4  ;;  %v2443_v0 = vrot.slane %v2442_v4, 4  ;;  %v2447_v6 = vrot.slane %v2445_v45, 5 }
 0x119   : > { %2745 = vst [vmem:[#allocation3 + $0x34] sm:$0xf] %v2438_v24  ;;  %v1133_v18 = vor.u32 %v1131_v63, %v1130_v9  ;;  %v932_v14 = vmul.f32 %v8042_v55, %v652_v3  ;;  %v4576_v2 = vrot.slane %v4574_v62, 5  ;;  %v6422_v48 = vld [vmem:[#allocation3 + $0x48] sm:$0xf]  ;;  %v8270_v15 = vrot.slane %v1638_v36, 5 }
 0x11a   : > { %v4580_v30 = vrot.slane %v4578_v50, 4  ;;  %v2451_v16 = vrot.slane %v2449_v19, 4  ;;  %v8275_v45 = vld [vmem:[#allocation3 + $0x60] sm:$0xf]  ;;  %v8281_v50 = vld [vmem:[#allocation2 + $0x2c] sm:$0xf] }
 0x11b   : > { %v1134_v11 = vsel %vm8084_vm10, %v1126_v39, %v1133_v18  ;;  %v983_v46 = vpack.c.bf16 %v932_v14, %v932_v14  ;;  %v4577_v36 = vsel %vm8111_vm13, %v4572_v56, %v4576_v2  ;;  %v2448_v39 = vsel %vm8111_vm13, %v2443_v0, %v2447_v6 }
 0x11c   : > { %v4451_v24 = vld [vmem:[#allocation2 + $0x30] sm:$0xf]  ;;  %1428 = vst [vmem:[#allocation2 + $0x34] sm:$0xf] %v1134_v11  ;;  %v575_v35 = vpop.f32.mrf.mxu0  ;;  %v4581_v18 = vor.u32 %v4580_v30, %v4576_v2  ;;  %v8288_v30 = vld [vmem:[#allocation3 + $0x3c] sm:$0xf0] }
 0x11d   : > { %v2296_v28 = vld [vmem:[#allocation2 + $0x30] sm:$0xf]  ;;  %v7407_v38 = vld [vmem:[#allocation3 + $0x50] sm:$0xf0]  ;;  %4483 = vst [vmem:[#allocation3 + $0x30] sm:$0xf] %v4451_v24  ;;  %v576_v4 = vadd.f32 %v8055_v61, %v575_v35  ;;  %v2452_v24 = vor.u32 %v2451_v16, %v2447_v6 }
 0x11e   : > { %v1470_v23 = vld [vmem:[#allocation2 + $0x30] sm:$0xf]  ;;  %v1137_v55 = vshrl.u32 %v983_v46, 16  ;;  %v6423_v3 = vor.u32 %v7407_v38, %v6422_v48  ;;  %2328 = vst [vmem:[#allocation3 + $0x60] sm:$0xf] %v2296_v28  ;;  %v1140_v11 = vshll.u32 %v983_v46, 16  ;;  %v1641_v48 = vsel %vm8111_vm13, %v1636_v53, %v8270_v15 }
 0x11f   : > { %v4515_v63 = vld [vmem:[#allocation2 + $0x30] sm:$0xf]  ;;  %v653_v61 = vmax.f32 %v576_v4, 0.0  ;;  %1502 = vst [vmem:[#allocation3 + $0x90] sm:$0xf] %v1470_v23  ;;  %v1135_v0 = vrot.slane %v1130_v9, 4 }
 0x120   : > { %v4584_v19 = vshll.u32 %v4515_v63, 16  ;;  %v4588_v62 = vshrl.u32 %v4515_v63, 16  ;;  %v8283_v14 = vrot.slane %v1137_v55, 7  ;;  %4902 = vst [vmem:[#allocation3 + $0x1c] sm:$0xf] %v4577_v36  ;;  %v2455_v46 = vshll.u32 %v8281_v50, 16 }
 0x121   : > { %3536 = vmatmul.bf16.gmra.mxu1 %v6423_v3  ;;  %10428 = vst [vmem:[#allocation13_spill] sm:$0xff] %v8288_v30  ;;  %v933_v35 = vmul.f32 %v8050_v60, %v653_v61  ;;  %v7319_v23 = vld [vmem:[%s7982_s13 + $0x80] sm:$0xff]  ;;  %v4582_v38 = vrot.slane %v4581_v18, 4  ;;  %v2453_v36 = vrot.slane %v2452_v24, 4  ;;  %v8308_v61 = vld [vmem:[#allocation3 + $0x34] sm:$0xf] }
 0x122   : > { %v4586_v56 = vrot.slane %v4584_v19, 5  ;;  %v4590_v2 = vrot.slane %v4588_v62, 4  ;;  %v1142_v28 = vor.u32 %v1140_v11, %v8283_v14  ;;  %2746 = vst [vmem:[#allocation3 + $0x40] sm:$0xf] %v2448_v39  ;;  %v8296_v19 = vrot.slane %v2455_v46, 5 }
 0x123   : > { %1921 = vst [vmem:[#allocation3 + $0x58] sm:$0xf] %v1641_v48  ;;  %v4452_v63 = vld [vmem:[#allocation2 + $0x34] sm:$0xf]  ;;  %v984_v55 = vpack.c.bf16 %v933_v35, %v933_v35  ;;  %v8301_v18 = vld [vmem:[%s10382_s2] ss:$0 sm:$0xff] }
 0x124   : > { %v1143_v53 = vsel %vm8084_vm10, %v1135_v0, %v1142_v28  ;;  %v2297_v4 = vld [vmem:[#allocation2 + $0x34] sm:$0xf]  ;;  %4484 = vst [vmem:[#allocation3 + $0x3c] sm:$0xf] %v4452_v63  ;;  %v578_v6 = vpop.f32.mrf.mxu0  ;;  %v4591_v16 = vor.u32 %v4590_v2, %v4586_v56  ;;  %v8304_v39 = vld [vmem:[#allocation3 + $0x68] sm:$0xf0]  ;;  %v4587_v11 = vsel %vm8111_vm13, %v4582_v38, %v4586_v56  ;;  %v2458_v28 = vsel %vm8111_vm13, %v2453_v36, %v8296_v19 }
 0x125   : > { %v1471_v3 = vld [vmem:[#allocation2 + $0x34] sm:$0xf]  ;;  %1429 = vst [vmem:[#allocation2 + $0x38] sm:$0xf] %v1143_v53  ;;  %v1146_v60 = vshrl.u32 %v984_v55, 16  ;;  %v579_v62 = vadd.f32 %v8301_v18, %v578_v6  ;;  %v1149_v46 = vshll.u32 %v984_v55, 16 }
 0x126   : > { %v4516_v9 = vld [vmem:[#allocation2 + $0x34] sm:$0xf]  ;;  %2329 = vst [vmem:[#allocation3 + $0x6c] sm:$0xf] %v2297_v4  ;;  %v8310_v24 = vld [vmem:[#allocation3 + $0x4c] sm:$0xf] }
 0x127   : > { %v4594_v48 = vshll.u32 %v4516_v9, 16  ;;  %v4598_v2 = vshrl.u32 %v4516_v9, 16  ;;  %10429 = vst [vmem:[#allocation14_spill] sm:$0xff] %v8310_v24  ;;  %v8312_v0 = vld [vmem:[#allocation2 + $0x30] sm:$0xf]  ;;  %v8317_v35 = vrot.slane %v1146_v60, 7  ;;  %6330 = vmatmul.msk.bf16.gmra.mxu0 %vm464_vm1, %v7319_v23 }
 0x128   : > { %v654_v63 = vmax.f32 %v579_v62, 0.0  ;;  %1503 = vst [vmem:[#allocation3 + $0x9c] sm:$0xf] %v1471_v3  ;;  %v2459_v56 = vshrl.u32 %v8281_v50, 16  ;;  %v4592_v53 = vrot.slane %v4591_v16, 4  ;;  %v1144_v6 = vrot.slane %v8283_v14, 4 }
 0x129   : > { %4903 = vst [vmem:[#allocation3 + $0x28] sm:$0xf] %v4587_v11  ;;  %v8321_v38 = vld [vmem:[#allocation3 + $0x3c] sm:$0xf0]  ;;  %v4596_v4 = vrot.slane %v4594_v48, 5  ;;  %v1151_v9 = vor.u32 %v1149_v46, %v8317_v35  ;;  %v7460_v55 = vld [vmem:[%s10383_s3 + $0x138] sm:$0xff] }
 0x12a   : > { %v934_v36 = vmul.f32 %v8062_v7, %v654_v63  ;;  %2747 = vst [vmem:[#allocation3 + $0x4c] sm:$0xf] %v2458_v28  ;;  %v4600_v3 = vrot.slane %v4598_v2, 4  ;;  %v2465_v16 = vshll.u32 %v8312_v0, 16  ;;  %v6434_v62 = vld [vmem:[#allocation3 + $0x60] sm:$0xf]  ;;  %3602 = vmatpush.bf16.msrb.mxu0 %v7460_v55  ;;  %7644 = vmatpush.bf16.msra.mxu2 %v7460_v55 }
 0x12b   : > { %v4597_v50 = vsel %vm8111_vm13, %v4592_v53, %v4596_v4  ;;  %v1152_v14 = vsel %vm8084_vm10, %v1144_v6, %v1151_v9  ;;  %v8336_v7 = vld [vmem:[#allocation3 + $0x78] sm:$0xf]  ;;  %v2461_v11 = vrot.slane %v2459_v56, 4  ;;  %v1642_v23 = vshrl.u32 %v8253_v10, 16 }
 0x12c   : > { %v985_v60 = vpack.c.bf16 %v934_v36, %v934_v36  ;;  %4904 = vst [vmem:[#allocation3 + $0x34] sm:$0xf] %v4597_v50  ;;  %v4453_v48 = vld [vmem:[#allocation2 + $0x38] sm:$0xf]  ;;  %v580_v28 = vpop.f32.mrf.mxu0  ;;  %v7459_v36 = vld [vmem:[%s10383_s3 + $0x130] sm:$0xff]  ;;  %v4601_v55 = vor.u32 %v4600_v3, %v4596_v4  ;;  %v8343_v56 = vrot.slane %v2465_v16, 5 }
 0x12d   : > { %1430 = vst [vmem:[#allocation2 + $0x3c] sm:$0xf] %v1152_v14  ;;  %v2298_v46 = vld [vmem:[#allocation2 + $0x38] sm:$0xf]  ;;  %v581_v2 = vadd.f32 %v8301_v18, %v580_v28  ;;  %v7410_v53 = vld [vmem:[#allocation3 + $0x68] sm:$0xf0]  ;;  %v2462_v28 = vor.u32 %v2461_v11, %v8296_v19 }
 0x12e   : > { %4485 = vst [vmem:[#allocation3 + $0x48] sm:$0xf] %v4453_v48  ;;  %v1155_v63 = vshrl.u32 %v985_v60, 16  ;;  %v1158_v6 = vshll.u32 %v985_v60, 16  ;;  %v6435_v9 = vor.u32 %v7410_v53, %v6434_v62  ;;  %v1472_v48 = vld [vmem:[#allocation2 + $0x38] sm:$0xf]  ;;  %3603 = vmatpush.bf16.msrb.mxu0 %v7459_v36  ;;  %7645 = vmatpush.bf16.msra.mxu2 %v7459_v36 }
 0x12f   : > { %2330 = vst [vmem:[#allocation3 + $0x78] sm:$0xf] %v2298_v46  ;;  %v655_v14 = vmax.f32 %v581_v2, 0.0  ;;  %v1536_v31 = vld [vmem:[#allocation2 + $0x38] sm:$0xf]  ;;  %v1153_v46 = vrot.slane %v8317_v35, 4 }
 0x130   : > { %v8345_v50 = vrot.slane %v1155_v63, 7  ;;  %1504 = vst [vmem:[#allocation3 + $0xa8] sm:$0xf] %v1472_v48  ;;  %v1698_v10 = vshll.u32 %v1536_v31, 16  ;;  %v1702_v60 = vshrl.u32 %v1536_v31, 16  ;;  %v7458_v16 = vld [vmem:[%s10383_s3 + $0x128] sm:$0xff] }
 0x131   : > { %3541 = vmatmul.bf16.gmra.mxu1 %v6435_v9  ;;  %v4517_v62 = vld [vmem:[#allocation2 + $0x38] sm:$0xf]  ;;  %v935_v3 = vmul.f32 %v8036_v51, %v655_v14  ;;  %v8354_v2 = vld [vmem:[#allocation2 + $0x24] sm:$0xf]  ;;  %v7320_v53 = vld [vmem:[%s7982_s13 + $0x88] sm:$0xff]  ;;  %v4602_v48 = vrot.slane %v4601_v55, 4 }
 0x132   : > { %v1160_v4 = vor.u32 %v1158_v6, %v8345_v50  ;;  %v4604_v63 = vshll.u32 %v4517_v62, 16  ;;  %v8357_v9 = vrot.slane %v1698_v10, 5  ;;  %v1704_v31 = vrot.slane %v1702_v60, 4  ;;  %v8361_v51 = vld [vmem:[#allocation3 + $0x80] sm:$0xf0]  ;;  %3604 = vmatpush.bf16.msrb.mxu0 %v7458_v16  ;;  %7646 = vmatpush.bf16.msra.mxu2 %v7458_v16 }
 0x133   : > { %v1644_v19 = vrot.slane %v1642_v23, 4  ;;  %v986_v6 = vpack.c.bf16 %v935_v3, %v935_v3  ;;  %v2463_v60 = vrot.slane %v2462_v28, 4  ;;  %v7457_v3 = vld [vmem:[%s10383_s3 + $0x120] sm:$0xff] }
 0x134   : > { %v4454_v11 = vld [vmem:[#allocation2 + $0x3c] sm:$0xf]  ;;  %v1161_v35 = vsel %vm8084_vm10, %v1153_v46, %v1160_v4  ;;  %v583_v24 = vpop.f32.mrf.mxu0  ;;  %v1705_v30 = vor.u32 %v1704_v31, %v8357_v9  ;;  %v8364_v10 = vrot.slane %v4604_v63, 5  ;;  %v4608_v46 = vshrl.u32 %v4517_v62, 16 }
 0x135   : > { %v2299_v36 = vld [vmem:[#allocation2 + $0x3c] sm:$0xf]  ;;  %4486 = vst [vmem:[#allocation3 + $0x54] sm:$0xf] %v4454_v11  ;;  %v1164_v23 = vshrl.u32 %v986_v6, 16  ;;  %v584_v55 = vadd.f32 %v8301_v18, %v583_v24  ;;  %v1648_v4 = vshll.u32 %v8354_v2, 16  ;;  %v2468_v28 = vsel %vm8111_vm13, %v2463_v60, %v8343_v56 }
 0x136   : > { %v1473_v14 = vld [vmem:[#allocation2 + $0x3c] sm:$0xf]  ;;  %1431 = vst [vmem:[#allocation2 + $0x40] sm:$0xf] %v1161_v35  ;;  %v4607_v63 = vsel %vm8111_vm13, %v4602_v48, %v8364_v10  ;;  %v1167_v62 = vshll.u32 %v986_v6, 16  ;;  %v1645_v31 = vor.u32 %v1644_v19, %v8270_v15  ;;  %3605 = vmatpush.bf16.msrb.mxu0 %v7457_v3  ;;  %v1706_v35 = vrot.slane %v1705_v30, 4  ;;  %7647 = vmatpush.bf16.msra.mxu2 %v7457_v3 }
 0x137   : > { %v1537_v12 = vld [vmem:[#allocation2 + $0x3c] sm:$0xf]  ;;  %2331 = vst [vmem:[#allocation3 + $0x84] sm:$0xf] %v2299_v36  ;;  %v8377_v24 = vrot.slane %v1164_v23, 7  ;;  %v656_v16 = vmax.f32 %v584_v55, 0.0  ;;  %6331 = vmatmul.msk.bf16.gmra.mxu0 %vm464_vm1, %v7320_v53 }
 0x138   : > { %v1708_v11 = vshll.u32 %v1537_v12, 16  ;;  %v1712_v8 = vshrl.u32 %v1537_v12, 16  ;;  %1505 = vst [vmem:[#allocation3 + $0xb4] sm:$0xf] %v1473_v14  ;;  %v8381_v36 = vld [vmem:[#allocation3 + $0x54] sm:$0xf0] }
 0x139   : > { %4905 = vst [vmem:[#allocation3 + $0x40] sm:$0xf] %v4607_v63  ;;  %v1162_v48 = vrot.slane %v8345_v50, 4  ;;  %v1169_v58 = vor.u32 %v1167_v62, %v8377_v24  ;;  %v936_v60 = vmul.f32 %v8045_v57, %v656_v16  ;;  %v7456_v53 = vld [vmem:[%s10383_s3 + $0x118] sm:$0xff]  ;;  %v8393_v19 = vrot.slane %v4608_v46, 4 }
 0x13a   : > { %v1710_v12 = vrot.slane %v1708_v11, 5  ;;  %10430 = vst [vmem:[#allocation15_spill] sm:$0xff] %v8381_v36  ;;  %v1714_v6 = vrot.slane %v1712_v8, 4  ;;  %v8391_v30 = vld [vmem:[#allocation2 + $0x3c] sm:$0xf]  ;;  %v1646_v55 = vrot.slane %v1645_v31, 4  ;;  %3606 = vmatpush.bf16.msrb.mxu0 %v7456_v53  ;;  %7648 = vmatpush.bf16.msra.mxu2 %v7456_v53 }
 0x13b   : > { %2748 = vst [vmem:[#allocation3 + $0x58] sm:$0xf] %v2468_v28  ;;  %v1170_v50 = vsel %vm8084_vm10, %v1162_v48, %v1169_v58  ;;  %v987_v14 = vpack.c.bf16 %v936_v60, %v936_v60  ;;  %v6446_v23 = vld [vmem:[#allocation3 + $0x78] sm:$0xf]  ;;  %v8397_v57 = vld [vmem:[#allocation3 + $0x90] sm:$0xf] }
 0x13c   : > { %v1711_v15 = vsel %vm8111_vm13, %v1706_v35, %v1710_v12  ;;  %v8399_v3 = vrot.slane %v1648_v4, 5  ;;  %1432 = vst [vmem:[#allocation2 + $0x44] sm:$0xf] %v1170_v50  ;;  %v585_v11 = vpop.f32.mrf.mxu0  ;;  %v1715_v58 = vor.u32 %v1714_v6, %v1710_v12  ;;  %v4614_v16 = vshll.u32 %v8391_v30, 16  ;;  %v7455_v4 = vld [vmem:[%s10383_s3 + $0x110] sm:$0xff] }
 0x13d   : > { %1928 = vst [vmem:[#allocation3 + $0xac] sm:$0xf] %v1711_v15  ;;  %v4455_v8 = vld [vmem:[#allocation2 + $0x40] sm:$0xf]  ;;  %v1173_v28 = vshrl.u32 %v987_v14, 16  ;;  %v586_v46 = vadd.f32 %v8301_v18, %v585_v11  ;;  %v1176_v35 = vshll.u32 %v987_v14, 16 }
 0x13e   : > { %v2300_v63 = vld [vmem:[#allocation2 + $0x40] sm:$0xf]  ;;  %4487 = vst [vmem:[#allocation3 + $0x60] sm:$0xf] %v4455_v8  ;;  %v7413_v62 = vld [vmem:[#allocation3 + $0x80] sm:$0xf0]  ;;  %v1651_v15 = vsel %vm8111_vm13, %v1646_v55, %v8399_v3  ;;  %3607 = vmatpush.bf16.msrb.mxu0 %v7455_v4  ;;  %7649 = vmatpush.bf16.msra.mxu2 %v7455_v4 }
 0x13f   : > { %v6447_v48 = vor.u32 %v7413_v62, %v6446_v23  ;;  %2332 = vst [vmem:[#allocation3 + $0x90] sm:$0xf] %v2300_v63  ;;  %v8406_v31 = vld [vmem:[#allocation3 + $0x4c] sm:$0xf]  ;;  %v4618_v60 = vshrl.u32 %v8391_v30, 16  ;;  %v8412_v50 = vrot.slane %v1173_v28, 7  ;;  %v4611_v30 = vor.u32 %v8393_v19, %v8364_v10 }
 0x140   : > { %v657_v12 = vmax.f32 %v586_v46, 0.0  ;;  %v1538_v53 = vld [vmem:[#allocation2 + $0x40] sm:$0xf]  ;;  %v1171_v11 = vrot.slane %v8377_v24, 4  ;;  %v7380_v28 = vld [vmem:[%s10383_s3 + $0x38] sm:$0xff]  ;;  %v7321_v62 = vld [vmem:[%s7982_s13 + $0x90] sm:$0xff] }
 0x141   : > { %v1474_v6 = vld [vmem:[#allocation2 + $0x40] sm:$0xf]  ;;  %3546 = vmatmul.bf16.gmra.mxu1 %v6447_v48  ;;  %v1718_v14 = vshll.u32 %v1538_v53, 16  ;;  %v1722_v23 = vshrl.u32 %v1538_v53, 16  ;;  %v1178_v55 = vor.u32 %v1176_v35, %v8412_v50  ;;  %1922 = vst [vmem:[#allocation3 + $0x64] sm:$0xf] %v1651_v15 }
 0x142   : > { %1506 = vst [vmem:[#allocation3 + $0xc0] sm:$0xf] %v1474_v6  ;;  %v8414_v8 = vld [vmem:[#allocation3 + $0x54] sm:$0xf0]  ;;  %v937_v63 = vmul.f32 %v8048_v59, %v657_v12  ;;  %v7454_v10 = vld [vmem:[%s10383_s3 + $0x108] sm:$0xff]  ;;  %v1716_v19 = vrot.slane %v1715_v58, 4  ;;  %4180 = vmatpush.bf16.msrb.mxu1 %v7380_v28 }
 0x143   : > { %v1720_v24 = vrot.slane %v1718_v14, 5  ;;  %v1724_v48 = vrot.slane %v1722_v23, 4  ;;  %v4616_v35 = vrot.slane %v4614_v16, 5  ;;  %v4456_v53 = vld [vmem:[#allocation2 + $0x44] sm:$0xf]  ;;  %v1179_v59 = vsel %vm8084_vm10, %v1171_v11, %v1178_v55  ;;  %3608 = vmatpush.bf16.msrb.mxu0 %v7454_v10  ;;  %7650 = vmatpush.bf16.msra.mxu2 %v7454_v10 }
 0x144   : > { %v988_v12 = vpack.c.bf16 %v937_v63, %v937_v63  ;;  %v8432_v6 = vld [vmem:[#allocation3 + $0x98] sm:$0xf0]  ;;  %v2301_v4 = vld [vmem:[#allocation2 + $0x44] sm:$0xf]  ;;  %4488 = vst [vmem:[#allocation3 + $0x6c] sm:$0xf] %v4456_v53  ;;  %v588_v15 = vpop.f32.mrf.mxu0 }
 0x145   : > { %v8434_v46 = vld [vmem:[#allocation2 + $0x40] sm:$0xf]  ;;  %v1721_v58 = vsel %vm8111_vm13, %v1716_v19, %v1720_v24  ;;  %v1539_v14 = vld [vmem:[#allocation2 + $0x44] sm:$0xf]  ;;  %v1725_v23 = vor.u32 %v1724_v48, %v1720_v24  ;;  %v4612_v16 = vrot.slane %v4611_v30, 4  ;;  %v4620_v36 = vrot.slane %v4618_v60, 4 }
 0x146   : > { %1433 = vst [vmem:[#allocation2 + $0x48] sm:$0xf] %v1179_v59  ;;  %v1182_v34 = vshrl.u32 %v988_v12, 16  ;;  %v589_v11 = vadd.f32 %v8301_v18, %v588_v15  ;;  %v1475_v55 = vld [vmem:[#allocation2 + $0x44] sm:$0xf]  ;;  %v7379_v63 = vld [vmem:[%s10383_s3 + $0x30] sm:$0xff] }
 0x147   : > { %2333 = vst [vmem:[#allocation3 + $0x9c] sm:$0xf] %v2301_v4  ;;  %v7453_v28 = vld [vmem:[%s10383_s3 + $0x100] sm:$0xff]  ;;  %v1728_v19 = vshll.u32 %v1539_v14, 16  ;;  %v4617_v30 = vsel %vm8111_vm13, %v4612_v16, %v4616_v35  ;;  %v1185_v24 = vshll.u32 %v988_v12, 16  ;;  %6332 = vmatmul.msk.bf16.gmra.mxu0 %vm464_vm1, %v7321_v62  ;;  %v4621_v10 = vor.u32 %v4620_v36, %v4616_v35  ;;  %4181 = vmatpush.bf16.msrb.mxu1 %v7379_v63 }
 0x148   : > { %v8447_v60 = vrot.slane %v1182_v34, 7  ;;  %v658_v48 = vmax.f32 %v589_v11, 0.0  ;;  %1929 = vst [vmem:[#allocation3 + $0xb8] sm:$0xf] %v1721_v58  ;;  %3609 = vmatpush.bf16.msrb.mxu0 %v7453_v28  ;;  %v1726_v53 = vrot.slane %v1725_v23, 4  ;;  %v1732_v4 = vshrl.u32 %v1539_v14, 16  ;;  %7651 = vmatpush.bf16.msra.mxu2 %v7453_v28 }
 0x149   : > { %1507 = vst [vmem:[#allocation3 + $0xcc] sm:$0xf] %v1475_v55  ;;  %v1730_v59 = vrot.slane %v1728_v19, 5  ;;  %v4624_v15 = vshll.u32 %v8434_v46, 16  ;;  %v1180_v25 = vrot.slane %v8412_v50, 4  ;;  %v4622_v50 = vrot.slane %v4621_v10, 4 }
 0x14a   : > { %v1187_v16 = vor.u32 %v1185_v24, %v8447_v60  ;;  %v938_v34 = vmul.f32 %v8076_v26, %v658_v48  ;;  %4906 = vst [vmem:[#allocation3 + $0x4c] sm:$0xf] %v4617_v30  ;;  %v1734_v36 = vrot.slane %v1732_v4, 4  ;;  %v6458_v14 = vld [vmem:[#allocation3 + $0x90] sm:$0xf]  ;;  %v1652_v11 = vshrl.u32 %v8354_v2, 16 }
 0x14b   : > { %v1731_v62 = vsel %vm8111_vm13, %v1726_v53, %v1730_v59  ;;  %v8456_v35 = vrot.slane %v4624_v15, 5  ;;  %v8460_v23 = vld [vmem:[#allocation3 + $0xa8] sm:$0xf] }
 0x14c   : > { %v1188_v12 = vsel %vm8084_vm10, %v1180_v25, %v1187_v16  ;;  %v989_v58 = vpack.c.bf16 %v938_v34, %v938_v34  ;;  %10431 = vst [vmem:[#allocation16_spill] sm:$0xff] %v8460_v23  ;;  %v590_v55 = vpop.f32.mrf.mxu0  ;;  %v1735_v24 = vor.u32 %v1734_v36, %v1730_v59  ;;  %v7378_v25 = vld [vmem:[%s10383_s3 + $0x28] sm:$0xff]  ;;  %v1189_v16 = vrot.slane %v8447_v60, 4 }
 0x14d   : > { %1930 = vst [vmem:[#allocation3 + $0xc4] sm:$0xf] %v1731_v62  ;;  %v4457_v26 = vld [vmem:[#allocation2 + $0x48] sm:$0xf]  ;;  %v591_v19 = vadd.f32 %v8301_v18, %v590_v55  ;;  %v4627_v2 = vsel %vm8111_vm13, %v4622_v50, %v8456_v35  ;;  %v8473_v36 = vrot.slane %v1652_v11, 4  ;;  %4182 = vmatpush.bf16.msrb.mxu1 %v7378_v25  ;;  %v7322_v55 = vld [vmem:[%s7982_s13 + $0x98] sm:$0xff] }
 0x14e   : > { %1434 = vst [vmem:[#allocation2 + $0x4c] sm:$0xf] %v1188_v12  ;;  %v2302_v63 = vld [vmem:[#allocation2 + $0x48] sm:$0xf]  ;;  %v1191_v28 = vshrl.u32 %v989_v58, 16  ;;  %v1194_v53 = vshll.u32 %v989_v58, 16 }
 0x14f   : > { %4489 = vst [vmem:[#allocation3 + $0x78] sm:$0xf] %v4457_v26  ;;  %v7416_v30 = vld [vmem:[#allocation3 + $0x98] sm:$0xf0]  ;;  %v659_v4 = vmax.f32 %v591_v19, 0.0  ;;  %v1736_v50 = vrot.slane %v1735_v24, 4 }
 0x150   : > { %v6459_v48 = vor.u32 %v7416_v30, %v6458_v14  ;;  %2334 = vst [vmem:[#allocation3 + $0xa8] sm:$0xf] %v2302_v63  ;;  %v8470_v10 = vrot.slane %v1191_v28, 7  ;;  %v2366_v15 = vld [vmem:[#allocation2 + $0x48] sm:$0xf]  ;;  %v7377_v58 = vld [vmem:[%s10383_s3 + $0x20] sm:$0xff] }
 0x151   : > { %v2525_v59 = vshll.u32 %v2366_v15, 16  ;;  %v2529_v34 = vshrl.u32 %v2366_v15, 16  ;;  %v1540_v62 = vld [vmem:[#allocation2 + $0x48] sm:$0xf]  ;;  %v939_v14 = vmul.f32 %v8132_v49, %v659_v4  ;;  %4907 = vst [vmem:[#allocation3 + $0x58] sm:$0xf] %v4627_v2  ;;  %4183 = vmatpush.bf16.msrb.mxu1 %v7377_v58 }
 0x152   : > { %3551 = vmatmul.bf16.gmra.mxu1 %v6459_v48  ;;  %v1196_v12 = vor.u32 %v1194_v53, %v8470_v10  ;;  %v1738_v26 = vshll.u32 %v1540_v62, 16  ;;  %v1742_v28 = vshrl.u32 %v1540_v62, 16  ;;  %v8487_v48 = vld [vmem:[#allocation3 + $0xb0] sm:$0xf0]  ;;  %v1476_v24 = vld [vmem:[#allocation2 + $0x48] sm:$0xf] }
 0x153   : > { %v8481_v60 = vrot.slane %v2525_v59, 5  ;;  %v2531_v63 = vrot.slane %v2529_v34, 4  ;;  %v990_v30 = vpack.c.bf16 %v939_v14, %v939_v14  ;;  %10432 = vst [vmem:[#allocation17_spill] sm:$0xff] %v8487_v48  ;;  %s7300_s13 = sshll.u32 %s6115_s18, 2 }
 0x154   : > { %v1197_v49 = vsel %vm8084_vm10, %v1189_v16, %v1196_v12  ;;  %v593_v2 = vpop.f32.mrf.mxu0  ;;  %v1740_v34 = vrot.slane %v1738_v26, 5  ;;  %v7376_v16 = vld [vmem:[%s10383_s3 + $0x18] sm:$0xff]  ;;  %v8494_v12 = vld [vmem:[#allocation3 + $0xac] sm:$0xf]  ;;  %1508 = vst [vmem:[#allocation3 + $0xd8] sm:$0xf] %v1476_v24  ;;  %s6117_s12 = scalar_lea.hbm %s10386_s6, %s7300_s13 }
 0x155   : > { %v4458_v19 = vld [vmem:[#allocation2 + $0x4c] sm:$0xf]  ;;  %v2532_v4 = vor.u32 %v2531_v63, %v8481_v60  ;;  %1435 = vst [vmem:[#allocation2 + $0x50] sm:$0xf] %v1197_v49  ;;  %v1200_v62 = vshrl.u32 %v990_v30, 16  ;;  %v1203_v11 = vshll.u32 %v990_v30, 16  ;;  %v594_v23 = vadd.f32 %v8301_v18, %v593_v2  ;;  %4184 = vmatpush.bf16.msrb.mxu1 %v7376_v16 }
 0x156   : > { %v2303_v25 = vld [vmem:[#allocation2 + $0x4c] sm:$0xf]  ;;  %4490 = vst [vmem:[#allocation3 + $0x84] sm:$0xf] %v4458_v19  ;;  %v1741_v63 = vsel %vm8111_vm13, %v1736_v50, %v1740_v34  ;;  %v1198_v2 = vrot.slane %v8470_v10, 4  ;;  %s6120_s30 = sshll.u32 %s6117_s12, 4  ;;  %s6121_s30 = int_to_ptr.hbm [resolvable:$true] %s6120_s30 }
 0x157   : > { %v2367_v53 = vld [vmem:[#allocation2 + $0x4c] sm:$0xf]  ;;  %2335 = vst [vmem:[#allocation3 + $0xb4] sm:$0xf] %v2303_v25  ;;  %v2533_v14 = vrot.slane %v2532_v4, 4  ;;  %v8498_v26 = vrot.slane %v1200_v62, 7  ;;  %6333 = vmatmul.msk.bf16.gmra.mxu0 %vm464_vm1, %v7322_v55 }
 0x158   : > { %v2535_v15 = vshll.u32 %v2367_v53, 16  ;;  %v2539_v59 = vshrl.u32 %v2367_v53, 16  ;;  %10433 = vst [vmem:[#allocation18_spill] sm:$0xff] %v8494_v12  ;;  %v660_v49 = vmax.f32 %v594_v23, 0.0  ;;  %v1477_v58 = vld [vmem:[#allocation2 + $0x4c] sm:$0xf] }
 0x159   : > { %1931 = vst [vmem:[#allocation3 + $0xd0] sm:$0xf] %v1741_v63  ;;  %v1541_v25 = vld [vmem:[#allocation2 + $0x4c] sm:$0xf]  ;;  %v1744_v53 = vrot.slane %v1742_v28, 4  ;;  %v1205_v4 = vor.u32 %v1203_v11, %v8498_v26  ;;  %v7375_v23 = vld [vmem:[%s10383_s3 + $0x10] sm:$0xff] }
 0x15a   : > { %v2537_v19 = vrot.slane %v2535_v15, 5  ;;  %v2541_v48 = vrot.slane %v2539_v59, 4  ;;  %v940_v15 = vmul.f32 %v8125_v41, %v660_v49  ;;  %v1748_v50 = vshll.u32 %v1541_v25, 16  ;;  %1509 = vst [vmem:[#allocation3 + $0xe4] sm:$0xf] %v1477_v58  ;;  %4185 = vmatpush.bf16.msrb.mxu1 %v7375_v23  ;;  %s7767_s29 = sshra.s32 %s6121_s30, 4  ;;  %s7768_s29 = int_to_ptr.hbm [resolvable:$true] %s7767_s29 }
 0x15b   : > { %v1745_v59 = vor.u32 %v1744_v53, %v1740_v34  ;;  %v1206_v24 = vsel %vm8084_vm10, %v1198_v2, %v1205_v4  ;;  %v6470_v62 = vld [vmem:[#allocation3 + $0xa8] sm:$0xf]  ;;  %v1752_v11 = vshrl.u32 %v1541_v25, 16  ;;  %v8513_v63 = vld [vmem:[#allocation3 + $0xc0] sm:$0xf]  ;;  %s7769_s16 = scalar_lea.hbm %s7768_s29, 128  ;;  %p7774_p4 = scmp.lt.s32.totalorder %s7768_s29, %s10386_s6 }
 0x15c   : > { %v2538_v30 = vsel %vm8111_vm13, %v2533_v14, %v2537_v19  ;;  %v2542_v55 = vor.u32 %v2541_v48, %v2537_v19  ;;  %v991_v28 = vpack.c.bf16 %v940_v15, %v940_v15  ;;  %v8511_v10 = vrot.slane %v1748_v50, 5  ;;  %1436 = vst [vmem:[#allocation2 + $0x54] sm:$0xf] %v1206_v24  ;;  %v4459_v41 = vld [vmem:[#allocation2 + $0x50] sm:$0xf]  ;;  %v595_v14 = vpop.f32.mrf.mxu0  ;;  %v7374_v25 = vld [vmem:[%s10383_s3 + $0x8] sm:$0xff]  ;;  %p7770_p0 = scmp.ne.s32.totalorder %s7768_s29, %s7769_s16 }
 0x15d   : > { %2755 = vst [vmem:[#allocation3 + $0xac] sm:$0xf] %v2538_v30  ;;  %v2368_v16 = vld [vmem:[#allocation2 + $0x50] sm:$0xf]  ;;  %v596_v48 = vadd.f32 %v8301_v18, %v595_v14  ;;  %v1746_v2 = vrot.slane %v1745_v59, 4  ;;  %s7773_s13 = scalar_lea.hbm %s10386_s6, 512 }
 0x15e   : > { %10434 = vst [vmem:[#allocation19_spill] sm:$0xff] %v8513_v63  ;;  %v1209_v49 = vshrl.u32 %v991_v28, 16  ;;  %v7419_v19 = vld [vmem:[#allocation3 + $0xb0] sm:$0xf0]  ;;  %v2545_v58 = vshll.u32 %v2368_v16, 16  ;;  %v2549_v30 = vshrl.u32 %v2368_v16, 16  ;;  %4186 = vmatpush.bf16.msrb.mxu1 %v7374_v25  ;;  %p7771_p1 = pnand %p7770_p0, %p7938_p3  ;;  %p7775_p5 = scmp.lt.s32.totalorder %s7773_s13, %s7769_s16 }
 0x15f   : > { %4491 = vst [vmem:[#allocation3 + $0x90] sm:$0xf] %v4459_v41  ;;  %v6471_v34 = vor.u32 %v7419_v19, %v6470_v62  ;;  %v2304_v53 = vld [vmem:[#allocation2 + $0x50] sm:$0xf]  ;;  %v1212_v15 = vshll.u32 %v991_v28, 16  ;;  %v661_v50 = vmax.f32 %v596_v48, 0.0  ;;  %v1751_v23 = vsel %vm8111_vm13, %v1746_v2, %v8511_v10 }
 0x160   : > { %v8519_v4 = vrot.slane %v1209_v49, 7  ;;  %v2543_v24 = vrot.slane %v2542_v55, 4  ;;  %2336 = vst [vmem:[#allocation3 + $0xc0] sm:$0xf] %v2304_v53  ;;  %v2547_v41 = vrot.slane %v2545_v58, 5  ;;  %v2551_v14 = vrot.slane %v2549_v30, 4  ;;  %p7772_p2 = pneg %p7771_p1  ;;  %p7776_p6 = por %p7775_p5, %p7774_p4 }
 0x161   : > { %v1754_v62 = vrot.slane %v1752_v11, 4  ;;  %v1207_v16 = vrot.slane %v8498_v26, 4  ;;  %v941_v59 = vmul.f32 %v8142_v22, %v661_v50  ;;  %v7373_v55 = vld [vmem:[%s10383_s3] sm:$0xff]  ;;  %v8530_v28 = vld [vmem:[#allocation3 + $0xb4] sm:$0xf0] }
 0x162   : > { %3556 = vmatmul.bf16.gmra.mxu1 %v6471_v34  ;;  %v1214_v19 = vor.u32 %v1212_v15, %v8519_v4  ;;  %10435 = vst [vmem:[#allocation20_spill] sm:$0xff] %v8530_v28  ;;  %v2548_v49 = vsel %vm8111_vm13, %v2543_v24, %v2547_v41  ;;  %v2552_v48 = vor.u32 %v2551_v14, %v2547_v41  ;;  %v1542_v34 = vld [vmem:[#allocation2 + $0x50] sm:$0xf]  ;;  %v7388_v41 = vld [vmem:[%s10383_s3 + $0x78] sm:$0xff]  ;;  %p7777_p7 = pnand %p7776_p6, %p7772_p2 }
 0x163   : > { %1932 = vst [vmem:[#allocation3 + $0xdc] sm:$0xf] %v1751_v23  ;;  %v4460_v11 = vld [vmem:[#allocation2 + $0x54] sm:$0xf]  ;;  %v992_v58 = vpack.c.bf16 %v941_v59, %v941_v59  ;;  %v8536_v22 = vld [vmem:[#allocation3 + $0xc8] sm:$0xf0]  ;;  %v1755_v2 = vor.u32 %v1754_v62, %v8511_v10  ;;  %4187 = vmatpush.bf16.msrb.mxu1 %v7373_v55  ;;  %v10437_v10 = vor.u32 %v8200_v17, %v8202_v21 }
 0x164   : > { %v1215_v26 = vsel %vm8084_vm10, %v1207_v16, %v1214_v19  ;;  %2756 = vst [vmem:[#allocation3 + $0xb8] sm:$0xf] %v2548_v49  ;;  %v2305_v30 = vld [vmem:[#allocation2 + $0x54] sm:$0xf]  ;;  %v598_v53 = vpop.f32.mrf.mxu0  ;;  %v1478_v15 = vld [vmem:[#allocation2 + $0x50] sm:$0xf]  ;;  %4269 = vmatpush.bf16.msrb.mxu2 %v7388_v41 }
 0x165   : > { %10436 = vst [vmem:[#allocation21_spill] sm:$0xff] %v8536_v22  ;;  %v2369_v25 = vld [vmem:[#allocation2 + $0x54] sm:$0xf]  ;;  %v1218_v50 = vshrl.u32 %v992_v58, 16  ;;  %v599_v24 = vadd.f32 %v8301_v18, %v598_v53  ;;  %v1221_v23 = vshll.u32 %v992_v58, 16  ;;  %v2553_v16 = vrot.slane %v2552_v48, 4 }
 0x166   : > { %4492 = vst [vmem:[#allocation3 + $0x9c] sm:$0xf] %v4460_v11  ;;  %v2555_v14 = vshll.u32 %v2369_v25, 16  ;;  %v2559_v19 = vshrl.u32 %v2369_v25, 16  ;;  %v1758_v59 = vshll.u32 %v1542_v34, 16  ;;  %v1762_v53 = vshrl.u32 %v1542_v34, 16 }
 0x167   : > { %1437 = vst [vmem:[#allocation2 + $0x58] sm:$0xf] %v1215_v26  ;;  %v8543_v49 = vrot.slane %v1218_v50, 7  ;;  %v662_v11 = vmax.f32 %v599_v24, 0.0  ;;  %3610 = vmatmul.bf16.vlgmr.msrb.gmra.mxu0 %v10437_v10  ;;  %v8548_v62 = vld [vmem:[#allocation3 + $0xc4] sm:$0xf] }
 0x168   : > { %2337 = vst [vmem:[#allocation3 + $0xcc] sm:$0xf] %v2305_v30  ;;  %v2557_v26 = vrot.slane %v2555_v14, 5  ;;  %v1479_v12 = vld [vmem:[#allocation2 + $0x54] sm:$0xf]  ;;  %v1756_v55 = vrot.slane %v1755_v2, 4 }
 0x169   : > { %10438 = vst [vmem:[#allocation22_spill] sm:$0xff] %v8548_v62  ;;  %v7418_v28 = vld [vmem:[#allocation3 + $0xac] sm:$0xf]  ;;  %v1760_v58 = vrot.slane %v1758_v59, 5  ;;  %v1216_v48 = vrot.slane %v8519_v4, 4  ;;  %v1223_v30 = vor.u32 %v1221_v23, %v8543_v49  ;;  %v942_v25 = vmul.f32 %v8150_v5, %v662_v11 }
 0x16a   : > { %1510 = vst [vmem:[#allocation3 + $0xf0] sm:$0xf] %v1478_v15  ;;  %v2558_v17 = vsel %vm8111_vm13, %v2553_v16, %v2557_v26  ;;  %v8555_v21 = vld [vmem:[#allocation2 + $0x54] sm:$0xf]  ;;  %v2561_v24 = vrot.slane %v2559_v19, 4  ;;  %v1764_v2 = vrot.slane %v1762_v53, 4 }
 0x16b   : > { %1511 = vst [vmem:[#allocation3 + $0xfc] sm:$0xf] %v1479_v12  ;;  %v6472_v50 = vld [vmem:[#allocation3 + $0xb4] sm:$0xf0]  ;;  %v1761_v34 = vsel %vm8111_vm13, %v1756_v55, %v1760_v58  ;;  %v1224_v4 = vsel %vm8084_vm10, %v1216_v48, %v1223_v30  ;;  %v993_v15 = vpack.c.bf16 %v942_v25, %v942_v25  ;;  %v6482_v19 = vld [vmem:[#allocation3 + $0xc0] sm:$0xf] }
 0x16c   : > { %2757 = vst [vmem:[#allocation3 + $0xc4] sm:$0xf] %v2558_v17  ;;  %v6475_v41 = vor.u32 %v7418_v28, %v6472_v50  ;;  %v600_v16 = vpop.f32.mrf.mxu0  ;;  %v8564_v53 = vld [vmem:[#allocation3 + $0xd8] sm:$0xf]  ;;  %v1768_v55 = vshll.u32 %v8555_v21, 16  ;;  %v2562_v17 = vor.u32 %v2561_v24, %v2557_v26  ;;  %v1765_v50 = vor.u32 %v1764_v2, %v1760_v58 }
 0x16d   : > { %1933 = vst [vmem:[#allocation3 + $0xe8] sm:$0xf] %v1761_v34  ;;  %v8562_v12 = vpop.f32.mrf.mxu1  ;;  %v1227_v59 = vshrl.u32 %v993_v15, 16  ;;  %v1230_v28 = vshll.u32 %v993_v15, 16  ;;  %v601_v48 = vadd.f32 %v8301_v18, %v600_v16  ;;  %v1772_v58 = vshrl.u32 %v8555_v21, 16 }
 0x16e   : > { %1438 = vst [vmem:[#allocation2 + $0x5c] sm:$0xf] %v1224_v4  ;;  %v4461_v14 = vld [vmem:[#allocation2 + $0x58] sm:$0xf]  ;;  %3645 = vmatmul.bf16.vlgmr.msra.gmra.mxu2 %v6475_v41  ;;  %v8575_v26 = vrot.slane %v1768_v55, 5  ;;  %v2563_v2 = vrot.slane %v2562_v17, 4 }
 0x16f   : > { %10439 = vst [vmem:[#allocation23_spill] sm:$0xff] %v8562_v12  ;;  %v4525_v23 = vld [vmem:[#allocation2 + $0x58] sm:$0xf]  ;;  %v7422_v30 = vld [vmem:[#allocation3 + $0xc8] sm:$0xf0]  ;;  %v8568_v34 = vrot.slane %v1227_v59, 7 }
 0x170   : > { %4493 = vst [vmem:[#allocation3 + $0xa8] sm:$0xf] %v4461_v14  ;;  %v4684_v11 = vshll.u32 %v4525_v23, 16  ;;  %v4688_v10 = vshrl.u32 %v4525_v23, 16  ;;  %v2370_v25 = vld [vmem:[#allocation2 + $0x58] sm:$0xf]  ;;  %v6483_v5 = vor.u32 %v7422_v30, %v6482_v19 }
 0x171   : > { %10440 = vst [vmem:[#allocation24_spill] sm:$0xff] %v8564_v53  ;;  %v2306_v41 = vld [vmem:[#allocation2 + $0x58] sm:$0xf]  ;;  %v1225_v23 = vrot.slane %v8543_v49, 4  ;;  %v663_v62 = vmax.f32 %v601_v48, 0.0  ;;  %v2565_v12 = vshll.u32 %v2370_v25, 16  ;;  %v1232_v15 = vor.u32 %v1230_v28, %v8568_v34 }
 0x172   : > { %v8570_v4 = vrot.slane %v4684_v11, 5  ;;  %v4690_v14 = vrot.slane %v4688_v10, 4  ;;  %v2569_v53 = vshrl.u32 %v2370_v25, 16  ;;  %2338 = vst [vmem:[#allocation3 + $0xd8] sm:$0xf] %v2306_v41  ;;  %3561 = vmatmul.bf16.gmra.mxu1 %v6483_v5  ;;  %v1766_v5 = vrot.slane %v1765_v50, 4 }
 0x173   : > { %v943_v24 = vmul.f32 %v8160_v32, %v663_v62  ;;  %v2567_v19 = vrot.slane %v2565_v12, 5  ;;  %v8579_v11 = vld [vmem:[#allocation2 + $0x28] sm:$0xf]  ;;  %v1233_v10 = vsel %vm8084_vm10, %v1225_v23, %v1232_v15  ;;  %v8583_v30 = vld [vmem:[#allocation3 + $0xcc] sm:$0xf0]  ;;  %v7468_v50 = vld [vmem:[%s10383_s3 + $0x178] sm:$0xff] }
 0x174   : > { %v4691_v16 = vor.u32 %v4690_v14, %v8570_v4  ;;  %v2571_v59 = vrot.slane %v2569_v53, 4  ;;  %10441 = vst [vmem:[#allocation25_spill] sm:$0xff] %v8583_v30  ;;  %v603_v32 = vpop.f32.mrf.mxu0  ;;  %v8589_v12 = vld [vmem:[#allocation3 + $0xe0] sm:$0xf0]  ;;  %v7387_v41 = vld [vmem:[%s10383_s3 + $0x70] sm:$0xff]  ;;  %v1771_v15 = vsel %vm8111_vm13, %v1766_v5, %v8575_v26  ;;  %3691 = vmatpush.bf16.msrb.mxu3 %v7468_v50 }
 0x175   : > { %v4462_v49 = vld [vmem:[#allocation2 + $0x5c] sm:$0xf]  ;;  %v994_v21 = vpack.c.bf16 %v943_v24, %v943_v24  ;;  %v8585_v14 = vpop.f32.mrf.mxu1  ;;  %v2568_v62 = vsel %vm8111_vm13, %v2563_v2, %v2567_v19  ;;  %10443 = vst [vmem:[#allocation27_spill] sm:$0xff] %v8589_v12  ;;  %v604_v17 = vadd.f32 %v8301_v18, %v603_v32  ;;  %v10444_v32 = vor.u32 %v8240_v27, %v8244_v44 }
 0x176   : > { %v4526_v48 = vld [vmem:[#allocation2 + $0x5c] sm:$0xf]  ;;  %v4692_v28 = vrot.slane %v4691_v16, 4  ;;  %4494 = vst [vmem:[#allocation3 + $0xb4] sm:$0xf] %v4462_v49  ;;  %v2572_v49 = vor.u32 %v2571_v59, %v2567_v19  ;;  %4270 = vmatpush.bf16.msrb.mxu2 %v7387_v41  ;;  %v1234_v27 = vrot.slane %v8568_v34, 4 }
 0x177   : > { %v4694_v55 = vshll.u32 %v4526_v48, 16  ;;  %v4698_v25 = vshrl.u32 %v4526_v48, 16  ;;  %10442 = vst [vmem:[#allocation26_spill] sm:$0xff] %v8585_v14  ;;  %v2307_v53 = vld [vmem:[#allocation2 + $0x5c] sm:$0xf]  ;;  %v1236_v2 = vshrl.u32 %v994_v21, 16  ;;  %3615 = vmatmul.bf16.gmra.mxu0 %v10444_v32 }
 0x178   : > { %1439 = vst [vmem:[#allocation2 + $0x60] sm:$0xf] %v1233_v10  ;;  %v2371_v23 = vld [vmem:[#allocation2 + $0x5c] sm:$0xf]  ;;  %v1239_v10 = vshll.u32 %v994_v21, 16  ;;  %v664_v48 = vmax.f32 %v604_v17, 0.0 }
 0x179   : > { %v4696_v16 = vrot.slane %v4694_v55, 5  ;;  %v4700_v24 = vrot.slane %v4698_v25, 4  ;;  %2758 = vst [vmem:[#allocation3 + $0xd0] sm:$0xf] %v2568_v62  ;;  %v1658_v14 = vshll.u32 %v8579_v11, 16  ;;  %v8608_v25 = vrot.slane %v1236_v2, 7 }
 0x17a   : > { %2339 = vst [vmem:[#allocation3 + $0xe4] sm:$0xf] %v2307_v53  ;;  %v2575_v19 = vshll.u32 %v2371_v23, 16  ;;  %v8610_v59 = vld [vmem:[#allocation2 + $0x58] sm:$0xf]  ;;  %v944_v44 = vmul.f32 %v8186_v40, %v664_v48  ;;  %v2579_v21 = vshrl.u32 %v2371_v23, 16  ;;  %v10445_v62 = vor.u32 %v8473_v36, %v8399_v3 }
 0x17b   : > { %v4697_v5 = vsel %vm8111_vm13, %v4692_v28, %v4696_v16  ;;  %v4701_v55 = vor.u32 %v4700_v24, %v4696_v16  ;;  %1934 = vst [vmem:[#allocation3 + $0xf4] sm:$0xf] %v1771_v15  ;;  %v1241_v28 = vor.u32 %v1239_v10, %v8608_v25  ;;  %v2573_v17 = vrot.slane %v2572_v49, 4  ;;  %v7421_v3 = vld [vmem:[#allocation3 + $0xc4] sm:$0xf] }
 0x17c   : > { %4914 = vst [vmem:[#allocation3 + $0xac] sm:$0xf] %v4697_v5  ;;  %v8617_v53 = vrot.slane %v10445_v62, 4  ;;  %v2577_v50 = vrot.slane %v2575_v19, 5  ;;  %v1774_v41 = vrot.slane %v1772_v58, 4  ;;  %v995_v24 = vpack.c.bf16 %v944_v44, %v944_v44  ;;  %v605_v36 = vpop.f32.mrf.mxu0 }
 0x17d   : > { %v4702_v16 = vrot.slane %v4701_v55, 4  ;;  %v2581_v2 = vrot.slane %v2579_v21, 4  ;;  %v1778_v15 = vshll.u32 %v8610_v59, 16  ;;  %v1242_v40 = vsel %vm8084_vm10, %v1234_v27, %v1241_v28  ;;  %v8623_v48 = vpop.f32.mrf.mxu1  ;;  %v8625_v32 = vld [vmem:[#allocation3 + $0xdc] sm:$0xf]  ;;  %v856_v21 = vpop.permute.xlu0 %855 }
 0x17e   : > { %10446 = vst [vmem:[#allocation28_spill] sm:$0xff] %v8623_v48  ;;  %v2578_v58 = vsel %vm8111_vm13, %v2573_v17, %v2577_v50  ;;  %v1245_v55 = vshrl.u32 %v995_v24, 16  ;;  %v1248_v19 = vshll.u32 %v995_v24, 16  ;;  %v6494_v44 = vld [vmem:[#allocation3 + $0xd8] sm:$0xf]  ;;  %v606_v62 = vadd.f32 %v8301_v18, %v605_v36 }
 0x17f   : > { %v4527_v34 = vld [vmem:[#allocation2 + $0x60] sm:$0xf]  ;;  %10447 = vst [vmem:[#allocation29_spill] sm:$0xff] %v8625_v32  ;;  %v2582_v30 = vor.u32 %v2581_v2, %v2577_v50  ;;  %v1775_v32 = vor.u32 %v1774_v41, %v8575_v26  ;;  %v8636_v43 = vrot.slane %v1658_v14, 5  ;;  %v1243_v50 = vrot.slane %v8608_v25, 4  ;;  %v7467_v2 = vld [vmem:[%s10383_s3 + $0x170] sm:$0xff] }
 0x180   : > { %v4463_v23 = vld [vmem:[#allocation2 + $0x60] sm:$0xf]  ;;  %v4704_v49 = vshll.u32 %v4527_v34, 16  ;;  %v4708_v5 = vshrl.u32 %v4527_v34, 16  ;;  %1440 = vst [vmem:[#allocation2 + $0x64] sm:$0xf] %v1242_v40  ;;  %v10448_v41 = vor.u32 %v8127_v42, %v8123_v37  ;;  %3692 = vmatpush.bf16.msrb.mxu3 %v7467_v2 }
 0x181   : > { %v8627_v10 = vld [vmem:[#allocation2 + $0x60] sm:$0xf]  ;;  %4495 = vst [vmem:[#allocation3 + $0xc0] sm:$0xf] %v4463_v23  ;;  %v6484_v27 = vld [vmem:[#allocation3 + $0xcc] sm:$0xf0] }
 0x182   : > { %v7425_v28 = vld [vmem:[#allocation3 + $0xe0] sm:$0xf0]  ;;  %v4706_v48 = vrot.slane %v4704_v49, 5  ;;  %v8633_v12 = vrot.slane %v1245_v55, 7  ;;  %v6487_v22 = vor.u32 %v7421_v3, %v6484_v27  ;;  %v4710_v17 = vrot.slane %v4708_v5, 4  ;;  %4188 = vmatmul.bf16.vlgmr.msrb.gmra.mxu1 %v10448_v41 }
 0x183   : > { %2759 = vst [vmem:[#allocation3 + $0xdc] sm:$0xf] %v2578_v58  ;;  %v665_v34 = vmax.f32 %v606_v62, 0.0  ;;  %v6495_v40 = vor.u32 %v7425_v28, %v6494_v44  ;;  %v2585_v24 = vshll.u32 %v8627_v10, 16  ;;  %v2308_v63 = vld [vmem:[#allocation2 + $0x60] sm:$0xf] }
 0x184   : > { %v4707_v18 = vsel %vm8111_vm13, %v4702_v16, %v4706_v48  ;;  %v1250_v26 = vor.u32 %v1248_v19, %v8633_v12  ;;  %3650 = vmatmul.bf16.gmra.mxu2 %v6487_v22  ;;  %v8648_v23 = vrot.slane %v1778_v15, 5  ;;  %v4711_v14 = vor.u32 %v4710_v17, %v4706_v48  ;;  %v8652_v25 = vld [vmem:[#allocation3 + $0xf0] sm:$0xf]  ;;  %v8656_v37 = vld [vmem:[#allocation3 + $0xe4] sm:$0xf0] }
 0x185   : > { %4915 = vst [vmem:[#allocation3 + $0xb8] sm:$0xf] %v4707_v18  ;;  %v945_v3 = vmul.f32 %v856_v21, %v665_v34  ;;  %3566 = vmatmul.bf16.vlgmr.msra.gmra.mxu3 %v6495_v40  ;;  %v2583_v16 = vrot.slane %v2582_v30, 4  ;;  %v8650_v36 = vrot.slane %v2585_v24, 5  ;;  %v2589_v42 = vshrl.u32 %v8627_v10, 16  ;;  %v8659_v5 = vpop.f32.mrf.mxu1  ;;  %v608_v30 = vpop.f32.mrf.mxu0  ;;  %v7386_v41 = vld [vmem:[%s10383_s3 + $0x68] sm:$0xff] }
 0x186   : > { %v1251_v22 = vsel %vm8084_vm10, %v1243_v50, %v1250_v26  ;;  %2340 = vst [vmem:[#allocation3 + $0xf0] sm:$0xf] %v2308_v63  ;;  %v1776_v15 = vrot.slane %v1775_v32, 4  ;;  %v8664_v19 = vld [vmem:[#allocation3 + $0xf8] sm:$0xf0]  ;;  %v1252_v28 = vrot.slane %v8633_v12, 4  ;;  %v10449_v26 = vor.u32 %v8308_v61, %v8321_v38  ;;  %v861_v2 = vpop.permute.xlu0 %860  ;;  %4271 = vmatpush.bf16.msrb.mxu2 %v7386_v41 }
 0x187   : > { %v4464_v58 = vld [vmem:[#allocation2 + $0x64] sm:$0xf]  ;;  %1441 = vst [vmem:[#allocation2 + $0x68] sm:$0xf] %v1251_v22  ;;  %v996_v49 = vpack.c.bf16 %v945_v3, %v945_v3  ;;  %v2588_v55 = vsel %vm8111_vm13, %v2583_v16, %v8650_v36  ;;  %v1480_v44 = vld [vmem:[#allocation2 + $0x58] sm:$0xf] }
 0x188   : > { %v4528_v48 = vld [vmem:[#allocation2 + $0x64] sm:$0xf]  ;;  %4496 = vst [vmem:[#allocation3 + $0xcc] sm:$0xf] %v4464_v58  ;;  %v8669_v63 = vld [vmem:[%s10382_s2] ss:$0 sm:$0xff]  ;;  %v1781_v62 = vsel %vm8111_vm13, %v1776_v15, %v8648_v23  ;;  %3620 = vmatmul.bf16.gmra.mxu0 %v10449_v26 }
 0x189   : > { %v4714_v21 = vshll.u32 %v4528_v48, 16  ;;  %v4718_v10 = vshrl.u32 %v4528_v48, 16  ;;  %v609_v32 = vadd.f32 %v8669_v63, %v608_v30  ;;  %v2309_v27 = vld [vmem:[#allocation2 + $0x64] sm:$0xf]  ;;  %v4712_v17 = vrot.slane %v4711_v14, 4  ;;  %v7466_v12 = vld [vmem:[%s10383_s3 + $0x168] sm:$0xff] }
 0x18a   : > { %v1254_v34 = vshrl.u32 %v996_v49, 16  ;;  %v1257_v40 = vshll.u32 %v996_v49, 16  ;;  %2760 = vst [vmem:[#allocation3 + $0xe8] sm:$0xf] %v2588_v55  ;;  %v2373_v14 = vld [vmem:[#allocation2 + $0x64] sm:$0xf]  ;;  %3693 = vmatpush.bf16.msrb.mxu3 %v7466_v12 }
 0x18b   : > { %v4716_v24 = vrot.slane %v4714_v21, 5  ;;  %v4720_v18 = vrot.slane %v4718_v10, 4  ;;  %v666_v50 = vmax.f32 %v609_v32, 0.0  ;;  %2341 = vst [vmem:[#allocation3 + $0xfc] sm:$0xf] %v2309_v27  ;;  %v2591_v38 = vrot.slane %v2589_v42, 4 }
 0x18c   : > { %v8682_v3 = vrot.slane %v1254_v34, 7  ;;  %1935 = vst [vmem:[#allocation3 + $0x100] sm:$0xf] %v1781_v62  ;;  %v2595_v48 = vshll.u32 %v2373_v14, 16  ;;  %v10450_v49 = vshrl.u32 %v8312_v0, 16  ;;  %v2599_v42 = vshrl.u32 %v2373_v14, 16 }
 0x18d   : > { %v4717_v16 = vsel %vm8111_vm13, %v4712_v17, %v4716_v24  ;;  %v4721_v22 = vor.u32 %v4720_v18, %v4716_v24  ;;  %v946_v61 = vmul.f32 %v861_v2, %v666_v50  ;;  %1512 = vst [vmem:[#allocation3 + $0x108] sm:$0xf] %v1480_v44  ;;  %v7424_v27 = vld [vmem:[#allocation3 + $0xdc] sm:$0xf]  ;;  %v2592_v62 = vor.u32 %v2591_v38, %v8650_v36  ;;  %v1481_v44 = vld [vmem:[#allocation2 + $0x5c] sm:$0xf]  ;;  %v610_v24 = vpop.f32.mrf.mxu0 }
 0x18e   : > { %4916 = vst [vmem:[#allocation3 + $0xc4] sm:$0xf] %v4717_v16  ;;  %v1259_v15 = vor.u32 %v1257_v40, %v8682_v3  ;;  %v1261_v58 = vrot.slane %v8682_v3, 4  ;;  %v8693_v30 = vrot.slane %v10450_v49, 4  ;;  %v4529_v55 = vld [vmem:[#allocation2 + $0x68] sm:$0xf]  ;;  %v8700_v41 = vpop.f32.mrf.mxu1  ;;  %v611_v36 = vadd.f32 %v8669_v63, %v610_v24 }
 0x18f   : > { %v4722_v21 = vrot.slane %v4721_v22, 4  ;;  %v4465_v10 = vld [vmem:[#allocation2 + $0x68] sm:$0xf]  ;;  %v997_v32 = vpack.c.bf16 %v946_v61, %v946_v61  ;;  %v4724_v17 = vshll.u32 %v4529_v55, 16  ;;  %v4728_v34 = vshrl.u32 %v4529_v55, 16  ;;  %v866_v55 = vpop.permute.xlu1 %865 }
 0x190   : > { %v1260_v40 = vsel %vm8084_vm10, %v1252_v28, %v1259_v15  ;;  %4497 = vst [vmem:[#allocation3 + $0xd8] sm:$0xf] %v4465_v10  ;;  %v6506_v18 = vld [vmem:[#allocation3 + $0xf0] sm:$0xf]  ;;  %v8698_v0 = vld [vmem:[#allocation2 + $0x68] sm:$0xf]  ;;  %v6687_v3 = vor.u32 %v8190_v29, %v8167_v47 }
 0x191   : > { %1442 = vst [vmem:[#allocation2 + $0x6c] sm:$0xf] %v1260_v40  ;;  %v1263_v50 = vshrl.u32 %v997_v32, 16  ;;  %v1266_v26 = vshll.u32 %v997_v32, 16  ;;  %v6496_v2 = vld [vmem:[#allocation3 + $0xe4] sm:$0xf0] }
 0x192   : > { %v4726_v12 = vrot.slane %v4724_v17, 5  ;;  %v6499_v14 = vor.u32 %v7424_v27, %v6496_v2  ;;  %v4730_v16 = vrot.slane %v4728_v34, 4  ;;  %v7428_v28 = vld [vmem:[#allocation3 + $0xf8] sm:$0xf0]  ;;  %v2593_v22 = vrot.slane %v2592_v62, 4  ;;  %4193 = vmatmul.bf16.gmra.mxu1 %v6687_v3 }
 0x193   : > { %v8705_v61 = vrot.slane %v1263_v50, 7  ;;  %v667_v38 = vmax.f32 %v611_v36, 0.0  ;;  %v6507_v15 = vor.u32 %v7428_v28, %v6506_v18  ;;  %v2597_v49 = vrot.slane %v2595_v48, 5  ;;  %1513 = vst [vmem:[#allocation3 + $0x114] sm:$0xf] %v1481_v44 }
 0x194   : > { %v4727_v10 = vsel %vm8111_vm13, %v4722_v21, %v4726_v12  ;;  %v4731_v32 = vor.u32 %v4730_v16, %v4726_v12  ;;  %v2601_v40 = vrot.slane %v2599_v42, 4  ;;  %v2605_v24 = vshll.u32 %v8698_v0, 16  ;;  %v2361_v47 = vld [vmem:[#allocation2 + $0x34] sm:$0xf]  ;;  %3655 = vmatmul.bf16.gmra.mxu2 %v6499_v14  ;;  %v8711_v62 = vld [vmem:[#allocation3 + $0x108] sm:$0xf] }
 0x195   : > { %4917 = vst [vmem:[#allocation3 + $0xd0] sm:$0xf] %v4727_v10  ;;  %v1268_v29 = vor.u32 %v1266_v26, %v8705_v61  ;;  %v947_v27 = vmul.f32 %v866_v55, %v667_v38  ;;  %v2310_v17 = vld [vmem:[#allocation2 + $0x68] sm:$0xf]  ;;  %v1661_v48 = vsel %vm8111_vm13, %v8617_v53, %v8636_v43  ;;  %v1270_v21 = vrot.slane %v8705_v61, 4  ;;  %3571 = vmatmul.bf16.gmra.mxu3 %v6507_v15  ;;  %v613_v12 = vpop.f32.mrf.mxu0 }
 0x196   : > { %v4732_v42 = vrot.slane %v4731_v32, 4  ;;  %v8718_v44 = vld [vmem:[#allocation3 + $0xf4] sm:$0xf]  ;;  %v2598_v34 = vsel %vm8111_vm13, %v2593_v22, %v2597_v49  ;;  %v2602_v18 = vor.u32 %v2601_v40, %v2597_v49  ;;  %2342 = vst [vmem:[#allocation3 + $0x108] sm:$0xf] %v2310_v17  ;;  %v8724_v2 = vrot.slane %v2605_v24, 5 }
 0x197   : > { %v1269_v50 = vsel %vm8084_vm10, %v1261_v58, %v1268_v29  ;;  %v998_v26 = vpack.c.bf16 %v947_v27, %v947_v27  ;;  %2761 = vst [vmem:[#allocation3 + $0xf4] sm:$0xf] %v2598_v34  ;;  %v2475_v36 = vshll.u32 %v2361_v47, 16  ;;  %v8726_v14 = vld [vmem:[#allocation2 + $0x38] sm:$0xf]  ;;  %v2472_v16 = vor.u32 %v8693_v30, %v8343_v56  ;;  %v8730_v58 = vpop.f32.mrf.mxu1  ;;  %v7385_v32 = vld [vmem:[%s10383_s3 + $0x60] sm:$0xff] }
 0x198   : > { %v4466_v53 = vld [vmem:[#allocation2 + $0x6c] sm:$0xf]  ;;  %1443 = vst [vmem:[#allocation2 + $0x70] sm:$0xf] %v1269_v50  ;;  %v614_v15 = vadd.f32 %v8669_v63, %v613_v12  ;;  %v8733_v49 = vld [vmem:[#allocation3 + $0xfc] sm:$0xf0]  ;;  %v10451_v24 = vor.u32 %v8406_v31, %v8414_v8  ;;  %4272 = vmatpush.bf16.msrb.mxu2 %v7385_v32 }
 0x199   : > { %v4530_v3 = vld [vmem:[#allocation2 + $0x6c] sm:$0xf]  ;;  %4498 = vst [vmem:[#allocation3 + $0xe4] sm:$0xf] %v4466_v53  ;;  %v1272_v61 = vshrl.u32 %v998_v26, 16  ;;  %v1275_v38 = vshll.u32 %v998_v26, 16  ;;  %v871_v26 = vpop.permute.xlu0 %870 }
 0x19a   : > { %v4734_v28 = vshll.u32 %v4530_v3, 16  ;;  %v4738_v22 = vshrl.u32 %v4530_v3, 16  ;;  %v2603_v55 = vrot.slane %v2602_v18, 4  ;;  %v2311_v10 = vld [vmem:[#allocation2 + $0x6c] sm:$0xf]  ;;  %3625 = vmatmul.bf16.gmra.mxu0 %v10451_v24  ;;  %v2477_v27 = vrot.slane %v2475_v36, 5 }
 0x19b   : > { %1923 = vst [vmem:[#allocation3 + $0x70] sm:$0xf] %v1661_v48  ;;  %v8738_v30 = vrot.slane %v1272_v61, 7  ;;  %v8743_v29 = vld [vmem:[#allocation3 + $0x110] sm:$0xf0]  ;;  %v668_v17 = vmax.f32 %v614_v15, 0.0 }
 0x19c   : > { %v4736_v40 = vrot.slane %v4734_v28, 5  ;;  %v4740_v56 = vrot.slane %v4738_v22, 4  ;;  %v2608_v34 = vsel %vm8111_vm13, %v2603_v55, %v8724_v2  ;;  %2343 = vst [vmem:[#allocation3 + $0x114] sm:$0xf] %v2311_v10  ;;  %v2473_v18 = vrot.slane %v2472_v16, 4  ;;  %v7465_v50 = vld [vmem:[%s10383_s3 + $0x160] sm:$0xff] }
 0x19d   : > { %v2479_v48 = vshrl.u32 %v2361_v47, 16  ;;  %v1277_v36 = vor.u32 %v1275_v38, %v8738_v30  ;;  %2762 = vst [vmem:[#allocation3 + $0x100] sm:$0xf] %v2608_v34  ;;  %v2485_v53 = vshll.u32 %v8726_v14, 16  ;;  %v948_v3 = vmul.f32 %v871_v26, %v668_v17  ;;  %3694 = vmatpush.bf16.msrb.mxu3 %v7465_v50  ;;  %v8764_v55 = vld [vmem:[#allocation3 + $0x64] sm:$0xf] }
 0x19e   : > { %v4737_v31 = vsel %vm8111_vm13, %v4732_v42, %v4736_v40  ;;  %v4741_v8 = vor.u32 %v4740_v56, %v4736_v40  ;;  %v4628_v12 = vshrl.u32 %v8434_v46, 16  ;;  %v10452_v47 = vshrl.u32 %v8579_v11, 16  ;;  %v615_v40 = vpop.f32.mrf.mxu0  ;;  %v4520_v24 = vld [vmem:[#allocation2 + $0x44] sm:$0xf] }
 0x19f   : > { %4918 = vst [vmem:[#allocation3 + $0xdc] sm:$0xf] %v4737_v31  ;;  %v2481_v16 = vrot.slane %v2479_v48, 4  ;;  %v4531_v22 = vld [vmem:[#allocation2 + $0x70] sm:$0xf]  ;;  %v1278_v42 = vsel %vm8084_vm10, %v1270_v21, %v1277_v36  ;;  %v2478_v46 = vsel %vm8111_vm13, %v2473_v18, %v2477_v27  ;;  %v999_v11 = vpack.c.bf16 %v948_v3, %v948_v3  ;;  %v8768_v21 = vpop.f32.mrf.mxu1 }
 0x1a0   : > { %v8758_v28 = vrot.slane %v10452_v47, 4  ;;  %v4467_v61 = vld [vmem:[#allocation2 + $0x70] sm:$0xf]  ;;  %v4744_v10 = vshll.u32 %v4531_v22, 16  ;;  %v4748_v32 = vshrl.u32 %v4531_v22, 16  ;;  %v4742_v17 = vrot.slane %v4741_v8, 4  ;;  %v876_v8 = vpop.permute.xlu1 %875 }
 0x1a1   : > { %1444 = vst [vmem:[#allocation2 + $0x74] sm:$0xf] %v1278_v42  ;;  %v2482_v56 = vor.u32 %v2481_v16, %v2477_v27  ;;  %v616_v34 = vadd.f32 %v8669_v63, %v615_v40  ;;  %v6518_v48 = vld [vmem:[#allocation3 + $0x108] sm:$0xf]  ;;  %v8771_v50 = vrot.slane %v2485_v53, 5  ;;  %v1281_v31 = vshrl.u32 %v999_v11, 16 }
 0x1a2   : > { %4499 = vst [vmem:[#allocation3 + $0xf0] sm:$0xf] %v4467_v61  ;;  %v4746_v26 = vrot.slane %v4744_v10, 5  ;;  %v1284_v36 = vshll.u32 %v999_v11, 16  ;;  %v7427_v18 = vld [vmem:[#allocation3 + $0xf4] sm:$0xf] }
 0x1a3   : > { %10453 = vst [vmem:[#allocation30_spill] sm:$0xff] %v8768_v21  ;;  %v4750_v47 = vrot.slane %v4748_v32, 4  ;;  %v669_v22 = vmax.f32 %v616_v34, 0.0  ;;  %v7431_v3 = vld [vmem:[#allocation3 + $0x110] sm:$0xf0]  ;;  %v2483_v42 = vrot.slane %v2482_v56, 4 }
 0x1a4   : > { %2749 = vst [vmem:[#allocation3 + $0x64] sm:$0xf] %v2478_v46  ;;  %v4630_v27 = vrot.slane %v4628_v12, 4  ;;  %v4634_v16 = vshll.u32 %v4520_v24, 16  ;;  %v4747_v61 = vsel %vm8111_vm13, %v4742_v17, %v4746_v26  ;;  %v8775_v15 = vrot.slane %v1281_v31, 7 }
 0x1a5   : > { %v6508_v40 = vld [vmem:[#allocation3 + $0xfc] sm:$0xf0]  ;;  %v4751_v53 = vor.u32 %v4750_v47, %v4746_v26  ;;  %v6519_v38 = vor.u32 %v7431_v3, %v6518_v48  ;;  %v8777_v10 = vld [vmem:[#allocation2 + $0x48] sm:$0xf]  ;;  %4919 = vst [vmem:[#allocation3 + $0xe8] sm:$0xf] %v4747_v61  ;;  %v949_v11 = vmul.f32 %v876_v8, %v669_v22  ;;  %v10454_v12 = vor.u32 %v8174_v13, %v8171_v1 }
 0x1a6   : > { %v1279_v32 = vrot.slane %v8738_v30, 4  ;;  %v6511_v46 = vor.u32 %v7427_v18, %v6508_v40  ;;  %v8783_v56 = vld [vmem:[#allocation3 + $0x6c] sm:$0xf0]  ;;  %v2488_v17 = vsel %vm8111_vm13, %v2483_v42, %v8771_v50  ;;  %v1286_v34 = vor.u32 %v1284_v36, %v8775_v15 }
 0x1a7   : > { %4198 = vmatmul.bf16.gmra.mxu1 %v10454_v12  ;;  %3576 = vmatmul.bf16.gmra.mxu3 %v6519_v38  ;;  %2750 = vst [vmem:[#allocation3 + $0x70] sm:$0xf] %v2488_v17  ;;  %v4631_v30 = vor.u32 %v4630_v27, %v8456_v35  ;;  %v4636_v26 = vrot.slane %v4634_v16, 5  ;;  %v1000_v1 = vpack.c.bf16 %v949_v11, %v949_v11  ;;  %v4638_v13 = vshrl.u32 %v4520_v24, 16  ;;  %v618_v38 = vpop.f32.mrf.mxu0  ;;  %v1545_v27 = vld [vmem:[#allocation2 + $0x5c] sm:$0xf] }
 0x1a8   : > { %v4468_v31 = vld [vmem:[#allocation2 + $0x74] sm:$0xf]  ;;  %3660 = vmatmul.bf16.gmra.mxu2 %v6511_v46  ;;  %v4644_v47 = vshll.u32 %v8777_v10, 16  ;;  %v1287_v22 = vsel %vm8084_vm10, %v1279_v32, %v1286_v34  ;;  %v4752_v8 = vrot.slane %v4751_v53, 4  ;;  %v619_v35 = vadd.f32 %v8669_v63, %v618_v38  ;;  %v8795_v46 = vpop.f32.mrf.mxu1  ;;  %v881_v53 = vpop.permute.xlu2 %880  ;;  %v1482_v38 = vld [vmem:[#allocation2 + $0x60] sm:$0xf] }
 0x1a9   : > { %v4532_v18 = vld [vmem:[#allocation2 + $0x74] sm:$0xf]  ;;  %4500 = vst [vmem:[#allocation3 + $0xfc] sm:$0xf] %v4468_v31  ;;  %v4632_v42 = vrot.slane %v4631_v30, 4  ;;  %v1290_v61 = vshrl.u32 %v1000_v1, 16 }
 0x1aa   : > { %v4754_v3 = vshll.u32 %v4532_v18, 16  ;;  %v4758_v36 = vshrl.u32 %v4532_v18, 16  ;;  %1445 = vst [vmem:[#allocation2 + $0x78] sm:$0xf] %v1287_v22  ;;  %v4640_v12 = vrot.slane %v4638_v13, 4  ;;  %v1288_v32 = vrot.slane %v8775_v15, 4 }
 0x1ab   : > { %10455 = vst [vmem:[#allocation31_spill] sm:$0xff] %v8795_v46  ;;  %v7409_v24 = vld [vmem:[#allocation3 + $0x64] sm:$0xf]  ;;  %v4637_v11 = vsel %vm8111_vm13, %v4632_v42, %v4636_v26  ;;  %v8800_v17 = vrot.slane %v1290_v61, 7  ;;  %v1293_v34 = vshll.u32 %v1000_v1, 16  ;;  %v670_v30 = vmax.f32 %v619_v35, 0.0 }
 0x1ac   : > { %v4756_v16 = vrot.slane %v4754_v3, 5  ;;  %v4760_v40 = vrot.slane %v4758_v36, 4  ;;  %4908 = vst [vmem:[#allocation3 + $0x64] sm:$0xf] %v4637_v11  ;;  %v4641_v18 = vor.u32 %v4640_v12, %v4636_v26  ;;  %v8804_v22 = vrot.slane %v4644_v47, 5 }
 0x1ad   : > { %v10456_v3 = vshrl.u32 %v8610_v59, 16  ;;  %v1483_v42 = vld [vmem:[#allocation2 + $0x64] sm:$0xf]  ;;  %v1295_v15 = vor.u32 %v1293_v34, %v8800_v17  ;;  %v950_v61 = vmul.f32 %v881_v53, %v670_v30  ;;  %v1788_v35 = vshll.u32 %v1545_v27, 16  ;;  %1514 = vst [vmem:[#allocation3 + $0x120] sm:$0xf] %v1482_v38 }
 0x1ae   : > { %v4757_v31 = vsel %vm8111_vm13, %v4752_v8, %v4756_v16  ;;  %v4761_v13 = vor.u32 %v4760_v40, %v4756_v16  ;;  %v6436_v1 = vld [vmem:[#allocation3 + $0x6c] sm:$0xf0]  ;;  %v4642_v48 = vrot.slane %v4641_v18, 4  ;;  %v8810_v8 = vld [vmem:[#allocation2 + $0x60] sm:$0xf]  ;;  %v1792_v40 = vshrl.u32 %v1545_v27, 16 }
 0x1af   : > { %v1784_v36 = vrot.slane %v10456_v3, 4  ;;  %4920 = vst [vmem:[#allocation3 + $0xf4] sm:$0xf] %v4757_v31  ;;  %v6439_v11 = vor.u32 %v7409_v24, %v6436_v1  ;;  %v1296_v59 = vsel %vm8084_vm10, %v1288_v32, %v1295_v15  ;;  %v1001_v47 = vpack.c.bf16 %v950_v61, %v950_v61  ;;  %v2375_v12 = vld [vmem:[#allocation2 + $0x6c] sm:$0xf]  ;;  %v620_v53 = vpop.f32.mrf.mxu0 }
 0x1b0   : > { %v1790_v16 = vrot.slane %v1788_v35, 5  ;;  %1515 = vst [vmem:[#allocation3 + $0x12c] sm:$0xf] %v1483_v42  ;;  %v4647_v24 = vsel %vm8111_vm13, %v4642_v48, %v8804_v22  ;;  %v4762_v31 = vrot.slane %v4761_v13, 4  ;;  %v8820_v27 = vld [vmem:[#allocation2 + $0x70] sm:$0xf]  ;;  %v8832_v35 = vpop.f32.mrf.mxu1 }
 0x1b1   : > { %v1785_v26 = vor.u32 %v1784_v36, %v8648_v23  ;;  %v4533_v34 = vld [vmem:[#allocation2 + $0x78] sm:$0xf]  ;;  %1446 = vst [vmem:[#allocation2 + $0x7c] sm:$0xf] %v1296_v59  ;;  %3630 = vmatmul.bf16.gmra.mxu0 %v6439_v11  ;;  %v6711_v23 = vor.u32 %v8257_v52, %v8234_v54  ;;  %v1299_v3 = vshrl.u32 %v1001_v47, 16  ;;  %v1302_v36 = vshll.u32 %v1001_v47, 16 }
 0x1b2   : > { %v4469_v30 = vld [vmem:[#allocation2 + $0x78] sm:$0xf]  ;;  %v4764_v18 = vshll.u32 %v4533_v34, 16  ;;  %v4768_v32 = vshrl.u32 %v4533_v34, 16  ;;  %4909 = vst [vmem:[#allocation3 + $0x70] sm:$0xf] %v4647_v24 }
 0x1b3   : > { %4501 = vst [vmem:[#allocation3 + $0x108] sm:$0xf] %v4469_v30  ;;  %v1786_v38 = vrot.slane %v1785_v26, 4  ;;  %v1794_v42 = vrot.slane %v1792_v40, 4  ;;  %v1798_v15 = vshll.u32 %v8810_v8, 16  ;;  %v8825_v48 = vrot.slane %v1299_v3, 7 }
 0x1b4   : > { %v8823_v61 = vrot.slane %v4764_v18, 5  ;;  %v10457_v1 = vshrl.u32 %v8698_v0, 16  ;;  %v2615_v52 = vshll.u32 %v2375_v12, 16  ;;  %v7464_v13 = vld [vmem:[%s10383_s3 + $0x158] sm:$0xff]  ;;  %10458 = vst [vmem:[#allocation32_spill] sm:$0xff] %v8832_v35  ;;  %v2619_v47 = vshrl.u32 %v2375_v12, 16 }
 0x1b5   : > { %v1791_v11 = vsel %vm8111_vm13, %v1786_v38, %v1790_v16  ;;  %v1795_v26 = vor.u32 %v1794_v42, %v1790_v16  ;;  %v8836_v59 = vrot.slane %v1798_v15, 5  ;;  %v1297_v0 = vrot.slane %v8800_v17, 4  ;;  %v2312_v38 = vld [vmem:[#allocation2 + $0x70] sm:$0xf]  ;;  %3695 = vmatpush.bf16.msrb.mxu3 %v7464_v13  ;;  %v1533_v12 = vld [vmem:[#allocation2 + $0x2c] sm:$0xf] }
 0x1b6   : > { %v2611_v54 = vrot.slane %v10457_v1, 4  ;;  %v4767_v40 = vsel %vm8111_vm13, %v4762_v31, %v8823_v61  ;;  %v1304_v34 = vor.u32 %v1302_v36, %v8825_v48  ;;  %1936 = vst [vmem:[#allocation3 + $0x10c] sm:$0xf] %v1791_v11  ;;  %v2617_v18 = vrot.slane %v2615_v52, 5  ;;  %v8853_v11 = vld [vmem:[#allocation3 + $0x120] sm:$0xf] }
 0x1b7   : > { %4203 = vmatmul.bf16.gmra.mxu1 %v6711_v23  ;;  %4921 = vst [vmem:[#allocation3 + $0x100] sm:$0xf] %v4767_v40  ;;  %v1796_v24 = vrot.slane %v1795_v26, 4  ;;  %v2621_v3 = vrot.slane %v2619_v47, 4  ;;  %v2625_v16 = vshll.u32 %v8820_v27, 16  ;;  %v4770_v13 = vrot.slane %v4768_v32, 4  ;;  %v623_v26 = vpop.f32.mrf.mxu0 }
 0x1b8   : > { %v2612_v30 = vor.u32 %v2611_v54, %v8724_v2  ;;  %v4470_v42 = vld [vmem:[#allocation2 + $0x7c] sm:$0xf]  ;;  %v1305_v31 = vsel %vm8084_vm10, %v1297_v0, %v1304_v34  ;;  %v621_v2 = vadd.f32 %v8669_v63, %v620_v53  ;;  %v2313_v23 = vld [vmem:[#allocation2 + $0x74] sm:$0xf]  ;;  %v8855_v34 = vld [vmem:[#allocation2 + $0x30] sm:$0xf]  ;;  %v1665_v53 = vor.u32 %v8758_v28, %v8636_v43 }
 0x1b9   : > { %v4534_v15 = vld [vmem:[#allocation2 + $0x7c] sm:$0xf]  ;;  %4502 = vst [vmem:[#allocation3 + $0x114] sm:$0xf] %v4470_v42  ;;  %v1801_v1 = vsel %vm8111_vm13, %v1796_v24, %v8836_v59  ;;  %v2622_v52 = vor.u32 %v2621_v3, %v2617_v18  ;;  %v886_v24 = vpop.permute.xlu0 %885  ;;  %v4771_v3 = vor.u32 %v4770_v13, %v8823_v61  ;;  %v1668_v28 = vshll.u32 %v1533_v12, 16  ;;  %v891_v61 = vpop.permute.xlu1 %890 }
 0x1ba   : > { %v2613_v54 = vrot.slane %v2612_v30, 4  ;;  %1447 = vst [vmem:[#allocation2 + $0x80] sm:$0xf] %v1305_v31  ;;  %v4774_v47 = vshll.u32 %v4534_v15, 16  ;;  %v4778_v40 = vshrl.u32 %v4534_v15, 16  ;;  %v671_v0 = vmax.f32 %v621_v2, 0.0 }
 0x1bb   : > { %v7384_v42 = vld [vmem:[%s10383_s3 + $0x58] sm:$0xff]  ;;  %1937 = vst [vmem:[#allocation3 + $0x118] sm:$0xf] %v1801_v1  ;;  %v8864_v30 = vrot.slane %v2625_v16, 5  ;;  %v8867_v31 = vld [vmem:[#allocation3 + $0x128] sm:$0xf0]  ;;  %v624_v15 = vadd.f32 %v8669_v63, %v623_v26 }
 0x1bc   : > { %v2618_v32 = vsel %vm8111_vm13, %v2613_v54, %v2617_v18  ;;  %v4776_v2 = vrot.slane %v4774_v47, 5  ;;  %v4780_v36 = vrot.slane %v4778_v40, 4  ;;  %v951_v43 = vmul.f32 %v886_v24, %v671_v0  ;;  %2344 = vst [vmem:[#allocation3 + $0x120] sm:$0xf] %v2312_v38  ;;  %4273 = vmatpush.bf16.msrb.mxu2 %v7384_v42  ;;  %v7524_v1 = vld [vmem:[%s10383_s3 + $0x1b8] sm:$0xff]  ;;  %v8876_v40 = vpop.f32.mrf.mxu1 }
 0x1bd   : > { %v8873_v46 = vld [vmem:[#allocation3 + $0x10c] sm:$0xf]  ;;  %v2623_v18 = vrot.slane %v2622_v52, 4  ;;  %2345 = vst [vmem:[#allocation3 + $0x12c] sm:$0xf] %v2313_v23  ;;  %v672_v16 = vmax.f32 %v624_v15, 0.0  ;;  %5672 = vmatpush.bf16.msra.mxu0 %v7524_v1 }
 0x1be   : > { %10459 = vst [vmem:[#allocation33_spill] sm:$0xff] %v8873_v46  ;;  %v4781_v54 = vor.u32 %v4780_v36, %v4776_v2  ;;  %v1002_v13 = vpack.c.bf16 %v951_v43, %v951_v43  ;;  %v1670_v26 = vrot.slane %v1668_v28, 5  ;;  %v1672_v47 = vshrl.u32 %v1533_v12, 16  ;;  %v2363_v38 = vld [vmem:[#allocation2 + $0x3c] sm:$0xf] }
 0x1bf   : > { %2763 = vst [vmem:[#allocation3 + $0x10c] sm:$0xf] %v2618_v32  ;;  %v952_v0 = vmul.f32 %v891_v61, %v672_v16  ;;  %v1666_v42 = vrot.slane %v1665_v53, 4  ;;  %v1678_v24 = vshll.u32 %v8855_v34, 16  ;;  %v2628_v23 = vsel %vm8111_vm13, %v2623_v18, %v8864_v30 }
 0x1c0   : > { %10460 = vst [vmem:[#allocation34_spill] sm:$0xff] %v8876_v40  ;;  %v4772_v52 = vrot.slane %v4771_v3, 4  ;;  %v8882_v15 = vrot.slane %v4781_v54, 4  ;;  %v1308_v36 = vshrl.u32 %v1002_v13, 16  ;;  %v1311_v12 = vshll.u32 %v1002_v13, 16 }
 0x1c1   : > { %v8884_v32 = vld [vmem:[#allocation2 + $0x80] sm:$0xf]  ;;  %v1003_v28 = vpack.c.bf16 %v952_v0, %v952_v0  ;;  %v1674_v1 = vrot.slane %v1672_v47, 4  ;;  %v6723_v53 = vor.u32 %v8304_v39, %v8275_v45  ;;  %v1671_v3 = vsel %vm8111_vm13, %v1666_v42, %v1670_v26 }
 0x1c2   : > { %v4471_v43 = vld [vmem:[#allocation2 + $0x80] sm:$0xf]  ;;  %v8888_v16 = vld [vmem:[#allocation3 + $0x114] sm:$0xf0]  ;;  %v4784_v61 = vshll.u32 %v8884_v32, 16  ;;  %v1310_v17 = vrot.slane %v1308_v36, 7  ;;  %v4777_v13 = vsel %vm8111_vm13, %v4772_v52, %v4776_v2 }
 0x1c3   : > { %10461 = vst [vmem:[#allocation35_spill] sm:$0xff] %v8888_v16  ;;  %v10462_v18 = vshrl.u32 %v8726_v14, 16  ;;  %v6530_v47 = vld [vmem:[#allocation3 + $0x120] sm:$0xf]  ;;  %v1317_v0 = vshrl.u32 %v1003_v28, 16  ;;  %v1675_v40 = vor.u32 %v1674_v1, %v1670_v26  ;;  %v8897_v35 = vrot.slane %v1678_v24, 5 }
 0x1c4   : > { %2764 = vst [vmem:[#allocation3 + $0x118] sm:$0xf] %v2628_v23  ;;  %v8899_v45 = vld [vmem:[#allocation2 + $0x40] sm:$0xf]  ;;  %v8901_v39 = vrot.slane %v4784_v61, 5  ;;  %v1313_v36 = vor.u32 %v1311_v12, %v1310_v17  ;;  %v1320_v42 = vshll.u32 %v1003_v28, 16 }
 0x1c5   : > { %v2491_v54 = vrot.slane %v10462_v18, 4  ;;  %v7434_v46 = vld [vmem:[#allocation3 + $0x128] sm:$0xf0]  ;;  %4503 = vst [vmem:[#allocation3 + $0x120] sm:$0xf] %v4471_v43  ;;  %v8904_v21 = vrot.slane %v1317_v0, 7 }
 0x1c6   : > { %v4522_v18 = vld [vmem:[#allocation2 + $0x4c] sm:$0xf]  ;;  %v7430_v23 = vld [vmem:[#allocation3 + $0x10c] sm:$0xf]  ;;  %v6531_v16 = vor.u32 %v7434_v46, %v6530_v47  ;;  %v1676_v2 = vrot.slane %v1675_v40, 4  ;;  %v10463_v26 = vrot.slane %v8825_v48, 4  ;;  %v8926_v47 = vpop.f32.mrf.mxu1 }
 0x1c7   : > { %v2492_v14 = vor.u32 %v2491_v54, %v8771_v50  ;;  %1924 = vst [vmem:[#allocation3 + $0x7c] sm:$0xf] %v1671_v3  ;;  %v1315_v52 = vrot.slane %v1310_v17, 4  ;;  %v2495_v43 = vshll.u32 %v2363_v38, 16  ;;  %4208 = vmatmul.bf16.gmra.mxu1 %v6723_v53  ;;  %v4787_v50 = vsel %vm8111_vm13, %v8882_v15, %v8901_v39  ;;  %v8919_v28 = vld [vmem:[#allocation2 + $0x50] sm:$0xf] }
 0x1c8   : > { %4922 = vst [vmem:[#allocation3 + $0x10c] sm:$0xf] %v4777_v13  ;;  %v1314_v24 = vsel %vm8084_vm10, %v10463_v26, %v1313_v36  ;;  %3581 = vmatmul.bf16.gmra.mxu3 %v6531_v16  ;;  %v1322_v46 = vor.u32 %v1320_v42, %v8904_v21  ;;  %v1681_v48 = vsel %vm8111_vm13, %v1676_v2, %v8897_v35  ;;  %v2499_v40 = vshrl.u32 %v2363_v38, 16  ;;  %v1547_v0 = vld [vmem:[#allocation2 + $0x64] sm:$0xf]  ;;  %v7523_v38 = vld [vmem:[%s10383_s3 + $0x1b0] sm:$0xff]  ;;  %v8937_v26 = vpop.f32.mrf.mxu0 }
 0x1c9   : > { %1448 = vst [vmem:[#allocation2 + $0x84] sm:$0xf] %v1314_v24  ;;  %v2493_v17 = vrot.slane %v2492_v14, 4  ;;  %v2497_v1 = vrot.slane %v2495_v43, 5  ;;  %v2505_v53 = vshll.u32 %v8899_v45, 16  ;;  %v10464_v61 = vshrl.u32 %v8777_v10, 16  ;;  %5673 = vmatpush.bf16.msra.mxu0 %v7523_v38 }
 0x1ca   : > { %1925 = vst [vmem:[#allocation3 + $0x88] sm:$0xf] %v1681_v48  ;;  %v1323_v15 = vsel %vm8084_vm10, %v1315_v52, %v1322_v46  ;;  %v2501_v16 = vrot.slane %v2499_v40, 4  ;;  %v4654_v54 = vshll.u32 %v4522_v18, 16  ;;  %v4658_v13 = vshrl.u32 %v4522_v18, 16 }
 0x1cb   : > { %v4650_v3 = vrot.slane %v10464_v61, 4  ;;  %10465 = vst [vmem:[#allocation36_spill] sm:$0xff] %v8926_v47  ;;  %v6520_v36 = vld [vmem:[#allocation3 + $0x114] sm:$0xf0]  ;;  %v2498_v42 = vsel %vm8111_vm13, %v2493_v17, %v2497_v1  ;;  %v8933_v10 = vrot.slane %v2505_v53, 5  ;;  %v4664_v2 = vshll.u32 %v8919_v28, 16 }
 0x1cc   : > { %1449 = vst [vmem:[#allocation2 + $0x88] sm:$0xf] %v1323_v15  ;;  %v6523_v18 = vor.u32 %v7430_v23, %v6520_v36  ;;  %v2502_v24 = vor.u32 %v2501_v16, %v2497_v1  ;;  %v8939_v52 = vrot.slane %v4654_v54, 5  ;;  %v4660_v43 = vrot.slane %v4658_v13, 4  ;;  %v8941_v46 = vld [vmem:[#allocation2 + $0x68] sm:$0xf] }
 0x1cd   : > { %v4651_v14 = vor.u32 %v4650_v3, %v8804_v22  ;;  %4923 = vst [vmem:[#allocation3 + $0x118] sm:$0xf] %v4787_v50  ;;  %v4788_v48 = vshrl.u32 %v8884_v32, 16  ;;  %v10466_v53 = vshrl.u32 %v8810_v8, 16  ;;  %v2377_v23 = vld [vmem:[#allocation2 + $0x74] sm:$0xf] }
 0x1ce   : > { %v8945_v17 = vld [vmem:[#allocation3 + $0x7c] sm:$0xf]  ;;  %3665 = vmatmul.bf16.gmra.mxu2 %v6523_v18  ;;  %v2503_v50 = vrot.slane %v2502_v24, 4  ;;  %v4661_v1 = vor.u32 %v4660_v43, %v8939_v52  ;;  %v1808_v3 = vshll.u32 %v1547_v0, 16  ;;  %v1812_v15 = vshrl.u32 %v1547_v0, 16  ;;  %v7522_v32 = vld [vmem:[%s10383_s3 + $0x1a8] sm:$0xff] }
 0x1cf   : > { %v1804_v61 = vrot.slane %v10466_v53, 4  ;;  %2751 = vst [vmem:[#allocation3 + $0x7c] sm:$0xf] %v2498_v42  ;;  %v1484_v16 = vld [vmem:[#allocation2 + $0x68] sm:$0xf]  ;;  %v4652_v13 = vrot.slane %v4651_v14, 4  ;;  %5674 = vmatpush.bf16.msra.mxu0 %v7522_v32  ;;  %v6735_v14 = vor.u32 %v8361_v51, %v8336_v7  ;;  %v8988_v53 = vpop.f32.mrf.mxu1 }
 0x1d0   : > { %v4472_v54 = vld [vmem:[#allocation2 + $0x84] sm:$0xf]  ;;  %v8954_v38 = vrot.slane %v4664_v2, 5  ;;  %v1818_v36 = vshll.u32 %v8941_v46, 16  ;;  %v8958_v18 = vld [vmem:[#allocation2 + $0x78] sm:$0xf]  ;;  %v2508_v0 = vsel %vm8111_vm13, %v2503_v50, %v8933_v10 }
 0x1d1   : > { %v1805_v8 = vor.u32 %v1804_v61, %v8836_v59  ;;  %4504 = vst [vmem:[#allocation3 + $0x12c] sm:$0xf] %v4472_v54  ;;  %v8960_v42 = vld [vmem:[#allocation3 + $0x84] sm:$0xf0]  ;;  %v1810_v43 = vrot.slane %v1808_v3, 5  ;;  %v1814_v2 = vrot.slane %v1812_v15, 4  ;;  %v4657_v40 = vsel %vm8111_vm13, %v4652_v13, %v8939_v52 }
 0x1d2   : > { %2752 = vst [vmem:[#allocation3 + $0x88] sm:$0xf] %v2508_v0  ;;  %v10467_v61 = vshrl.u32 %v8820_v27, 16  ;;  %v4662_v50 = vrot.slane %v4661_v1, 4  ;;  %v2635_v22 = vshll.u32 %v2377_v23, 16  ;;  %v2639_v24 = vshrl.u32 %v2377_v23, 16 }
 0x1d3   : > { %v1806_v59 = vrot.slane %v1805_v8, 4  ;;  %v4536_v3 = vld [vmem:[#allocation2 + $0x84] sm:$0xf]  ;;  %v1485_v32 = vld [vmem:[#allocation2 + $0x6c] sm:$0xf]  ;;  %v7463_v7 = vld [vmem:[%s10383_s3 + $0x150] sm:$0xff]  ;;  %v1815_v15 = vor.u32 %v1814_v2, %v1810_v43  ;;  %v628_v2 = vpop.f32.mrf.mxu0 }
 0x1d4   : > { %v2631_v54 = vrot.slane %v10467_v61, 4  ;;  %v8979_v8 = vrot.slane %v1818_v36, 5  ;;  %v8982_v0 = vld [vmem:[#allocation2 + $0x88] sm:$0xf]  ;;  %1516 = vst [vmem:[#allocation3 + $0x138] sm:$0xf] %v1484_v16  ;;  %3696 = vmatpush.bf16.msrb.mxu3 %v7463_v7  ;;  %v626_v16 = vadd.f32 %v8669_v63, %v8937_v26 }
 0x1d5   : > { %v1811_v51 = vsel %vm8111_vm13, %v1806_v59, %v1810_v43  ;;  %v7521_v52 = vld [vmem:[%s10383_s3 + $0x1a0] sm:$0xff]  ;;  %v2637_v23 = vrot.slane %v2635_v22, 5  ;;  %v2641_v1 = vrot.slane %v2639_v24, 4  ;;  %v2645_v13 = vshll.u32 %v8958_v18, 16  ;;  %10468 = vst [vmem:[#allocation37_spill] sm:$0xff] %v8988_v53 }
 0x1d6   : > { %v2632_v27 = vor.u32 %v2631_v54, %v8864_v30  ;;  %1938 = vst [vmem:[#allocation3 + $0x124] sm:$0xf] %v1811_v51  ;;  %v4790_v61 = vrot.slane %v4788_v48, 4  ;;  %v7412_v36 = vld [vmem:[#allocation3 + $0x7c] sm:$0xf]  ;;  %v1816_v43 = vrot.slane %v1815_v15, 4  ;;  %5675 = vmatpush.bf16.msra.mxu0 %v7521_v52  ;;  %v4667_v22 = vsel %vm8111_vm13, %v4662_v50, %v8954_v38 }
 0x1d7   : > { %v4794_v59 = vshll.u32 %v4536_v3, 16  ;;  %v4798_v30 = vshrl.u32 %v4536_v3, 16  ;;  %4910 = vst [vmem:[#allocation3 + $0x7c] sm:$0xf] %v4657_v40  ;;  %v2642_v54 = vor.u32 %v2641_v1, %v2637_v23  ;;  %v2314_v51 = vld [vmem:[#allocation2 + $0x78] sm:$0xf]  ;;  %4213 = vmatmul.bf16.gmra.mxu1 %v6735_v14 }
 0x1d8   : > { %v2633_v24 = vrot.slane %v2632_v27, 4  ;;  %v4791_v48 = vor.u32 %v4790_v61, %v8901_v39  ;;  %v1535_v7 = vld [vmem:[#allocation2 + $0x34] sm:$0xf]  ;;  %v1821_v3 = vsel %vm8111_vm13, %v1816_v43, %v8979_v8  ;;  %v4804_v52 = vshll.u32 %v8982_v0, 16  ;;  %1517 = vst [vmem:[#allocation3 + $0x144] sm:$0xf] %v1485_v32 }
 0x1d9   : > { %v8999_v15 = vrot.slane %v4794_v59, 5  ;;  %v4800_v26 = vrot.slane %v4798_v30, 4  ;;  %v6448_v12 = vld [vmem:[#allocation3 + $0x84] sm:$0xf0]  ;;  %1939 = vst [vmem:[#allocation3 + $0x130] sm:$0xf] %v1821_v3  ;;  %v629_v27 = vadd.f32 %v8669_v63, %v628_v2  ;;  %v896_v30 = vpop.permute.xlu2 %895 }
 0x1da   : > { %v2638_v40 = vsel %vm8111_vm13, %v2633_v24, %v2637_v23  ;;  %v9004_v50 = vrot.slane %v2645_v13, 5  ;;  %v6451_v1 = vor.u32 %v7412_v36, %v6448_v12  ;;  %4911 = vst [vmem:[#allocation3 + $0x88] sm:$0xf] %v4667_v22  ;;  %v2643_v61 = vrot.slane %v2642_v54, 4  ;;  %v2315_v14 = vld [vmem:[#allocation2 + $0x7c] sm:$0xf]  ;;  %v901_v24 = vpop.permute.xlu0 %900 }
 0x1db   : > { %v9008_v43 = vrot.slane %v4791_v48, 4  ;;  %v673_v59 = vmax.f32 %v626_v16, 0.0  ;;  %v9010_v32 = vld [vmem:[#allocation3 + $0x138] sm:$0xf]  ;;  %v674_v3 = vmax.f32 %v629_v27, 0.0  ;;  %v10469_v53 = vshrl.u32 %v8855_v34, 16 }
 0x1dc   : > { %v2365_v13 = vld [vmem:[#allocation2 + $0x44] sm:$0xf]  ;;  %3635 = vmatmul.bf16.gmra.mxu0 %v6451_v1  ;;  %v4801_v63 = vor.u32 %v4800_v26, %v8999_v15  ;;  %v9017_v12 = vrot.slane %v4804_v52, 5  ;;  %2346 = vst [vmem:[#allocation3 + $0x138] sm:$0xf] %v2314_v51  ;;  %v1688_v16 = vshll.u32 %v1535_v7, 16  ;;  %v2648_v51 = vsel %vm8111_vm13, %v2643_v61, %v9004_v50 }
 0x1dd   : > { %v1684_v23 = vrot.slane %v10469_v53, 4  ;;  %v9014_v39 = vld [vmem:[#allocation3 + $0x124] sm:$0xf]  ;;  %v953_v36 = vmul.f32 %v896_v30, %v673_v59  ;;  %v954_v2 = vmul.f32 %v901_v24, %v674_v3  ;;  %v1692_v54 = vshrl.u32 %v1535_v7, 16  ;;  %v7520_v48 = vld [vmem:[%s10383_s3 + $0x198] sm:$0xff]  ;;  %v7383_v26 = vld [vmem:[%s10383_s3 + $0x50] sm:$0xff]  ;;  %v9033_v30 = vpop.f32.mrf.mxu1 }
 0x1de   : > { %10470 = vst [vmem:[#allocation38_spill] sm:$0xff] %v9014_v39  ;;  %v10471_v34 = vshrl.u32 %v8899_v45, 16  ;;  %v2515_v27 = vshll.u32 %v2365_v13, 16  ;;  %v4524_v59 = vld [vmem:[#allocation2 + $0x54] sm:$0xf]  ;;  %5676 = vmatpush.bf16.msra.mxu0 %v7520_v48  ;;  %4274 = vmatpush.bf16.msrb.mxu2 %v7383_v26  ;;  %v4797_v61 = vsel %vm8111_vm13, %v9008_v43, %v8999_v15 }
 0x1df   : > { %2765 = vst [vmem:[#allocation3 + $0x124] sm:$0xf] %v2638_v40  ;;  %v1685_v22 = vor.u32 %v1684_v23, %v8897_v35  ;;  %v1004_v52 = vpack.c.bf16 %v953_v36, %v953_v36  ;;  %v1690_v40 = vrot.slane %v1688_v16, 5  ;;  %v9031_v35 = vld [vmem:[#allocation3 + $0x140] sm:$0xf0]  ;;  %v1005_v7 = vpack.c.bf16 %v954_v2, %v954_v2 }
 0x1e0   : > { %v2511_v53 = vrot.slane %v10471_v34, 4  ;;  %v1694_v1 = vrot.slane %v1692_v54, 4  ;;  %10472 = vst [vmem:[#allocation39_spill] sm:$0xff] %v9033_v30  ;;  %v9035_v3 = vld [vmem:[#allocation3 + $0x12c] sm:$0xf0]  ;;  %v4802_v23 = vrot.slane %v4801_v63, 4 }
 0x1e1   : > { %v1686_v45 = vrot.slane %v1685_v22, 4  ;;  %v1326_v24 = vshrl.u32 %v1004_v52, 16  ;;  %2347 = vst [vmem:[#allocation3 + $0x144] sm:$0xf] %v2315_v14  ;;  %v4473_v36 = vld [vmem:[#allocation2 + $0x88] sm:$0xf] }
 0x1e2   : > { %2766 = vst [vmem:[#allocation3 + $0x130] sm:$0xf] %v2648_v51  ;;  %v1335_v16 = vshrl.u32 %v1005_v7, 16  ;;  %v1695_v22 = vor.u32 %v1694_v1, %v1690_v40  ;;  %v2512_v54 = vor.u32 %v2511_v53, %v8933_v10  ;;  %v1329_v48 = vshll.u32 %v1004_v52, 16  ;;  %v1549_v52 = vld [vmem:[#allocation2 + $0x6c] sm:$0xf] }
 0x1e3   : > { %v1691_v2 = vsel %vm8111_vm13, %v1686_v45, %v1690_v40  ;;  %v1328_v34 = vrot.slane %v1326_v24, 7  ;;  %v2517_v26 = vrot.slane %v2515_v27, 5  ;;  %v2519_v30 = vshrl.u32 %v2365_v13, 16  ;;  %v6542_v47 = vld [vmem:[#allocation3 + $0x138] sm:$0xf] }
 0x1e4   : > { %1926 = vst [vmem:[#allocation3 + $0x94] sm:$0xf] %v1691_v2  ;;  %v9044_v39 = vrot.slane %v1335_v16, 7  ;;  %v1338_v15 = vshll.u32 %v1005_v7, 16  ;;  %v1696_v43 = vrot.slane %v1695_v22, 4  ;;  %v4674_v14 = vshll.u32 %v4524_v59, 16  ;;  %v630_v16 = vpop.f32.mrf.mxu0 }
 0x1e5   : > { %v4807_v51 = vsel %vm8111_vm13, %v4802_v23, %v9017_v12  ;;  %v1331_v45 = vor.u32 %v1329_v48, %v1328_v34  ;;  %4505 = vst [vmem:[#allocation3 + $0x138] sm:$0xf] %v4473_v36  ;;  %v2521_v40 = vrot.slane %v2519_v30, 4  ;;  %v10473_v10 = vshrl.u32 %v8919_v28, 16  ;;  %v9055_v24 = vld [vmem:[#allocation2 + $0x70] sm:$0xf] }
 0x1e6   : > { %v7433_v63 = vld [vmem:[#allocation3 + $0x124] sm:$0xf]  ;;  %v1333_v13 = vrot.slane %v1328_v34, 4  ;;  %v1340_v27 = vor.u32 %v1338_v15, %v9044_v39  ;;  %v1701_v7 = vsel %vm8111_vm13, %v1696_v43, %v8357_v9  ;;  %v2513_v1 = vrot.slane %v2512_v54, 4  ;;  %v7519_v30 = vld [vmem:[%s10383_s3 + $0x190] sm:$0xff] }
 0x1e7   : > { %v4670_v53 = vrot.slane %v10473_v10, 4  ;;  %4924 = vst [vmem:[#allocation3 + $0x124] sm:$0xf] %v4797_v61  ;;  %v10474_v28 = vrot.slane %v8904_v21, 4  ;;  %v2522_v23 = vor.u32 %v2521_v40, %v2517_v26  ;;  %v9064_v36 = vrot.slane %v4674_v14, 5  ;;  %5677 = vmatpush.bf16.msra.mxu0 %v7519_v30 }
 0x1e8   : > { %1927 = vst [vmem:[#allocation3 + $0xa0] sm:$0xf] %v1701_v7  ;;  %v4678_v2 = vshrl.u32 %v4524_v59, 16  ;;  %v1486_v22 = vld [vmem:[#allocation2 + $0x70] sm:$0xf]  ;;  %v4808_v9 = vshrl.u32 %v8982_v0, 16  ;;  %v1341_v34 = vsel %vm8084_vm10, %v1333_v13, %v1340_v27  ;;  %v2518_v48 = vsel %vm8111_vm13, %v2513_v1, %v2517_v26  ;;  %v9080_v27 = vpop.f32.mrf.mxu1 }
 0x1e9   : > { %v1332_v61 = vsel %vm8084_vm10, %v10474_v28, %v1331_v45  ;;  %v7437_v54 = vld [vmem:[#allocation3 + $0x140] sm:$0xf0]  ;;  %v10475_v21 = vshrl.u32 %v8941_v46, 16  ;;  %v2379_v43 = vld [vmem:[#allocation2 + $0x7c] sm:$0xf]  ;;  %v2523_v59 = vrot.slane %v2522_v23, 4  ;;  %v4671_v0 = vor.u32 %v4670_v53, %v8954_v38 }
 0x1ea   : > { %1450 = vst [vmem:[#allocation2 + $0x8c] sm:$0xf] %v1332_v61  ;;  %v1487_v45 = vld [vmem:[#allocation2 + $0x74] sm:$0xf]  ;;  %v6543_v40 = vor.u32 %v7437_v54, %v6542_v47  ;;  %v4680_v10 = vrot.slane %v4678_v2, 4  ;;  %v1828_v26 = vshll.u32 %v1549_v52, 16 }
 0x1eb   : > { %v1824_v15 = vrot.slane %v10475_v21, 4  ;;  %v6532_v14 = vld [vmem:[#allocation3 + $0x12c] sm:$0xf0]  ;;  %1451 = vst [vmem:[#allocation2 + $0x90] sm:$0xf] %v1341_v34  ;;  %v7518_v46 = vld [vmem:[%s10383_s3 + $0x188] sm:$0xff] }
 0x1ec   : > { %v6535_v7 = vor.u32 %v7433_v63, %v6532_v14  ;;  %4925 = vst [vmem:[#allocation3 + $0x130] sm:$0xf] %v4807_v51  ;;  %v9074_v28 = vld [vmem:[#allocation3 + $0x94] sm:$0xf]  ;;  %3586 = vmatmul.bf16.gmra.mxu3 %v6543_v40  ;;  %v1342_v47 = vrot.slane %v9044_v39, 4  ;;  %v4681_v38 = vor.u32 %v4680_v10, %v9064_v36  ;;  %v1832_v53 = vshrl.u32 %v1549_v52, 16  ;;  %5678 = vmatpush.bf16.msra.mxu0 %v7518_v46 }
 0x1ed   : > { %v1825_v13 = vor.u32 %v1824_v15, %v8979_v8  ;;  %10476 = vst [vmem:[#allocation40_spill] sm:$0xff] %v9080_v27  ;;  %v1838_v63 = vshll.u32 %v9055_v24, 16  ;;  %v9085_v51 = vld [vmem:[#allocation2 + $0x80] sm:$0xf]  ;;  %v2528_v8 = vsel %vm8111_vm13, %v2523_v59, %v8481_v60  ;;  %v1830_v30 = vrot.slane %v1828_v26, 5  ;;  %v633_v26 = vpop.f32.mrf.mxu0 }
 0x1ee   : > { %2753 = vst [vmem:[#allocation3 + $0x94] sm:$0xf] %v2518_v48  ;;  %3670 = vmatmul.bf16.gmra.mxu2 %v6535_v7  ;;  %v10477_v61 = vshrl.u32 %v8958_v18, 16  ;;  %v4672_v2 = vrot.slane %v4671_v0, 4  ;;  %v1834_v54 = vrot.slane %v1832_v53, 4  ;;  %v2655_v34 = vshll.u32 %v2379_v43, 16 }
 0x1ef   : > { %v1826_v1 = vrot.slane %v1825_v13, 4  ;;  %1518 = vst [vmem:[#allocation3 + $0x150] sm:$0xf] %v1486_v22  ;;  %v9095_v52 = vld [vmem:[%s10382_s2] ss:$0 sm:$0xff]  ;;  %v4682_v60 = vrot.slane %v4681_v38, 4 }
 0x1f0   : > { %v2651_v23 = vrot.slane %v10477_v61, 4  ;;  %v631_v48 = vadd.f32 %v9095_v52, %v630_v16  ;;  %1519 = vst [vmem:[#allocation3 + $0x15c] sm:$0xf] %v1487_v45  ;;  %v9098_v21 = vld [vmem:[#allocation3 + $0x9c] sm:$0xf0]  ;;  %v1842_v22 = vshrl.u32 %v9055_v24, 16  ;;  %v4677_v40 = vsel %vm8111_vm13, %v4672_v2, %v9064_v36 }
 0x1f1   : > { %v1831_v18 = vsel %vm8111_vm13, %v1826_v1, %v1830_v30  ;;  %v2659_v15 = vshrl.u32 %v2379_v43, 16  ;;  %v4474_v14 = vld [vmem:[#allocation2 + $0x8c] sm:$0xf]  ;;  %2754 = vst [vmem:[#allocation3 + $0xa0] sm:$0xf] %v2528_v8  ;;  %v1835_v59 = vor.u32 %v1834_v54, %v1830_v30  ;;  %v9106_v0 = vrot.slane %v1838_v63, 5  ;;  %v906_v30 = vpop.permute.xlu1 %905 }
 0x1f2   : > { %v2657_v16 = vrot.slane %v2655_v34, 5  ;;  %4506 = vst [vmem:[#allocation3 + $0x144] sm:$0xf] %v4474_v14  ;;  %v2652_v45 = vor.u32 %v2651_v23, %v9004_v50  ;;  %v2665_v7 = vshll.u32 %v9085_v51, 16  ;;  %v4810_v13 = vrot.slane %v4808_v9, 4  ;;  %v7462_v50 = vld [vmem:[%s10383_s3 + $0x148] sm:$0xff] }
 0x1f3   : > { %v2661_v10 = vrot.slane %v2659_v15, 4  ;;  %v1836_v24 = vrot.slane %v1835_v59, 4  ;;  %1940 = vst [vmem:[#allocation3 + $0x13c] sm:$0xf] %v1831_v18  ;;  %v4538_v43 = vld [vmem:[#allocation2 + $0x8c] sm:$0xf]  ;;  %v4687_v9 = vsel %vm8111_vm13, %v4682_v60, %v8570_v4  ;;  %v634_v54 = vadd.f32 %v9095_v52, %v633_v26  ;;  %3697 = vmatpush.bf16.msrb.mxu3 %v7462_v50  ;;  %v9129_v60 = vpop.f32.mrf.mxu1  ;;  %v911_v50 = vpop.permute.xlu2 %910 }
 0x1f4   : > { %v675_v46 = vmax.f32 %v631_v48, 0.0  ;;  %v2316_v38 = vld [vmem:[#allocation2 + $0x80] sm:$0xf]  ;;  %v9110_v36 = vld [vmem:[#allocation2 + $0x90] sm:$0xf]  ;;  %v4811_v63 = vor.u32 %v4810_v13, %v9017_v12  ;;  %v4814_v1 = vshll.u32 %v4538_v43, 16 }
 0x1f5   : > { %v7415_v53 = vld [vmem:[#allocation3 + $0x94] sm:$0xf]  ;;  %v2662_v8 = vor.u32 %v2661_v10, %v2657_v16  ;;  %v1841_v61 = vsel %vm8111_vm13, %v1836_v24, %v9106_v0  ;;  %v4818_v23 = vshrl.u32 %v4538_v43, 16  ;;  %v2317_v2 = vld [vmem:[#allocation2 + $0x84] sm:$0xf]  ;;  %v2653_v34 = vrot.slane %v2652_v45, 4 }
 0x1f6   : > { %4912 = vst [vmem:[#allocation3 + $0x94] sm:$0xf] %v4677_v40  ;;  %v7517_v12 = vld [vmem:[%s10383_s3 + $0x180] sm:$0xff]  ;;  %v9126_v48 = vrot.slane %v4814_v1, 5  ;;  %v4824_v18 = vshll.u32 %v9110_v36, 16  ;;  %v955_v4 = vmul.f32 %v906_v30, %v675_v46  ;;  %v9131_v15 = vrot.slane %v2665_v7, 5 }
 0x1f7   : > { %1941 = vst [vmem:[#allocation3 + $0x148] sm:$0xf] %v1841_v61  ;;  %v2669_v14 = vshrl.u32 %v9085_v51, 16  ;;  %v4820_v40 = vrot.slane %v4818_v23, 4  ;;  %v4828_v59 = vshrl.u32 %v9110_v36, 16  ;;  %5679 = vmatpush.bf16.msra.mxu0 %v7517_v12  ;;  %v2658_v45 = vsel %vm8111_vm13, %v2653_v34, %v2657_v16  ;;  %v635_v34 = vpop.f32.mrf.mxu0 }
 0x1f8   : > { %v9135_v10 = vld [vmem:[#allocation3 + $0x150] sm:$0xf]  ;;  %v6460_v13 = vld [vmem:[#allocation3 + $0x9c] sm:$0xf0]  ;;  %v2663_v26 = vrot.slane %v2662_v8, 4  ;;  %v9139_v24 = vrot.slane %v4811_v63, 4  ;;  %v1006_v43 = vpack.c.bf16 %v955_v4, %v955_v4 }
 0x1f9   : > { %2348 = vst [vmem:[#allocation3 + $0x150] sm:$0xf] %v2316_v38  ;;  %v6463_v46 = vor.u32 %v7415_v53, %v6460_v13  ;;  %v4821_v7 = vor.u32 %v4820_v40, %v9126_v48  ;;  %v9142_v51 = vld [vmem:[#allocation3 + $0x158] sm:$0xf0]  ;;  %v676_v1 = vmax.f32 %v634_v54, 0.0  ;;  %v1844_v36 = vrot.slane %v1842_v22, 4 }
 0x1fa   : > { %4913 = vst [vmem:[#allocation3 + $0xa0] sm:$0xf] %v4687_v9  ;;  %v9144_v30 = vld [vmem:[#allocation3 + $0x13c] sm:$0xf]  ;;  %v9146_v61 = vrot.slane %v4824_v18, 5  ;;  %v1344_v23 = vshrl.u32 %v1006_v43, 16  ;;  %v2668_v16 = vsel %vm8111_vm13, %v2663_v26, %v9131_v15 }
 0x1fb   : > { %2349 = vst [vmem:[#allocation3 + $0x15c] sm:$0xf] %v2317_v2  ;;  %3640 = vmatmul.bf16.gmra.mxu0 %v6463_v46  ;;  %v1347_v38 = vshll.u32 %v1006_v43, 16  ;;  %v4475_v53 = vld [vmem:[#allocation2 + $0x90] sm:$0xf]  ;;  %v956_v8 = vmul.f32 %v911_v50, %v676_v1  ;;  %v1845_v63 = vor.u32 %v1844_v36, %v9106_v0  ;;  %v2671_v12 = vrot.slane %v2669_v14, 4 }
 0x1fc   : > { %2767 = vst [vmem:[#allocation3 + $0x13c] sm:$0xf] %v2658_v45  ;;  %v1346_v9 = vrot.slane %v1344_v23, 7  ;;  %v1551_v22 = vld [vmem:[#allocation2 + $0x74] sm:$0xf]  ;;  %v4817_v2 = vsel %vm8111_vm13, %v9139_v24, %v9126_v48  ;;  %v4822_v4 = vrot.slane %v4821_v7, 4  ;;  %v636_v48 = vadd.f32 %v9095_v52, %v635_v34 }
 0x1fd   : > { %v9152_v54 = vld [vmem:[#allocation2 + $0x78] sm:$0xf]  ;;  %v1007_v40 = vpack.c.bf16 %v956_v8, %v956_v8  ;;  %v1848_v13 = vshll.u32 %v1551_v22, 16  ;;  %v2381_v45 = vld [vmem:[#allocation2 + $0x84] sm:$0xf]  ;;  %v1852_v0 = vshrl.u32 %v1551_v22, 16  ;;  %v9174_v8 = vpop.f32.mrf.mxu1 }
 0x1fe   : > { %v9154_v18 = vld [vmem:[#allocation3 + $0x144] sm:$0xf0]  ;;  %v1349_v26 = vor.u32 %v1347_v38, %v1346_v9  ;;  %v1858_v43 = vshll.u32 %v9152_v54, 16  ;;  %v9161_v46 = vrot.slane %v4828_v59, 4  ;;  %v1846_v50 = vrot.slane %v1845_v63, 4  ;;  %10478 = vst [vmem:[#allocation41_spill] sm:$0xff] %v9174_v8 }
 0x1ff   : > { %2768 = vst [vmem:[#allocation3 + $0x148] sm:$0xf] %v2668_v16  ;;  %v7382_v14 = vld [vmem:[%s10383_s3 + $0x48] sm:$0xff]  ;;  %v1353_v36 = vshrl.u32 %v1007_v40, 16  ;;  %v1850_v23 = vrot.slane %v1848_v13, 5  ;;  %v1356_v7 = vshll.u32 %v1007_v40, 16  ;;  %v2672_v38 = vor.u32 %v2671_v12, %v9131_v15 }
 0x200   : > { %v6554_v1 = vld [vmem:[#allocation3 + $0x150] sm:$0xf]  ;;  %v1350_v24 = vsel %vm8084_vm10, %v1342_v47, %v1349_v26  ;;  %v1854_v16 = vrot.slane %v1852_v0, 4  ;;  %v9171_v59 = vld [vmem:[#allocation2 + $0x88] sm:$0xf]  ;;  %4275 = vmatpush.bf16.msrb.mxu2 %v7382_v14  ;;  %v4827_v63 = vsel %vm8111_vm13, %v4822_v4, %v9146_v61  ;;  %v9183_v13 = vrot.slane %v1858_v43, 5 }
 0x201   : > { %4507 = vst [vmem:[#allocation3 + $0x150] sm:$0xf] %v4475_v53  ;;  %v9179_v39 = vrot.slane %v1353_v36, 7  ;;  %v1851_v47 = vsel %vm8111_vm13, %v1846_v50, %v1850_v23  ;;  %v2675_v53 = vshll.u32 %v2381_v45, 16  ;;  %v2679_v15 = vshrl.u32 %v2381_v45, 16  ;;  %v7461_v14 = vld [vmem:[%s10383_s3 + $0x140] sm:$0xff] }
 0x202   : > { %1452 = vst [vmem:[#allocation2 + $0x94] sm:$0xf] %v1350_v24  ;;  %v7440_v52 = vld [vmem:[#allocation3 + $0x158] sm:$0xf0]  ;;  %v1855_v40 = vor.u32 %v1854_v16, %v1850_v23  ;;  %v1351_v12 = vrot.slane %v1346_v9, 4  ;;  %v1862_v4 = vshrl.u32 %v9152_v54, 16  ;;  %3698 = vmatpush.bf16.msrb.mxu3 %v7461_v14  ;;  %v916_v24 = vpop.permute.xlu0 %915 }
 0x203   : > { %v7436_v22 = vld [vmem:[#allocation3 + $0x13c] sm:$0xf]  ;;  %v6555_v34 = vor.u32 %v7440_v52, %v6554_v1  ;;  %1942 = vst [vmem:[#allocation3 + $0x154] sm:$0xf] %v1851_v47  ;;  %v1358_v26 = vor.u32 %v1356_v7, %v9179_v39  ;;  %v2677_v0 = vrot.slane %v2675_v53, 5  ;;  %v2673_v50 = vrot.slane %v2672_v38, 4 }
 0x204   : > { %4926 = vst [vmem:[#allocation3 + $0x13c] sm:$0xf] %v4817_v2  ;;  %v1856_v36 = vrot.slane %v1855_v40, 4  ;;  %v2681_v1 = vrot.slane %v2679_v15, 4  ;;  %v2685_v43 = vshll.u32 %v9171_v59, 16  ;;  %v1360_v9 = vrot.slane %v9179_v39, 4 }
 0x205   : > { %3591 = vmatmul.bf16.gmra.mxu3 %v6555_v34  ;;  %v1359_v2 = vsel %vm8084_vm10, %v1351_v12, %v1358_v26  ;;  %v2689_v45 = vshrl.u32 %v9171_v59, 16  ;;  %v677_v54 = vmax.f32 %v636_v48, 0.0  ;;  %v7011_v16 = vld [vmem:[#allocation3] sm:$0xf]  ;;  %v7470_v52 = vld [vmem:[#allocation3 + $0x8] sm:$0xf0]  ;;  %v6747_v53 = vor.u32 %v8432_v6, %v8397_v57  ;;  %v9206_v14 = vpop.f32.mrf.mxu1 }
 0x206   : > { %v6544_v23 = vld [vmem:[#allocation3 + $0x144] sm:$0xf0]  ;;  %v1861_v38 = vsel %vm8111_vm13, %v1856_v36, %v9183_v13  ;;  %v2682_v47 = vor.u32 %v2681_v1, %v2677_v0  ;;  %1453 = vst [vmem:[#allocation2 + $0x98] sm:$0xf] %v1359_v2  ;;  %v2678_v34 = vsel %vm8111_vm13, %v2673_v50, %v2677_v0  ;;  %v4831_v48 = vor.u32 %v9161_v46, %v9146_v61  ;;  %v2384_v59 = vld [vmem:[#allocation2 + $0x90] sm:$0x1] }
 0x207   : > { %v6547_v7 = vor.u32 %v7436_v22, %v6544_v23  ;;  %4927 = vst [vmem:[#allocation3 + $0x148] sm:$0xf] %v4827_v63  ;;  %v957_v40 = vmul.f32 %v916_v24, %v677_v54  ;;  %v1488_v22 = vld [vmem:[#allocation2 + $0x78] sm:$0xf]  ;;  %v1489_v63 = vld [vmem:[#allocation2 + $0x7c] sm:$0xf]  ;;  %4218 = vmatmul.bf16.gmra.mxu1 %v6747_v53  ;;  %v7012_v6 = vor.u32 %v7470_v52, %v7011_v16  ;;  %v3646_v24 = vpop.f32.mrf.mxu2 }
 0x208   : > { %1943 = vst [vmem:[#allocation3 + $0x160] sm:$0xf] %v1861_v38  ;;  %v9204_v12 = vrot.slane %v2685_v43, 5  ;;  %v4450_v26 = vld [vmem:[#allocation2 + $0x2c] sm:$0xf]  ;;  %v1864_v57 = vrot.slane %v1862_v4, 4  ;;  %v9215_v38 = vadd.f32 %v3646_v24, %v9129_v60 }
 0x209   : > { %3675 = vmatmul.bf16.gmra.mxu2 %v6547_v7  ;;  %v4476_v15 = vld [vmem:[#allocation2 + $0x94] sm:$0xf]  ;;  %v1008_v50 = vpack.c.bf16 %v957_v40, %v957_v40  ;;  %v2683_v61 = vrot.slane %v2682_v47, 4  ;;  %v4832_v43 = vrot.slane %v4831_v48, 4  ;;  %1520 = vst [vmem:[#allocation3 + $0x168] sm:$0xf] %v1488_v22 }
 0x20a   : > { %4508 = vst [vmem:[#allocation3 + $0x15c] sm:$0xf] %v4476_v15  ;;  %v9208_v36 = vld [vmem:[#allocation3 + $0x154] sm:$0xf]  ;;  %v4540_v0 = vld [vmem:[#allocation2 + $0x94] sm:$0xf]  ;;  %v1865_v23 = vor.u32 %v1864_v57, %v9183_v13 }
 0x20b   : > { %10479 = vst [vmem:[#allocation42_spill] sm:$0xff] %v9208_v36  ;;  %v4834_v46 = vshll.u32 %v4540_v0, 16  ;;  %v4838_v1 = vshrl.u32 %v4540_v0, 16  ;;  %5680 = vmatmul.bf16.vlgmr.msra.gmra.mxu0 %v7012_v6  ;;  %v1362_v2 = vshrl.u32 %v1008_v50, 16  ;;  %v1553_v54 = vld [vmem:[#allocation2 + $0x7c] sm:$0xf]  ;;  %v2688_v4 = vsel %vm8111_vm13, %v2683_v61, %v9204_v12 }
 0x20c   : > { %2769 = vst [vmem:[#allocation3 + $0x154] sm:$0xf] %v2678_v34  ;;  %v1554_v52 = vld [vmem:[#allocation2 + $0x80] sm:$0x1]  ;;  %v1365_v53 = vshll.u32 %v1008_v50, 16  ;;  %v1868_v13 = vshll.u32 %v1553_v54, 16 }
 0x20d   : > { %v4836_v7 = vrot.slane %v4834_v46, 5  ;;  %v4840_v16 = vrot.slane %v4838_v1, 4  ;;  %1521 = vst [vmem:[#allocation3 + $0x174] sm:$0xf] %v1489_v63  ;;  %v1364_v47 = vrot.slane %v1362_v2, 7  ;;  %v1872_v34 = vshrl.u32 %v1553_v54, 16 }
 0x20e   : > { %10480 = vst [vmem:[#allocation43_spill] sm:$0xff] %v9215_v38  ;;  %v4541_v48 = vld [vmem:[#allocation2 + $0x98] sm:$0xf]  ;;  %v1455_v22 = vld [vmem:[#allocation2 + $0xa0] sm:$0x1]  ;;  %v1866_v15 = vrot.slane %v1865_v23, 4 }
 0x20f   : > { %4482 = vst [vmem:[#allocation3 + $0x24] sm:$0xf] %v4450_v26  ;;  %v4837_v40 = vsel %vm8111_vm13, %v4832_v43, %v4836_v7  ;;  %v1878_v57 = vshll.u32 %v1554_v52, 16  ;;  %v9219_v6 = vld [vmem:[#allocation3 + $0x15c] sm:$0xf0]  ;;  %v4841_v0 = vor.u32 %v4840_v16, %v4836_v7  ;;  %v4844_v63 = vshll.u32 %v4541_v48, 16 }
 0x210   : > { %v1367_v61 = vor.u32 %v1365_v53, %v1364_v47  ;;  %v1369_v46 = vrot.slane %v1364_v47, 4  ;;  %2770 = vst [vmem:[#allocation3 + $0x160] sm:$0xf] %v2688_v4  ;;  %v4848_v60 = vshrl.u32 %v4541_v48, 16  ;;  %v2318_v1 = vld [vmem:[#allocation2 + $0x88] sm:$0xf] }
 0x211   : > { %v1870_v50 = vrot.slane %v1868_v13, 5  ;;  %v1874_v26 = vrot.slane %v1872_v34, 4  ;;  %v2691_v2 = vrot.slane %v2689_v45, 4  ;;  %v9223_v24 = vrot.slane %v4844_v63, 5  ;;  %v2319_v16 = vld [vmem:[#allocation2 + $0x8c] sm:$0xf]  ;;  %v9233_v45 = vpop.f32.mrf.mxu1 }
 0x212   : > { %v1368_v23 = vsel %vm8084_vm10, %v1360_v9, %v1367_v61  ;;  %v1456_v7 = vsel %vm8024_vm4, %v1369_v46, %v1455_v22  ;;  %v1880_v4 = vrot.slane %v1878_v57, 5  ;;  %v2383_v52 = vld [vmem:[#allocation2 + $0x8c] sm:$0xf]  ;;  %10482 = vst [vmem:[#allocation7_spill] sm:$0xff] %v9233_v45  ;;  %v4842_v13 = vrot.slane %v4841_v0, 4  ;;  %v9237_v9 = vpop.f32.mrf.mxu2 }
 0x213   : > { %v7439_v54 = vld [vmem:[#allocation3 + $0x154] sm:$0xf]  ;;  %v9231_v47 = vld [vmem:[#allocation3 + $0x168] sm:$0xf]  ;;  %v1875_v53 = vor.u32 %v1874_v26, %v1870_v50  ;;  %1454 = vst [vmem:[#allocation2 + $0x9c] sm:$0xf] %v1368_v23  ;;  %v1871_v22 = vsel %vm8111_vm13, %v1866_v15, %v1870_v50  ;;  %v2692_v0 = vor.u32 %v2691_v2, %v9204_v12 }
 0x214   : > { %4928 = vst [vmem:[#allocation3 + $0x154] sm:$0xf] %v4837_v40  ;;  %v9235_v34 = vld [vmem:[#allocation3 + $0x170] sm:$0xf0]  ;;  %v2695_v39 = vshll.u32 %v2383_v52, 16  ;;  %v2699_v57 = vshrl.u32 %v2383_v52, 16  ;;  %v4847_v63 = vsel %vm8111_vm13, %v4842_v13, %v9223_v24 }
 0x215   : > { %10483 = vst [vmem:[#allocation44_spill] sm:$0xff] %v9237_v9  ;;  %v1876_v40 = vrot.slane %v1875_v53, 4  ;;  %v2705_v46 = vshll.u32 %v2384_v59, 16  ;;  %v7381_v26 = vld [vmem:[%s10383_s3 + $0x40] sm:$0xff]  ;;  %v7023_v23 = vld [vmem:[#allocation3 + $0x18] sm:$0xf] }
 0x216   : > { %1457 = vst [vmem:[#allocation2 + $0xa0] sm:$0x1] %v1456_v7  ;;  %v7473_v48 = vld [vmem:[#allocation3 + $0x20] sm:$0xf0]  ;;  %v2697_v61 = vrot.slane %v2695_v39, 5  ;;  %v2701_v50 = vrot.slane %v2699_v57, 4  ;;  %4276 = vmatpush.bf16.msrb.mxu2 %v7381_v26 }
 0x217   : > { %2350 = vst [vmem:[#allocation3 + $0x168] sm:$0xf] %v2318_v1  ;;  %v1881_v15 = vsel %vm8111_vm13, %v1876_v40, %v1880_v4  ;;  %v1947_v43 = vld [vmem:[#allocation2 + $0x4] sm:$0xf]  ;;  %v10484_v7 = vld [vmem:[#allocation16_spill] sm:$0xff]  ;;  %v10485_v52 = vld [vmem:[#allocation17_spill] sm:$0xff]  ;;  %v7024_v57 = vor.u32 %v7473_v48, %v7023_v23 }
 0x218   : > { %2351 = vst [vmem:[#allocation3 + $0x174] sm:$0xf] %v2319_v16  ;;  %v6759_v53 = vor.u32 %v10485_v52, %v10484_v7  ;;  %v6556_v1 = vld [vmem:[#allocation3 + $0x15c] sm:$0xf0]  ;;  %v4850_v12 = vrot.slane %v4848_v60, 4  ;;  %v2702_v13 = vor.u32 %v2701_v50, %v2697_v61  ;;  %v6334_v4 = vrot.slane %v1946_v33, 9 }
 0x219   : > { %1944 = vst [vmem:[#allocation3 + $0x16c] sm:$0xf] %v1871_v22  ;;  %v6559_v2 = vor.u32 %v7439_v54, %v6556_v1  ;;  %v4477_v59 = vld [vmem:[#allocation2 + $0x98] sm:$0xf]  ;;  %v9252_v16 = vld [vmem:[#allocation2 + $0x8] sm:$0xf]  ;;  %v9261_v52 = vpop.f32.mrf.mxu1 }
 0x21a   : > { %4929 = vst [vmem:[#allocation3 + $0x160] sm:$0xf] %v4847_v63  ;;  %v2017_v40 = vrot.slane %v1947_v43, 5  ;;  %4223 = vmatmul.bf16.gmra.mxu1 %v6759_v53  ;;  %v2693_v7 = vrot.slane %v2692_v0, 4  ;;  %v2707_v22 = vrot.slane %v2705_v46, 5  ;;  %v2020_v60 = vrot.slane %v9252_v16, 5  ;;  %v3651_v48 = vpop.f32.mrf.mxu2 }
 0x21b   : > { %1945 = vst [vmem:[#allocation3 + $0x178] sm:$0xf] %v1881_v15  ;;  %3680 = vmatmul.bf16.gmra.mxu2 %v6559_v2  ;;  %v4478_v54 = vld [vmem:[#allocation2 + $0x9c] sm:$0xf]  ;;  %v2773_v50 = vld [vmem:[#allocation2 + $0x10] sm:$0xe]  ;;  %5685 = vmatmul.bf16.gmra.mxu0 %v7024_v57  ;;  %v4851_v15 = vor.u32 %v4850_v12, %v9223_v24  ;;  %v9269_v57 = vadd.f32 %v3651_v48, %v9206_v14 }
 0x21c   : > { %v4542_v63 = vld [vmem:[#allocation2 + $0x9c] sm:$0xf]  ;;  %v2018_v26 = vsel %vm9254_vm0, %v6334_v4, %v2017_v40  ;;  %v2703_v1 = vrot.slane %v2702_v13, 4  ;;  %v2019_v53 = vrot.slane %v2017_v40, 4  ;;  %v2698_v46 = vsel %vm8111_vm13, %v2693_v7, %v2697_v61  ;;  %v2774_v2 = vld [vmem:[#allocation2 + $0x14] sm:$0xf] }
 0x21d   : > { %v4854_v33 = vshll.u32 %v4542_v63, 16  ;;  %v4858_v43 = vshrl.u32 %v4542_v63, 16  ;;  %2144 = vst [vmem:[#allocation3 + $0x8] sm:$0xf] %v2018_v26  ;;  %v4543_v23 = vld [vmem:[#allocation2 + $0xa0] sm:$0x1] }
 0x21e   : > { %v6566_v0 = vld [vmem:[#allocation3 + $0x168] sm:$0xf]  ;;  %v2021_v13 = vsel %vm9254_vm0, %v2019_v53, %v2020_v60  ;;  %10488 = vst [vmem:[#allocation16_spill] sm:$0xff] %v9269_v57  ;;  %v2708_v61 = vsel %vm8111_vm13, %v2703_v1, %v2707_v22  ;;  %v6335_v7 = vrot.slane %v2773_v50, 9  ;;  %v2841_v24 = vrot.slane %v2774_v2, 5  ;;  %v10494_v9 = vld [vmem:[#allocation21_spill] sm:$0xff] }
 0x21f   : > { %v7443_v16 = vld [vmem:[#allocation3 + $0x170] sm:$0xf0]  ;;  %4509 = vst [vmem:[#allocation3 + $0x168] sm:$0xf] %v4477_v59  ;;  %v4856_v4 = vrot.slane %v4854_v33, 5  ;;  %v4860_v45 = vrot.slane %v4858_v43, 4 }
 0x220   : > { %v6567_v40 = vor.u32 %v7443_v16, %v6566_v0  ;;  %4510 = vst [vmem:[#allocation3 + $0x174] sm:$0xf] %v4478_v54  ;;  %v9271_v63 = vld [vmem:[#allocation3 + $0x16c] sm:$0xf]  ;;  %v9275_v59 = vld [vmem:[#allocation2 + $0x18] sm:$0xf]  ;;  %v2842_v14 = vsel %vm9254_vm0, %v6335_v7, %v2841_v24 }
 0x221   : > { %10489 = vst [vmem:[#allocation17_spill] sm:$0xff] %v9271_v63  ;;  %v4861_v12 = vor.u32 %v4860_v45, %v4856_v4  ;;  %v4864_v33 = vshll.u32 %v4543_v23, 16  ;;  %v2844_v54 = vrot.slane %v9275_v59, 5  ;;  %v4933_v43 = vld [vmem:[#allocation2 + $0x24] sm:$0xf]  ;;  %v4852_v53 = vrot.slane %v4851_v15, 4  ;;  %v9287_v1 = vpop.f32.mrf.mxu1 }
 0x222   : > { %2771 = vst [vmem:[#allocation3 + $0x16c] sm:$0xf] %v2698_v46  ;;  %3596 = vmatmul.bf16.gmra.mxu3 %v6567_v40  ;;  %v9277_v26 = vld [vmem:[#allocation3 + $0x174] sm:$0xf0]  ;;  %v2843_v48 = vrot.slane %v2841_v24, 4  ;;  %v9289_v46 = vpop.f32.mrf.mxu2  ;;  %v5000_v15 = vrot.slane %v4933_v43, 5 }
 0x223   : > { %10490 = vst [vmem:[#allocation45_spill] sm:$0xff] %v9277_v26  ;;  %v4862_v22 = vrot.slane %v4861_v12, 4  ;;  %v7396_v45 = vld [vmem:[%s10383_s3 + $0xb8] sm:$0xff]  ;;  %v4932_v0 = vld [vmem:[#allocation2 + $0x20] sm:$0xe]  ;;  %v4857_v23 = vsel %vm8111_vm13, %v4852_v53, %v4856_v4  ;;  %v4866_v2 = vrot.slane %v4864_v33, 5 }
 0x224   : > { %2145 = vst [vmem:[#allocation3 + $0x14] sm:$0xf] %v2021_v13  ;;  %v9282_v50 = vld [vmem:[#allocation3 + $0x8] sm:$0xf]  ;;  %v9293_v16 = vld [vmem:[#allocation2 + $0x28] sm:$0xf]  ;;  %4358 = vmatpush.bf16.msra.mxu3 %v7396_v45  ;;  %v2845_v40 = vsel %vm9254_vm0, %v2843_v48, %v2844_v54 }
 0x225   : > { %2772 = vst [vmem:[#allocation3 + $0x178] sm:$0xf] %v2708_v61  ;;  %v1949_v13 = vld [vmem:[#allocation2 + $0xc] sm:$0xf]  ;;  %v7476_v61 = vld [vmem:[#allocation3 + $0x38] sm:$0xf0] }
 0x226   : > { %10491 = vst [vmem:[#allocation46_spill] sm:$0xff] %v9282_v50  ;;  %v1950_v7 = vld [vmem:[#allocation2 + $0x10] sm:$0xf]  ;;  %v2022_v12 = vrot.slane %v2020_v60, 4  ;;  %v2023_v24 = vrot.slane %v1949_v13, 5  ;;  %v10493_v53 = vld [vmem:[#allocation19_spill] sm:$0xff]  ;;  %v3567_v60 = vpop.f32.mrf.mxu3 }
 0x227   : > { %2968 = vst [vmem:[#allocation3 + $0x8] sm:$0xf] %v2842_v14  ;;  %v4867_v14 = vsel %vm8111_vm13, %v4862_v22, %v4866_v2  ;;  %v7035_v57 = vld [vmem:[#allocation3 + $0x30] sm:$0xf]  ;;  %v2026_v4 = vrot.slane %v1950_v7, 5  ;;  %v6771_v43 = vor.u32 %v10494_v9, %v10493_v53  ;;  %v7540_v22 = vld [vmem:[%s10383_s3 + $0x238] sm:$0xff] }
 0x228   : > { %10492 = vst [vmem:[#allocation47_spill] sm:$0xff] %v9289_v46  ;;  %v6960_v46 = vrot.slane %v4932_v0, 9  ;;  %v2776_v33 = vld [vmem:[#allocation2 + $0x1c] sm:$0xf]  ;;  %v2024_v48 = vsel %vm9254_vm0, %v2022_v12, %v2023_v24  ;;  %v2025_v8 = vrot.slane %v2023_v24, 4  ;;  %v7036_v2 = vor.u32 %v7476_v61, %v7035_v57  ;;  %5850 = vmatpush.bf16.msra.mxu2 %v7540_v22 }
 0x229   : > { %v7442_v59 = vld [vmem:[#allocation3 + $0x16c] sm:$0xf]  ;;  %2146 = vst [vmem:[#allocation3 + $0x20] sm:$0xf] %v2024_v48  ;;  %v9315_v24 = vpop.f32.mrf.mxu1  ;;  %v5002_v53 = vrot.slane %v5000_v15, 4 }
 0x22a   : > { %4930 = vst [vmem:[#allocation3 + $0x16c] sm:$0xf] %v4857_v23  ;;  %v5001_v20 = vsel %vm9254_vm0, %v6960_v46, %v5000_v15  ;;  %4228 = vmatmul.bf16.gmra.mxu1 %v6771_v43  ;;  %v5003_v23 = vrot.slane %v9293_v16, 5  ;;  %v2027_v7 = vsel %vm9254_vm0, %v2025_v8, %v2026_v4  ;;  %v2847_v46 = vrot.slane %v2776_v33, 5  ;;  %v3656_v16 = vpop.f32.mrf.mxu2  ;;  %v9322_v8 = vpop.f32.mrf.mxu0  ;;  %v1951_v43 = vld [vmem:[#allocation2 + $0x14] sm:$0xf] }
 0x22b   : > { %v9301_v45 = vld [vmem:[#allocation3 + $0x10] sm:$0xf0]  ;;  %5690 = vmatmul.bf16.gmra.mxu0 %v7036_v2  ;;  %2147 = vst [vmem:[#allocation3 + $0x2c] sm:$0xf] %v2027_v7  ;;  %v9320_v57 = vadd.f32 %v3656_v16, %v3567_v60  ;;  %v2029_v22 = vrot.slane %v1951_v43, 5 }
 0x22c   : > { %10495 = vst [vmem:[#allocation19_spill] sm:$0xff] %v9301_v45  ;;  %v6568_v13 = vld [vmem:[#allocation3 + $0x174] sm:$0xf0]  ;;  %v5004_v61 = vsel %vm9254_vm0, %v5002_v53, %v5003_v23  ;;  %v1952_v15 = vld [vmem:[#allocation2 + $0x18] sm:$0xf]  ;;  %v2849_v48 = vrot.slane %v2847_v46, 4 }
 0x22d   : > { %2969 = vst [vmem:[#allocation3 + $0x14] sm:$0xf] %v2845_v40  ;;  %v6571_v0 = vor.u32 %v7442_v59, %v6568_v13  ;;  %v2777_v40 = vld [vmem:[#allocation2 + $0x20] sm:$0xf]  ;;  %v7532_v59 = vld [vmem:[%s10383_s3 + $0x1f8] sm:$0xff] }
 0x22e   : > { %4931 = vst [vmem:[#allocation3 + $0x178] sm:$0xf] %v4867_v14  ;;  %v6394_v12 = vld [vmem:[#allocation3 + $0x8] sm:$0xf]  ;;  %v2846_v14 = vrot.slane %v2844_v54, 4  ;;  %v2850_v33 = vrot.slane %v2777_v40, 5  ;;  %5761 = vmatpush.bf16.msra.mxu1 %v7532_v59  ;;  %v9336_v43 = vpop.f32.mrf.mxu3 }
 0x22f   : > { %3685 = vmatmul.bf16.gmra.mxu2 %v6571_v0  ;;  %5127 = vst [vmem:[#allocation3 + $0x8] sm:$0xf] %v5001_v20  ;;  %v4935_v13 = vld [vmem:[#allocation2 + $0x2c] sm:$0xf]  ;;  %v2028_v20 = vrot.slane %v2026_v4, 4  ;;  %v2032_v0 = vrot.slane %v1952_v15, 5 }
 0x230   : > { %10496 = vst [vmem:[#allocation21_spill] sm:$0xff] %v9320_v57  ;;  %v2848_v60 = vsel %vm9254_vm0, %v2846_v14, %v2847_v46  ;;  %v2778_v7 = vld [vmem:[#allocation2 + $0x24] sm:$0xf]  ;;  %v1953_v16 = vld [vmem:[#allocation2 + $0x1c] sm:$0xf]  ;;  %v2031_v40 = vrot.slane %v2029_v22, 4  ;;  %v2851_v4 = vsel %vm9254_vm0, %v2849_v48, %v2850_v33 }
 0x231   : > { %v2030_v54 = vsel %vm9254_vm0, %v2028_v20, %v2029_v22  ;;  %v9330_v53 = vld [vmem:[#allocation2 + $0x28] sm:$0xf]  ;;  %v9332_v59 = vld [vmem:[#allocation3 + $0x20] sm:$0xf]  ;;  %10498 = vst [vmem:[#allocation49_spill] sm:$0xff] %v9336_v43  ;;  %v2034_v15 = vrot.slane %v2032_v0, 4  ;;  %v9340_v20 = vpop.f32.mrf.mxu1 }
 0x232   : > { %10497 = vst [vmem:[#allocation48_spill] sm:$0xff] %v9332_v59  ;;  %v2035_v46 = vrot.slane %v1953_v16, 5  ;;  %v2853_v14 = vrot.slane %v2778_v7, 5  ;;  %v9342_v22 = vld [vmem:[#allocation3 + $0x28] sm:$0xf0]  ;;  %v9344_v57 = vpop.f32.mrf.mxu2  ;;  %v2852_v16 = vrot.slane %v2850_v33, 4 }
 0x233   : > { %2148 = vst [vmem:[#allocation3 + $0x38] sm:$0xf] %v2030_v54  ;;  %v5005_v7 = vrot.slane %v5003_v23, 4  ;;  %v4937_v50 = vld [vmem:[#allocation2 + $0x34] sm:$0xf] }
 0x234   : > { %v7399_v2 = vld [vmem:[#allocation3 + $0x10] sm:$0xf0]  ;;  %2970 = vst [vmem:[#allocation3 + $0x20] sm:$0xf] %v2848_v60  ;;  %v2036_v48 = vsel %vm9254_vm0, %v2034_v15, %v2035_v46  ;;  %v10501_v15 = vld [vmem:[#allocation24_spill] sm:$0xff]  ;;  %v5012_v63 = vrot.slane %v4937_v50, 5 }
 0x235   : > { %v6395_v9 = vor.u32 %v7399_v2, %v6394_v12  ;;  %5128 = vst [vmem:[#allocation3 + $0x14] sm:$0xf] %v5004_v61  ;;  %v4936_v12 = vld [vmem:[#allocation2 + $0x30] sm:$0xf]  ;;  %v2033_v61 = vsel %vm9254_vm0, %v2031_v40, %v2032_v0  ;;  %v5006_v2 = vrot.slane %v4935_v13, 5  ;;  %v2854_v40 = vsel %vm9254_vm0, %v2852_v16, %v2853_v14  ;;  %v10504_v59 = vld [vmem:[#allocation9_spill] sm:$0xff] }
 0x236   : > { %10499 = vst [vmem:[#allocation50_spill] sm:$0xff] %v9342_v22  ;;  %v7395_v0 = vld [vmem:[%s10383_s3 + $0xb0] sm:$0xff]  ;;  %v5009_v54 = vrot.slane %v4936_v12, 5  ;;  %v7479_v13 = vld [vmem:[#allocation3 + $0x50] sm:$0xf0] }
 0x237   : > { %3699 = vmatmul.bf16.vlgmr.msrb.gmra.mxu3 %v6395_v9  ;;  %2149 = vst [vmem:[#allocation3 + $0x44] sm:$0xf] %v2033_v61  ;;  %v2856_v9 = vrot.slane %v9330_v53, 5  ;;  %v2855_v61 = vrot.slane %v2853_v14, 4  ;;  %v9358_v53 = vpop.f32.mrf.mxu0  ;;  %v5008_v43 = vrot.slane %v5006_v2, 4  ;;  %v2037_v14 = vrot.slane %v2035_v46, 4 }
 0x238   : > { %10500 = vst [vmem:[#allocation51_spill] sm:$0xff] %v9344_v57  ;;  %4359 = vmatpush.bf16.msra.mxu3 %v7395_v0  ;;  %v5007_v57 = vsel %vm9254_vm0, %v5005_v7, %v5006_v2  ;;  %v1954_v60 = vld [vmem:[#allocation2 + $0x20] sm:$0xf]  ;;  %v7047_v23 = vld [vmem:[#allocation3 + $0x48] sm:$0xf] }
 0x239   : > { %2971 = vst [vmem:[#allocation3 + $0x2c] sm:$0xf] %v2851_v4  ;;  %v10502_v4 = vld [vmem:[#allocation27_spill] sm:$0xff]  ;;  %v2038_v16 = vrot.slane %v1954_v60, 5  ;;  %v5010_v22 = vsel %vm9254_vm0, %v5008_v43, %v5009_v54  ;;  %v7048_v7 = vor.u32 %v7479_v13, %v7047_v23  ;;  %v4938_v2 = vld [vmem:[#allocation2 + $0x38] sm:$0xf]  ;;  %v9372_v26 = vpop.f32.mrf.mxu1 }
 0x23a   : > { %2150 = vst [vmem:[#allocation3 + $0x50] sm:$0xf] %v2036_v48  ;;  %v6783_v33 = vor.u32 %v10502_v4, %v10501_v15  ;;  %v9362_v12 = vld [vmem:[#allocation3 + $0x38] sm:$0xf]  ;;  %v2857_v48 = vsel %vm9254_vm0, %v2855_v61, %v2856_v9  ;;  %v10505_v15 = vld [vmem:[#allocation8_spill] sm:$0xff]  ;;  %v3661_v61 = vpop.f32.mrf.mxu2  ;;  %v5015_v13 = vrot.slane %v4938_v2, 5 }
 0x23b   : > { %10503 = vst [vmem:[#allocation24_spill] sm:$0xff] %v9362_v12  ;;  %v6679_v0 = vor.u32 %v10505_v15, %v10504_v59  ;;  %v6406_v4 = vld [vmem:[#allocation3 + $0x20] sm:$0xf]  ;;  %v2039_v46 = vsel %vm9254_vm0, %v2037_v14, %v2038_v16  ;;  %5695 = vmatmul.bf16.gmra.mxu0 %v7048_v7  ;;  %v3572_v59 = vpop.f32.mrf.mxu3  ;;  %v2781_v50 = vld [vmem:[#allocation2 + $0x30] sm:$0xf]  ;;  %v2858_v23 = vrot.slane %v2856_v9, 4 }
 0x23c   : > { %4233 = vmatmul.bf16.gmra.mxu1 %v6783_v33  ;;  %2972 = vst [vmem:[#allocation3 + $0x38] sm:$0xf] %v2854_v40  ;;  %v2780_v33 = vld [vmem:[#allocation2 + $0x2c] sm:$0xf]  ;;  %v9378_v40 = vadd.f32 %v3661_v61, %v3572_v59  ;;  %v1955_v43 = vld [vmem:[#allocation2 + $0x24] sm:$0xf] }
 0x23d   : > { %5129 = vst [vmem:[#allocation3 + $0x20] sm:$0xf] %v5007_v57  ;;  %v5011_v57 = vrot.slane %v5009_v54, 4  ;;  %v2859_v15 = vrot.slane %v2780_v33, 5  ;;  %v2041_v9 = vrot.slane %v1955_v43, 5  ;;  %v10511_v12 = vld [vmem:[#allocation10_spill] sm:$0xff] }
 0x23e   : > { %v9370_v45 = vld [vmem:[#allocation3 + $0x40] sm:$0xf0]  ;;  %10507 = vst [vmem:[#allocation9_spill] sm:$0xff] %v9378_v40  ;;  %v7107_v36 = vld [vmem:[#allocation3 + $0xc0] sm:$0xf] }
 0x23f   : > { %10506 = vst [vmem:[#allocation27_spill] sm:$0xff] %v9370_v45  ;;  %4277 = vmatmul.bf16.vlgmr.msrb.gmra.mxu2 %v6679_v0  ;;  %v5013_v14 = vsel %vm9254_vm0, %v5011_v57, %v5012_v63  ;;  %v5014_v0 = vrot.slane %v5012_v63, 4  ;;  %v2860_v38 = vsel %vm9254_vm0, %v2858_v23, %v2859_v15  ;;  %v9390_v59 = vpop.f32.mrf.mxu0  ;;  %v2040_v63 = vrot.slane %v2038_v16, 4  ;;  %v4939_v57 = vld [vmem:[#allocation2 + $0x3c] sm:$0xf]  ;;  %v7539_v23 = vld [vmem:[%s10383_s3 + $0x230] sm:$0xff] }
 0x240   : > { %v7402_v60 = vld [vmem:[#allocation3 + $0x28] sm:$0xf0]  ;;  %2973 = vst [vmem:[#allocation3 + $0x44] sm:$0xf] %v2857_v48  ;;  %v2862_v48 = vrot.slane %v2781_v50, 5  ;;  %5851 = vmatpush.bf16.msra.mxu2 %v7539_v23  ;;  %v10510_v23 = vld [vmem:[#allocation11_spill] sm:$0xff] }
 0x241   : > { %5130 = vst [vmem:[#allocation3 + $0x2c] sm:$0xf] %v5010_v22  ;;  %v9382_v7 = vld [vmem:[#allocation3 + $0x50] sm:$0xf]  ;;  %v6407_v22 = vor.u32 %v7402_v60, %v6406_v4  ;;  %v5016_v2 = vsel %vm9254_vm0, %v5014_v0, %v5015_v13  ;;  %v4940_v50 = vld [vmem:[#allocation2 + $0x40] sm:$0xf]  ;;  %v9401_v16 = vpop.f32.mrf.mxu1  ;;  %v6691_v45 = vor.u32 %v10511_v12, %v10510_v23 }
 0x242   : > { %2151 = vst [vmem:[#allocation3 + $0x5c] sm:$0xf] %v2039_v46  ;;  %v2861_v46 = vrot.slane %v2859_v15, 4  ;;  %v5017_v4 = vrot.slane %v5015_v13, 4  ;;  %v5018_v60 = vrot.slane %v4939_v57, 5  ;;  %v7531_v15 = vld [vmem:[%s10383_s3 + $0x1f0] sm:$0xff] }
 0x243   : > { %10508 = vst [vmem:[#allocation8_spill] sm:$0xff] %v9382_v7  ;;  %v9386_v54 = vld [vmem:[#allocation3 + $0x38] sm:$0xf]  ;;  %v7482_v0 = vld [vmem:[#allocation3 + $0x68] sm:$0xf0]  ;;  %5762 = vmatpush.bf16.msra.mxu1 %v7531_v15  ;;  %v9416_v7 = vpop.f32.mrf.mxu3  ;;  %v2864_v12 = vrot.slane %v2862_v48, 4 }
 0x244   : > { %2974 = vst [vmem:[#allocation3 + $0x50] sm:$0xf] %v2860_v38  ;;  %v2863_v33 = vsel %vm9254_vm0, %v2861_v46, %v2862_v48  ;;  %v2042_v38 = vsel %vm9254_vm0, %v2040_v63, %v2041_v9  ;;  %v5019_v13 = vsel %vm9254_vm0, %v5017_v4, %v5018_v60  ;;  %v7059_v46 = vld [vmem:[#allocation3 + $0x60] sm:$0xf]  ;;  %v1956_v57 = vld [vmem:[#allocation2 + $0x28] sm:$0xf] }
 0x245   : > { %5131 = vst [vmem:[#allocation3 + $0x38] sm:$0xf] %v5013_v14  ;;  %v5020_v40 = vrot.slane %v5018_v60, 4  ;;  %v2044_v4 = vrot.slane %v1956_v57, 5  ;;  %v7060_v14 = vor.u32 %v7482_v0, %v7059_v46  ;;  %v9424_v60 = vpop.f32.mrf.mxu2 }
 0x246   : > { %2152 = vst [vmem:[#allocation3 + $0x68] sm:$0xf] %v2042_v38  ;;  %v2783_v38 = vld [vmem:[#allocation2 + $0x38] sm:$0xf] }
 0x247   : > { %3704 = vmatmul.bf16.gmra.mxu3 %v6407_v22  ;;  %v7405_v61 = vld [vmem:[#allocation3 + $0x40] sm:$0xf0]  ;;  %v5021_v22 = vrot.slane %v4940_v50, 5  ;;  %10512 = vst [vmem:[#allocation11_spill] sm:$0xff] %v9416_v7  ;;  %v9422_v50 = vpop.f32.mrf.mxu0  ;;  %v2868_v0 = vrot.slane %v2783_v38, 5 }
 0x248   : > { %5132 = vst [vmem:[#allocation3 + $0x44] sm:$0xf] %v5016_v2  ;;  %v6795_v2 = vor.u32 %v8664_v19, %v8652_v25  ;;  %v6419_v57 = vor.u32 %v7405_v61, %v9386_v54  ;;  %v7394_v54 = vld [vmem:[%s10383_s3 + $0xa8] sm:$0xff]  ;;  %v1958_v61 = vld [vmem:[#allocation2 + $0x30] sm:$0xf] }
 0x249   : > { %v9399_v43 = vld [vmem:[#allocation3 + $0x58] sm:$0xf0]  ;;  %v5022_v25 = vsel %vm9254_vm0, %v5020_v40, %v5021_v22  ;;  %10513 = vst [vmem:[#allocation10_spill] sm:$0xff] %v9424_v60  ;;  %4360 = vmatpush.bf16.msra.mxu3 %v7394_v54  ;;  %v10517_v54 = vld [vmem:[#allocation13_spill] sm:$0xff] }
 0x24a   : > { %10509 = vst [vmem:[#allocation52_spill] sm:$0xff] %v9399_v43  ;;  %v7083_v7 = vld [vmem:[#allocation3 + $0x90] sm:$0xf] }
 0x24b   : > { %2975 = vst [vmem:[#allocation3 + $0x5c] sm:$0xf] %v2863_v33  ;;  %v9412_v63 = vld [vmem:[#allocation3 + $0x50] sm:$0xf]  ;;  %v2043_v33 = vrot.slane %v2041_v9, 4  ;;  %5700 = vmatmul.bf16.gmra.mxu0 %v7060_v14  ;;  %v3577_v43 = vpop.f32.mrf.mxu3 }
 0x24c   : > { %5133 = vst [vmem:[#allocation3 + $0x50] sm:$0xf] %v5019_v13  ;;  %4238 = vmatmul.bf16.gmra.mxu1 %v6795_v2  ;;  %v2782_v9 = vld [vmem:[#allocation2 + $0x34] sm:$0xf]  ;;  %v9428_v2 = vpop.f32.mrf.mxu1  ;;  %v1957_v14 = vld [vmem:[#allocation2 + $0x2c] sm:$0xf] }
 0x24d   : > { %v2045_v19 = vsel %vm9254_vm0, %v2043_v33, %v2044_v4  ;;  %v2865_v13 = vrot.slane %v2782_v9, 5  ;;  %v9430_v40 = vld [vmem:[#allocation3 + $0x68] sm:$0xf]  ;;  %v2046_v33 = vrot.slane %v2044_v4, 4  ;;  %v2047_v48 = vrot.slane %v1957_v14, 5 }
 0x24e   : > { %2153 = vst [vmem:[#allocation3 + $0x74] sm:$0xf] %v2045_v19  ;;  %v4942_v9 = vld [vmem:[#allocation2 + $0x48] sm:$0xf] }
 0x24f   : > { %4282 = vmatmul.bf16.gmra.mxu2 %v6691_v45  ;;  %10514 = vst [vmem:[#allocation53_spill] sm:$0xff] %v9430_v40  ;;  %v2866_v46 = vsel %vm9254_vm0, %v2864_v12, %v2865_v13  ;;  %v2867_v45 = vrot.slane %v2865_v13, 4  ;;  %v2048_v38 = vsel %vm9254_vm0, %v2046_v33, %v2047_v48  ;;  %v5023_v12 = vrot.slane %v5021_v22, 4 }
 0x250   : > { %2976 = vst [vmem:[#allocation3 + $0x68] sm:$0xf] %v2866_v46  ;;  %v5027_v4 = vrot.slane %v4942_v9, 5  ;;  %v9446_v46 = vpop.f32.mrf.mxu0  ;;  %v7071_v9 = vld [vmem:[#allocation3 + $0x78] sm:$0xf] }
 0x251   : > { %v2869_v23 = vsel %vm9254_vm0, %v2867_v45, %v2868_v0  ;;  %v3666_v45 = vpop.f32.mrf.mxu2  ;;  %2154 = vst [vmem:[#allocation3 + $0x80] sm:$0xf] %v2048_v38  ;;  %v2050_v38 = vrot.slane %v1958_v61, 5 }
 0x252   : > { %v9426_v15 = vld [vmem:[#allocation3 + $0x58] sm:$0xf0]  ;;  %v9450_v33 = vadd.f32 %v3666_v45, %v3577_v43  ;;  %v10518_v43 = vld [vmem:[#allocation12_spill] sm:$0xff] }
 0x253   : > { %5134 = vst [vmem:[#allocation3 + $0x5c] sm:$0xf] %v5022_v25  ;;  %v4941_v25 = vld [vmem:[#allocation2 + $0x44] sm:$0xf]  ;;  %v6703_v45 = vor.u32 %v10518_v43, %v10517_v54 }
 0x254   : > { %v5024_v13 = vrot.slane %v4941_v25, 5  ;;  %10516 = vst [vmem:[#allocation55_spill] sm:$0xff] %v9450_v33  ;;  %v6807_v25 = vor.u32 %v8743_v29, %v8711_v62  ;;  %v2784_v29 = vld [vmem:[#allocation2 + $0x3c] sm:$0xf] }
 0x255   : > { %v9437_v19 = vld [vmem:[#allocation3 + $0x70] sm:$0xf0] }
 0x256   : > { %10515 = vst [vmem:[#allocation54_spill] sm:$0xff] %v9437_v19  ;;  %v5025_v14 = vsel %vm9254_vm0, %v5023_v12, %v5024_v13  ;;  %v9458_v19 = vpop.f32.mrf.mxu1  ;;  %v2049_v12 = vrot.slane %v2047_v48, 4 }
 0x257   : > { %3709 = vmatmul.bf16.gmra.mxu3 %v6419_v57  ;;  %2977 = vst [vmem:[#allocation3 + $0x74] sm:$0xf] %v2869_v23  ;;  %v7485_v57 = vld [vmem:[#allocation3 + $0x80] sm:$0xf0]  ;;  %v9452_v22 = vld [vmem:[#allocation3 + $0x68] sm:$0xf] }
 0x258   : > { %v5026_v23 = vrot.slane %v5024_v13, 4  ;;  %5135 = vst [vmem:[#allocation3 + $0x68] sm:$0xf] %v5025_v14  ;;  %v7072_v33 = vor.u32 %v7485_v57, %v7071_v9  ;;  %v2051_v62 = vsel %vm9254_vm0, %v2049_v12, %v2050_v38  ;;  %v2785_v13 = vld [vmem:[#allocation2 + $0x40] sm:$0xf]  ;;  %v2870_v14 = vrot.slane %v2868_v0, 4  ;;  %v9472_v9 = vpop.f32.mrf.mxu0 }
 0x259   : > { %2155 = vst [vmem:[#allocation3 + $0x8c] sm:$0xf] %v2051_v62  ;;  %v2874_v48 = vrot.slane %v2785_v13, 5  ;;  %v9468_v61 = vld [vmem:[#allocation3 + $0x80] sm:$0xf]  ;;  %v7538_v13 = vld [vmem:[%s10383_s3 + $0x228] sm:$0xff] }
 0x25a   : > { %v5028_v40 = vsel %vm9254_vm0, %v5026_v23, %v5027_v4  ;;  %v2871_v23 = vrot.slane %v2784_v29, 5  ;;  %10520 = vst [vmem:[#allocation12_spill] sm:$0xff] %v9468_v61  ;;  %v1959_v12 = vld [vmem:[#allocation2 + $0x34] sm:$0xf]  ;;  %v4943_v62 = vld [vmem:[#allocation2 + $0x4c] sm:$0xf]  ;;  %5852 = vmatpush.bf16.msra.mxu2 %v7538_v13 }
 0x25b   : > { %5705 = vmatmul.bf16.gmra.mxu0 %v7072_v33  ;;  %v2052_v33 = vrot.slane %v2050_v38, 4  ;;  %v2053_v0 = vrot.slane %v1959_v12, 5  ;;  %v4944_v29 = vld [vmem:[#allocation2 + $0x50] sm:$0xf]  ;;  %v1960_v13 = vld [vmem:[#allocation2 + $0x38] sm:$0xf] }
 0x25c   : > { %4243 = vmatmul.bf16.gmra.mxu1 %v6807_v25  ;;  %v9466_v25 = vpop.f32.mrf.mxu3  ;;  %v2872_v57 = vsel %vm9254_vm0, %v2870_v14, %v2871_v23  ;;  %v2873_v54 = vrot.slane %v2871_v23, 4  ;;  %v5029_v23 = vrot.slane %v5027_v4, 4  ;;  %v5033_v12 = vrot.slane %v4944_v29, 5  ;;  %v10523_v29 = vld [vmem:[#allocation15_spill] sm:$0xff] }
 0x25d   : > { %10519 = vst [vmem:[#allocation13_spill] sm:$0xff] %v9466_v25  ;;  %v2054_v14 = vsel %vm9254_vm0, %v2052_v33, %v2053_v0  ;;  %v6819_v33 = vor.u32 %v8867_v31, %v8853_v11  ;;  %v9498_v25 = vpop.f32.mrf.mxu2  ;;  %v2055_v38 = vrot.slane %v2053_v0, 4  ;;  %v2056_v61 = vrot.slane %v1960_v13, 5 }
 0x25e   : > { %v9462_v60 = vld [vmem:[#allocation3 + $0x70] sm:$0xf0]  ;;  %2978 = vst [vmem:[#allocation3 + $0x80] sm:$0xf] %v2872_v57  ;;  %v2875_v43 = vsel %vm9254_vm0, %v2873_v54, %v2874_v48 }
 0x25f   : > { %4287 = vmatmul.bf16.gmra.mxu2 %v6703_v45  ;;  %5136 = vst [vmem:[#allocation3 + $0x74] sm:$0xf] %v5028_v40  ;;  %v6431_v40 = vor.u32 %v9426_v15, %v9412_v63  ;;  %v9478_v45 = vpop.f32.mrf.mxu1  ;;  %v5030_v63 = vrot.slane %v4943_v62, 5  ;;  %v7530_v15 = vld [vmem:[%s10383_s3 + $0x1e8] sm:$0xff]  ;;  %v2057_v11 = vsel %vm9254_vm0, %v2055_v38, %v2056_v61  ;;  %v1961_v38 = vld [vmem:[#allocation2 + $0x3c] sm:$0xf] }
 0x260   : > { %v9485_v57 = vld [vmem:[#allocation3 + $0x88] sm:$0xf0]  ;;  %5763 = vmatpush.bf16.msra.mxu1 %v7530_v15  ;;  %2156 = vst [vmem:[#allocation3 + $0x98] sm:$0xf] %v2054_v14  ;;  %v10524_v14 = vld [vmem:[#allocation14_spill] sm:$0xff] }
 0x261   : > { %10521 = vst [vmem:[#allocation56_spill] sm:$0xff] %v9485_v57  ;;  %v5031_v54 = vsel %vm9254_vm0, %v5029_v23, %v5030_v63  ;;  %v9500_v23 = vpop.f32.mrf.mxu0  ;;  %v6715_v15 = vor.u32 %v10524_v14, %v10523_v29  ;;  %v2058_v14 = vrot.slane %v2056_v61, 4 }
 0x262   : > { %2979 = vst [vmem:[#allocation3 + $0x8c] sm:$0xf] %v2875_v43  ;;  %v5032_v43 = vrot.slane %v5030_v63, 4  ;;  %v2786_v63 = vld [vmem:[#allocation2 + $0x44] sm:$0xf] }
 0x263   : > { %10522 = vst [vmem:[#allocation57_spill] sm:$0xff] %v9498_v25  ;;  %v2877_v13 = vrot.slane %v2786_v63, 5 }
 0x264   : > { %v3582_v62 = vpop.f32.mrf.mxu3  ;;  %v5034_v27 = vsel %vm9254_vm0, %v5032_v43, %v5033_v12  ;;  %2157 = vst [vmem:[#allocation3 + $0xa4] sm:$0xf] %v2057_v11 }
 0x265   : > { %v9494_v4 = vld [vmem:[#allocation3 + $0x80] sm:$0xf]  ;;  %v2879_v43 = vrot.slane %v2877_v13, 4 }
 0x266   : > { %5137 = vst [vmem:[#allocation3 + $0x80] sm:$0xf] %v5031_v54  ;;  %v2787_v54 = vld [vmem:[#allocation2 + $0x48] sm:$0xf] }
 0x267   : > { %3714 = vmatmul.bf16.gmra.mxu3 %v6431_v40  ;;  %v7488_v40 = vld [vmem:[#allocation3 + $0x98] sm:$0xf0]  ;;  %v9510_v0 = vpop.f32.mrf.mxu1  ;;  %v2880_v29 = vrot.slane %v2787_v54, 5 }
 0x268   : > { %v7084_v57 = vor.u32 %v7488_v40, %v7083_v7  ;;  %v9512_v7 = vld [vmem:[#allocation3 + $0x98] sm:$0xf] }
 0x269   : > { %v9508_v31 = vld [vmem:[#allocation3 + $0x88] sm:$0xf0]  ;;  %10525 = vst [vmem:[#allocation15_spill] sm:$0xff] %v9512_v7 }
 0x26a   : > { %5138 = vst [vmem:[#allocation3 + $0x8c] sm:$0xf] %v5034_v27  ;;  %v2059_v27 = vrot.slane %v1961_v38, 5 }
 0x26b   : > { %5710 = vmatmul.bf16.gmra.mxu0 %v7084_v57  ;;  %v6443_v57 = vor.u32 %v9462_v60, %v9452_v22  ;;  %v9524_v54 = vld [vmem:[#allocation3 + $0xa0] sm:$0xf0]  ;;  %v9528_v60 = vpop.f32.mrf.mxu0  ;;  %v5035_v22 = vrot.slane %v5033_v12, 4  ;;  %v6831_v12 = vor.u32 %v9031_v35, %v9010_v32 }
 0x26c   : > { %4248 = vmatmul.bf16.gmra.mxu1 %v6819_v33  ;;  %v2876_v33 = vrot.slane %v2874_v48, 4  ;;  %v2881_v48 = vsel %vm9254_vm0, %v2879_v43, %v2880_v29  ;;  %10528 = vst [vmem:[#allocation59_spill] sm:$0xff] %v9524_v54  ;;  %v2060_v25 = vsel %vm9254_vm0, %v2058_v14, %v2059_v27  ;;  %v1963_v54 = vld [vmem:[#allocation2 + $0x44] sm:$0xf] }
 0x26d   : > { %2981 = vst [vmem:[#allocation3 + $0xa4] sm:$0xf] %v2881_v48 }
 0x26e   : > { %v2878_v40 = vsel %vm9254_vm0, %v2876_v33, %v2877_v13  ;;  %v4945_v33 = vld [vmem:[#allocation2 + $0x54] sm:$0xf]  ;;  %v4946_v13 = vld [vmem:[#allocation2 + $0x58] sm:$0xf]  ;;  %2158 = vst [vmem:[#allocation3 + $0xb0] sm:$0xf] %v2060_v25  ;;  %v6727_v25 = vor.u32 %v8764_v55, %v8783_v56  ;;  %v6455_v55 = vor.u32 %v9508_v31, %v9494_v4 }
 0x26f   : > { %4292 = vmatmul.bf16.gmra.mxu2 %v6715_v15  ;;  %2980 = vst [vmem:[#allocation3 + $0x98] sm:$0xf] %v2878_v40  ;;  %v9518_v15 = vpop.f32.mrf.mxu3  ;;  %v5036_v61 = vrot.slane %v4945_v33, 5  ;;  %v7393_v40 = vld [vmem:[%s10383_s3 + $0xa0] sm:$0xff]  ;;  %v5039_v43 = vrot.slane %v4946_v13, 5  ;;  %v9537_v14 = vpop.f32.mrf.mxu1  ;;  %v2061_v13 = vrot.slane %v2059_v27, 4 }
 0x270   : > { %10526 = vst [vmem:[#allocation14_spill] sm:$0xff] %v9518_v15  ;;  %4361 = vmatpush.bf16.msra.mxu3 %v7393_v40  ;;  %v1962_v33 = vld [vmem:[#allocation2 + $0x40] sm:$0xf]  ;;  %v7095_v15 = vld [vmem:[#allocation3 + $0xa8] sm:$0xf]  ;;  %v2882_v27 = vrot.slane %v2880_v29, 4 }
 0x271   : > { %v3671_v11 = vpop.f32.mrf.mxu2  ;;  %v5037_v38 = vsel %vm9254_vm0, %v5035_v22, %v5036_v61  ;;  %v2062_v22 = vrot.slane %v1962_v33, 5  ;;  %v4947_v29 = vld [vmem:[#allocation2 + $0x5c] sm:$0xf] }
 0x272   : > { %v9522_v63 = vadd.f32 %v3671_v11, %v3582_v62  ;;  %v5038_v11 = vrot.slane %v5036_v61, 4 }
 0x273   : > { %v2063_v32 = vsel %vm9254_vm0, %v2061_v13, %v2062_v22  ;;  %v9551_v61 = vpop.f32.mrf.mxu0 }
 0x274   : > { %10527 = vst [vmem:[#allocation58_spill] sm:$0xff] %v9522_v63  ;;  %v5040_v62 = vsel %vm9254_vm0, %v5038_v11, %v5039_v43  ;;  %v9547_v7 = vld [vmem:[#allocation3 + $0xa0] sm:$0xf0]  ;;  %v2789_v11 = vld [vmem:[#allocation2 + $0x50] sm:$0xf] }
 0x275   : > { %5140 = vst [vmem:[#allocation3 + $0xa4] sm:$0xf] %v5040_v62  ;;  %v2886_v33 = vrot.slane %v2789_v11, 5  ;;  %v7529_v11 = vld [vmem:[%s10383_s3 + $0x1e0] sm:$0xff]  ;;  %v1964_v63 = vld [vmem:[#allocation2 + $0x48] sm:$0xf] }
 0x276   : > { %v9541_v48 = vld [vmem:[#allocation3 + $0x98] sm:$0xf]  ;;  %2159 = vst [vmem:[#allocation3 + $0xbc] sm:$0xf] %v2063_v32  ;;  %v9563_v32 = vld [vmem:[#allocation2 + $0x60] sm:$0xf]  ;;  %5764 = vmatpush.bf16.msra.mxu1 %v7529_v11 }
 0x277   : > { %3719 = vmatmul.bf16.gmra.mxu3 %v6443_v57  ;;  %v7491_v57 = vld [vmem:[#allocation3 + $0xb0] sm:$0xf0]  ;;  %5139 = vst [vmem:[#allocation3 + $0x98] sm:$0xf] %v5037_v38  ;;  %v3587_v35 = vpop.f32.mrf.mxu3  ;;  %v2788_v38 = vld [vmem:[#allocation2 + $0x4c] sm:$0xf]  ;;  %v9555_v56 = vpop.f32.mrf.mxu1 }
 0x278   : > { %v7096_v40 = vor.u32 %v7491_v57, %v7095_v15  ;;  %v2064_v15 = vrot.slane %v2062_v22, 4  ;;  %v2065_v57 = vrot.slane %v1963_v54, 5  ;;  %v5042_v22 = vrot.slane %v4947_v29, 5 }
 0x279   : > { %v9557_v13 = vpop.f32.mrf.mxu2 }
 0x27a   : > { %10529 = vst [vmem:[#allocation60_spill] sm:$0xff] %v9557_v13  ;;  %v2066_v4 = vsel %vm9254_vm0, %v2064_v15, %v2065_v57  ;;  %v5045_v15 = vrot.slane %v9563_v32, 5  ;;  %v5044_v13 = vrot.slane %v5042_v22, 4  ;;  %v6739_v32 = vor.u32 %v8945_v17, %v8960_v42  ;;  %v2790_v42 = vld [vmem:[#allocation2 + $0x54] sm:$0xf] }
 0x27b   : > { %5715 = vmatmul.bf16.gmra.mxu0 %v7096_v40  ;;  %2160 = vst [vmem:[#allocation3 + $0xc8] sm:$0xf] %v2066_v4  ;;  %v9582_v29 = vpop.f32.mrf.mxu0 }
 0x27c   : > { %4253 = vmatmul.bf16.gmra.mxu1 %v6831_v12  ;;  %v2883_v12 = vrot.slane %v2788_v38, 5  ;;  %v7537_v38 = vld [vmem:[%s10383_s3 + $0x220] sm:$0xff] }
 0x27d   : > { %v9567_v31 = vld [vmem:[#allocation3 + $0xb8] sm:$0xf0]  ;;  %5853 = vmatpush.bf16.msra.mxu2 %v7537_v38 }
 0x27e   : > { %v2884_v62 = vsel %vm9254_vm0, %v2882_v27, %v2883_v12  ;;  %v2885_v40 = vrot.slane %v2883_v12, 4  ;;  %10531 = vst [vmem:[#allocation62_spill] sm:$0xff] %v9567_v31  ;;  %v2067_v27 = vrot.slane %v2065_v57, 4 }
 0x27f   : > { %4297 = vmatmul.bf16.gmra.mxu2 %v6727_v25  ;;  %v9559_v25 = vld [vmem:[#allocation3 + $0xb0] sm:$0xf]  ;;  %v3589_v12 = vpop.f32.mrf.mxu3 }
 0x280   : > { %10530 = vst [vmem:[#allocation61_spill] sm:$0xff] %v9559_v25  ;;  %v2887_v54 = vsel %vm9254_vm0, %v2885_v40, %v2886_v33  ;;  %v6843_v40 = vor.u32 %v9142_v51, %v9135_v10  ;;  %v5046_v10 = vsel %vm9254_vm0, %v5044_v13, %v5045_v15  ;;  %v6467_v13 = vor.u32 %v9547_v7, %v9541_v48  ;;  %v4949_v25 = vld [vmem:[#allocation2 + $0x64] sm:$0xf]  ;;  %v9613_v48 = vld [vmem:[#allocation2 + $0x68] sm:$0xf] }
 0x281   : > { %2982 = vst [vmem:[#allocation3 + $0xb0] sm:$0xf] %v2884_v62  ;;  %v7494_v62 = vld [vmem:[#allocation3 + $0xc8] sm:$0xf0]  ;;  %v5051_v31 = vrot.slane %v9613_v48, 5 }
 0x282   : > { %2983 = vst [vmem:[#allocation3 + $0xbc] sm:$0xf] %v2887_v54  ;;  %v7108_v4 = vor.u32 %v7494_v62, %v7107_v36  ;;  %v9600_v36 = vld [vmem:[#allocation2 + $0x58] sm:$0xf]  ;;  %v2889_v62 = vrot.slane %v2790_v42, 5 }
 0x284   : > { %v9592_v51 = vpop.f32.mrf.mxu1 }
 0x285   : > { %10532 = vst [vmem:[#allocation63_spill] sm:$0xff] %v9592_v51  ;;  %v7143_v51 = vld [vmem:[#allocation3 + $0x108] sm:$0xf] }
 0x287   : > { %3724 = vmatmul.bf16.gmra.mxu3 %v6455_v55  ;;  %v5041_v55 = vrot.slane %v5039_v43, 4  ;;  %v2068_v43 = vrot.slane %v1964_v63, 5 }
 0x288   : > { %v9588_v38 = vld [vmem:[#allocation3 + $0xb0] sm:$0xf]  ;;  %v3592_v17 = vpop.f32.mrf.mxu3 }
 0x289   : > { %v5043_v54 = vsel %vm9254_vm0, %v5041_v55, %v5042_v22  ;;  %v2069_v22 = vsel %vm9254_vm0, %v2067_v27, %v2068_v43  ;;  %v9596_v57 = vld [vmem:[#allocation3 + $0xb8] sm:$0xf0]  ;;  %v2888_v55 = vrot.slane %v2886_v33, 4  ;;  %v2892_v27 = vrot.slane %v9600_v36, 5  ;;  %v7392_v33 = vld [vmem:[%s10383_s3 + $0x98] sm:$0xff] }
 0x28a   : > { %5141 = vst [vmem:[#allocation3 + $0xb0] sm:$0xf] %v5043_v54  ;;  %v9605_v54 = vpop.f32.mrf.mxu0  ;;  %4362 = vmatpush.bf16.msra.mxu3 %v7392_v33 }
 0x28b   : > { %5720 = vmatmul.bf16.gmra.mxu0 %v7108_v4  ;;  %2161 = vst [vmem:[#allocation3 + $0xd4] sm:$0xf] %v2069_v22  ;;  %v2070_v4 = vrot.slane %v2068_v43, 4  ;;  %v2890_v22 = vsel %vm9254_vm0, %v2888_v55, %v2889_v62 }
 0x28c   : > { %4258 = vmatmul.bf16.gmra.mxu1 %v6843_v40  ;;  %v3676_v11 = vpop.f32.mrf.mxu2  ;;  %5142 = vst [vmem:[#allocation3 + $0xbc] sm:$0xf] %v5046_v10  ;;  %v1965_v40 = vld [vmem:[#allocation2 + $0x4c] sm:$0xf] }
 0x28d   : > { %v9598_v63 = vadd.f32 %v3676_v11, %v3587_v35  ;;  %v2071_v35 = vrot.slane %v1965_v40, 5  ;;  %v2891_v11 = vrot.slane %v2889_v62, 4  ;;  %v5048_v62 = vrot.slane %v4949_v25, 5  ;;  %v7528_v40 = vld [vmem:[%s10383_s3 + $0x1d8] sm:$0xff] }
 0x28e   : > { %5765 = vmatpush.bf16.msra.mxu1 %v7528_v40  ;;  %v7119_v25 = vld [vmem:[#allocation3 + $0xd8] sm:$0xf]  ;;  %v7526_v40 = vld [vmem:[%s10383_s3 + $0x1c8] sm:$0xff] }
 0x28f   : > { %4302 = vmatmul.bf16.gmra.mxu2 %v6739_v32  ;;  %10533 = vst [vmem:[#allocation64_spill] sm:$0xff] %v9598_v63  ;;  %v9607_v32 = vld [vmem:[#allocation3 + $0xc8] sm:$0xf]  ;;  %v2072_v43 = vsel %vm9254_vm0, %v2070_v4, %v2071_v35  ;;  %v2893_v55 = vsel %vm9254_vm0, %v2891_v11, %v2892_v27  ;;  %v5047_v4 = vrot.slane %v5045_v15, 4  ;;  %v7527_v11 = vld [vmem:[%s10383_s3 + $0x1d0] sm:$0xff]  ;;  %v5050_v42 = vrot.slane %v5048_v62, 4 }
 0x290   : > { %10534 = vst [vmem:[#allocation65_spill] sm:$0xff] %v9607_v32  ;;  %v3594_v33 = vpop.f32.mrf.mxu3  ;;  %v6751_v15 = vor.u32 %v9074_v28, %v9098_v21  ;;  %v1968_v63 = vld [vmem:[#allocation2 + $0x58] sm:$0xf] }
 0x291   : > { %2984 = vst [vmem:[#allocation3 + $0xc8] sm:$0xf] %v2890_v22  ;;  %v7497_v22 = vld [vmem:[#allocation3 + $0xe0] sm:$0xf0] }
 0x292   : > { %v9609_v10 = vld [vmem:[#allocation3 + $0xd0] sm:$0xf0]  ;;  %2162 = vst [vmem:[#allocation3 + $0xe0] sm:$0xf] %v2072_v43  ;;  %v1966_v43 = vld [vmem:[#allocation2 + $0x50] sm:$0xf]  ;;  %v7120_v48 = vor.u32 %v7497_v22, %v7119_v25  ;;  %5766 = vmatpush.bf16.msra.mxu1 %v7527_v11 }
 0x293   : > { %10535 = vst [vmem:[#allocation66_spill] sm:$0xff] %v9609_v10  ;;  %v2074_v32 = vrot.slane %v1966_v43, 5  ;;  %v2793_v11 = vld [vmem:[#allocation2 + $0x60] sm:$0xf]  ;;  %v2894_v25 = vrot.slane %v2892_v27, 4 }
 0x294   : > { %v3678_v7 = vpop.f32.mrf.mxu2  ;;  %2985 = vst [vmem:[#allocation3 + $0xd4] sm:$0xf] %v2893_v55  ;;  %v2073_v55 = vrot.slane %v2071_v35, 4  ;;  %v2898_v43 = vrot.slane %v2793_v11, 5  ;;  %v9667_v10 = vld [vmem:[#allocation2 + $0x70] sm:$0xf] }
 0x295   : > { %v9622_v36 = vadd.f32 %v3678_v7, %v3589_v12  ;;  %v6855_v12 = vor.u32 %v9235_v34, %v9231_v47  ;;  %v5049_v7 = vsel %vm9254_vm0, %v5047_v4, %v5048_v62  ;;  %v5052_v34 = vsel %vm9254_vm0, %v5050_v42, %v5051_v31  ;;  %v9648_v62 = vpop.f32.mrf.mxu0  ;;  %v7525_v4 = vld [vmem:[%s10383_s3 + $0x1c0] sm:$0xff] }
 0x296   : > { %v2075_v28 = vsel %vm9254_vm0, %v2073_v55, %v2074_v32  ;;  %5767 = vmatpush.bf16.msra.mxu1 %v7526_v40  ;;  %v2076_v55 = vrot.slane %v2074_v32, 4  ;;  %v7013_v32 = vld [vmem:[#allocation3 + $0xc] sm:$0xf0] }
 0x297   : > { %3729 = vmatmul.bf16.gmra.mxu3 %v6467_v13  ;;  %10536 = vst [vmem:[#allocation67_spill] sm:$0xff] %v9622_v36  ;;  %v9624_v13 = vpop.f32.mrf.mxu1 }
 0x298   : > { %10537 = vst [vmem:[#allocation68_spill] sm:$0xff] %v9624_v13  ;;  %v9641_v47 = vld [vmem:[#allocation3 + $0xc8] sm:$0xf] }
 0x299   : > { %5143 = vst [vmem:[#allocation3 + $0xc8] sm:$0xf] %v5049_v7 }
 0x29a   : > { %2163 = vst [vmem:[#allocation3 + $0xec] sm:$0xf] %v2075_v28  ;;  %5768 = vmatpush.bf16.msra.mxu1 %v7525_v4  ;;  %v7131_v4 = vld [vmem:[#allocation3 + $0xf0] sm:$0xf] }
 0x29b   : > { %5725 = vmatmul.bf16.gmra.mxu0 %v7120_v48  ;;  %v9652_v21 = vld [vmem:[#allocation3 + $0xd0] sm:$0xf0]  ;;  %v6479_v48 = vor.u32 %v9596_v57, %v9588_v38 }
 0x29c   : > { %4263 = vmatmul.bf16.gmra.mxu1 %v6855_v12  ;;  %5144 = vst [vmem:[#allocation3 + $0xd4] sm:$0xf] %v5052_v34  ;;  %v2792_v12 = vld [vmem:[#allocation2 + $0x5c] sm:$0xf] }
 0x29d   : > { %v2895_v7 = vrot.slane %v2792_v12, 5 }
 0x29e   : > { %v3681_v35 = vpop.f32.mrf.mxu2 }
 0x29f   : > { %4307 = vmatmul.bf16.gmra.mxu2 %v6751_v15  ;;  %v9654_v22 = vadd.f32 %v3681_v35, %v3592_v17  ;;  %v9656_v42 = vpop.f32.mrf.mxu1  ;;  %v1967_v15 = vld [vmem:[#allocation2 + $0x54] sm:$0xf]  ;;  %v9663_v17 = vld [vmem:[#allocation3 + $0xe0] sm:$0xf]  ;;  %v2896_v40 = vsel %vm9254_vm0, %v2894_v25, %v2895_v7  ;;  %v2897_v28 = vrot.slane %v2895_v7, 4  ;;  %v7536_v25 = vld [vmem:[%s10383_s3 + $0x218] sm:$0xff]  ;;  %v9680_v7 = vpop.f32.mrf.mxu0 }
 0x2a0   : > { %10539 = vst [vmem:[#allocation70_spill] sm:$0xff] %v9656_v42  ;;  %v2077_v34 = vrot.slane %v1967_v15, 5  ;;  %v4951_v35 = vld [vmem:[#allocation2 + $0x6c] sm:$0xf]  ;;  %5854 = vmatpush.bf16.msra.mxu2 %v7536_v25 }
 0x2a1   : > { %10538 = vst [vmem:[#allocation69_spill] sm:$0xff] %v9654_v22  ;;  %v9671_v11 = vld [vmem:[#allocation3 + $0xe8] sm:$0xf0]  ;;  %v2899_v38 = vsel %vm9254_vm0, %v2897_v28, %v2898_v43  ;;  %v5054_v57 = vrot.slane %v4951_v35, 5  ;;  %v7500_v35 = vld [vmem:[#allocation3 + $0xf8] sm:$0xf0] }
 0x2a2   : > { %10540 = vst [vmem:[#allocation71_spill] sm:$0xff] %v9663_v17  ;;  %v2078_v27 = vsel %vm9254_vm0, %v2076_v55, %v2077_v34  ;;  %v5057_v55 = vrot.slane %v9667_v10, 5  ;;  %v2079_v17 = vrot.slane %v2077_v34, 4  ;;  %v10545_v10 = vld [vmem:[#allocation18_spill] sm:$0xff]  ;;  %v7132_v25 = vor.u32 %v7500_v35, %v7131_v4  ;;  %v9699_v34 = vld [vmem:[#allocation2 + $0x68] sm:$0xf] }
 0x2a3   : > { %2986 = vst [vmem:[#allocation3 + $0xe0] sm:$0xf] %v2896_v40  ;;  %v7469_v40 = vld [vmem:[#allocation3 + $0x4] sm:$0xf] }
 0x2a4   : > { %10541 = vst [vmem:[#allocation72_spill] sm:$0xff] %v9671_v11  ;;  %v7016_v22 = vor.u32 %v7469_v40, %v7013_v32  ;;  %v10544_v11 = vld [vmem:[#allocation20_spill] sm:$0xff]  ;;  %v2904_v40 = vrot.slane %v9699_v34, 5 }
 0x2a5   : > { %v3597_v12 = vpop.f32.mrf.mxu3  ;;  %2987 = vst [vmem:[#allocation3 + $0xec] sm:$0xf] %v2899_v38  ;;  %v5056_v38 = vrot.slane %v5054_v57, 4  ;;  %v6763_v13 = vor.u32 %v10545_v10, %v10544_v11  ;;  %v7025_v34 = vld [vmem:[#allocation3 + $0x24] sm:$0xf0] }
 0x2a6   : > { %v3683_v15 = vpop.f32.mrf.mxu2  ;;  %2164 = vst [vmem:[#allocation3 + $0xf8] sm:$0xf] %v2078_v27 }
 0x2a7   : > { %3734 = vmatmul.bf16.gmra.mxu3 %v6479_v48  ;;  %v5053_v48 = vrot.slane %v5051_v31, 4  ;;  %v9683_v28 = vadd.f32 %v3683_v15, %v3594_v33  ;;  %v9687_v42 = vpop.f32.mrf.mxu1  ;;  %v2080_v31 = vrot.slane %v1968_v63, 5  ;;  %v5058_v33 = vsel %vm9254_vm0, %v5056_v38, %v5057_v55  ;;  %v9701_v11 = vpop.f32.mrf.mxu0 }
 0x2a8   : > { %10543 = vst [vmem:[#allocation74_spill] sm:$0xff] %v9687_v42 }
 0x2a9   : > { %10542 = vst [vmem:[#allocation73_spill] sm:$0xff] %v9683_v28  ;;  %v5055_v36 = vsel %vm9254_vm0, %v5053_v48, %v5054_v57  ;;  %v2081_v57 = vsel %vm9254_vm0, %v2079_v17, %v2080_v31  ;;  %v2900_v48 = vrot.slane %v2898_v43, 4  ;;  %v1969_v17 = vld [vmem:[#allocation2 + $0x5c] sm:$0xf]  ;;  %v2082_v35 = vrot.slane %v2080_v31, 4 }
 0x2aa   : > { %v9691_v27 = vld [vmem:[#allocation3 + $0xe0] sm:$0xf]  ;;  %2165 = vst [vmem:[#allocation3 + $0x104] sm:$0xf] %v2081_v57  ;;  %v2083_v38 = vrot.slane %v1969_v17, 5 }
 0x2ab   : > { %5145 = vst [vmem:[#allocation3 + $0xe0] sm:$0xf] %v5055_v36  ;;  %5730 = vmatmul.bf16.gmra.mxu0 %v7132_v25  ;;  %v4953_v43 = vld [vmem:[#allocation2 + $0x74] sm:$0xf]  ;;  %v7503_v28 = vld [vmem:[#allocation3 + $0x110] sm:$0xf0] }
 0x2ac   : > { %5769 = vmatmul.bf16.vlgmr.msra.gmra.mxu1 %v7016_v22  ;;  %v9697_v15 = vld [vmem:[#allocation3 + $0xe8] sm:$0xf0]  ;;  %v2794_v22 = vld [vmem:[#allocation2 + $0x64] sm:$0xf]  ;;  %v5060_v31 = vrot.slane %v4953_v43, 5  ;;  %v2085_v17 = vrot.slane %v2083_v38, 4 }
 0x2ad   : > { %v3599_v32 = vpop.f32.mrf.mxu3  ;;  %5146 = vst [vmem:[#allocation3 + $0xec] sm:$0xf] %v5058_v33  ;;  %v2901_v36 = vrot.slane %v2794_v22, 5  ;;  %v9708_v10 = vld [vmem:[#allocation3 + $0xf8] sm:$0xf]  ;;  %v7391_v22 = vld [vmem:[%s10383_s3 + $0x90] sm:$0xff] }
 0x2ae   : > { %10547 = vst [vmem:[#allocation18_spill] sm:$0xff] %v9708_v10  ;;  %4363 = vmatpush.bf16.msra.mxu3 %v7391_v22  ;;  %v10551_v22 = vld [vmem:[#allocation25_spill] sm:$0xff] }
 0x2af   : > { %4312 = vmatmul.bf16.gmra.mxu2 %v6763_v13  ;;  %v6491_v13 = vor.u32 %v9652_v21, %v9641_v47  ;;  %v2902_v25 = vsel %vm9254_vm0, %v2900_v48, %v2901_v36  ;;  %v2903_v33 = vrot.slane %v2901_v36, 4  ;;  %v9712_v57 = vpop.f32.mrf.mxu1  ;;  %v9720_v21 = vld [vmem:[#allocation2 + $0x78] sm:$0xf]  ;;  %v10550_v48 = vld [vmem:[#allocation23_spill] sm:$0xff]  ;;  %v9734_v10 = vpop.f32.mrf.mxu0 }
 0x2b0   : > { %10548 = vst [vmem:[#allocation75_spill] sm:$0xff] %v9712_v57  ;;  %v3612_v36 = vadd.f32 %v9322_v8, %v10550_v48  ;;  %v1970_v48 = vld [vmem:[#allocation2 + $0x60] sm:$0xf] }
 0x2b1   : > { %2988 = vst [vmem:[#allocation3 + $0xf8] sm:$0xf] %v2902_v25  ;;  %v2905_v47 = vsel %vm9254_vm0, %v2903_v33, %v2904_v40  ;;  %v7472_v33 = vld [vmem:[#allocation3 + $0x1c] sm:$0xf] }
 0x2b2   : > { %v3686_v63 = vpop.f32.mrf.mxu2  ;;  %v7028_v57 = vor.u32 %v7472_v33, %v7025_v34  ;;  %v10552_v25 = vld [vmem:[#allocation22_spill] sm:$0xff]  ;;  %v2796_v33 = vld [vmem:[#allocation2 + $0x6c] sm:$0xf] }
 0x2b3   : > { %v9703_v4 = vadd.f32 %v3686_v63, %v3597_v12  ;;  %v9714_v12 = vld [vmem:[#allocation3 + $0x100] sm:$0xf0]  ;;  %v2084_v63 = vsel %vm9254_vm0, %v2082_v35, %v2083_v38  ;;  %v5059_v35 = vrot.slane %v5057_v55, 4  ;;  %v2086_v55 = vrot.slane %v1970_v48, 5  ;;  %v10554_v34 = vld [vmem:[#allocation26_spill] sm:$0xff] }
 0x2b4   : > { %10549 = vst [vmem:[#allocation76_spill] sm:$0xff] %v9714_v12  ;;  %v2907_v48 = vrot.slane %v2796_v33, 5  ;;  %v10557_v33 = vld [vmem:[#allocation28_spill] sm:$0xff] }
 0x2b5   : > { %10546 = vst [vmem:[#allocation20_spill] sm:$0xff] %v9703_v4  ;;  %v5061_v8 = vsel %vm9254_vm0, %v5059_v35, %v5060_v31  ;;  %v3614_v35 = vadd.f32 %v9358_v53, %v10554_v34 }
 0x2b6   : > { %2989 = vst [vmem:[#allocation3 + $0x104] sm:$0xf] %v2905_v47  ;;  %v5062_v47 = vrot.slane %v5060_v31, 4  ;;  %v2087_v31 = vsel %vm9254_vm0, %v2085_v17, %v2086_v55  ;;  %v2906_v17 = vrot.slane %v2904_v40, 4  ;;  %v4955_v40 = vld [vmem:[#allocation2 + $0x7c] sm:$0xf] }
 0x2b7   : > { %3739 = vmatmul.bf16.gmra.mxu3 %v6491_v13  ;;  %2166 = vst [vmem:[#allocation3 + $0x110] sm:$0xf] %v2084_v63  ;;  %v6775_v63 = vor.u32 %v10552_v25, %v10551_v22 }
 0x2b8   : > { %2167 = vst [vmem:[#allocation3 + $0x11c] sm:$0xf] %v2087_v31  ;;  %v2908_v53 = vsel %vm9254_vm0, %v2906_v17, %v2907_v48  ;;  %v2909_v31 = vrot.slane %v2907_v48, 4 }
 0x2ba   : > { %v3700_v13 = vpop.f32.mrf.mxu3  ;;  %v3688_v4 = vpop.f32.mrf.mxu2 }
 0x2bb   : > { %v3701_v43 = vadd.f32 %v3700_v13, %v3612_v36  ;;  %v9730_v42 = vadd.f32 %v3688_v4, %v3599_v32  ;;  %v7144_v36 = vor.u32 %v7503_v28, %v7143_v51  ;;  %v9738_v13 = vld [vmem:[#allocation3 + $0xf8] sm:$0xf]  ;;  %v10553_v32 = vrot.slane %v9720_v21, 5 }
 0x2bc   : > { %5774 = vmatmul.bf16.gmra.mxu1 %v7028_v57  ;;  %5147 = vst [vmem:[#allocation3 + $0xf8] sm:$0xf] %v5061_v8  ;;  %v9748_v57 = vpop.f32.mrf.mxu1  ;;  %v9753_v8 = vld [vmem:[#allocation2 + $0x70] sm:$0xf] }
 0x2bd   : > { %v5064_v4 = vsel %vm9254_vm0, %v5062_v47, %v10553_v32  ;;  %5735 = vmatmul.bf16.gmra.mxu0 %v7144_v36  ;;  %v9746_v38 = vld [vmem:[#allocation3 + $0x100] sm:$0xf0]  ;;  %v4190_v28 = vadd.f32 %v9261_v52, %v3701_v43  ;;  %v2910_v22 = vrot.slane %v9753_v8, 5  ;;  %v6503_v36 = vor.u32 %v9697_v15, %v9691_v27  ;;  %v9772_v15 = vld [vmem:[#allocation2 + $0x80] sm:$0xf] }
 0x2be   : > { %5148 = vst [vmem:[#allocation3 + $0x104] sm:$0xf] %v5064_v4  ;;  %v2088_v32 = vrot.slane %v2086_v55, 4  ;;  %v9760_v43 = vld [vmem:[#allocation3 + $0x110] sm:$0xf]  ;;  %v5066_v55 = vrot.slane %v4955_v40, 5  ;;  %v3617_v8 = vadd.f32 %v9390_v59, %v10557_v33 }
 0x2bf   : > { %4317 = vmatmul.bf16.gmra.mxu2 %v6775_v63  ;;  %v1971_v63 = vld [vmem:[#allocation2 + $0x64] sm:$0xf]  ;;  %10555 = vst [vmem:[#allocation23_spill] sm:$0xff] %v9760_v43  ;;  %v2911_v27 = vsel %vm9254_vm0, %v2909_v31, %v2910_v22  ;;  %v7475_v31 = vld [vmem:[#allocation3 + $0x34] sm:$0xf]  ;;  %v10560_v43 = vrot.slane %v9772_v15, 5 }
 0x2c0   : > { %v2089_v4 = vrot.slane %v1971_v63, 5  ;;  %2990 = vst [vmem:[#allocation3 + $0x110] sm:$0xf] %v2908_v53  ;;  %v7506_v59 = vld [vmem:[#allocation3 + $0x128] sm:$0xf0] }
 0x2c2   : > { %v3702_v51 = vpop.f32.mrf.mxu3  ;;  %v4278_v25 = vpop.f32.mrf.mxu2  ;;  %v2090_v34 = vsel %vm9254_vm0, %v2088_v32, %v2089_v4 }
 0x2c3   : > { %v9755_v47 = vadd.f32 %v4278_v25, %v4190_v28  ;;  %v3703_v52 = vadd.f32 %v3702_v51, %v3614_v35  ;;  %v9764_v28 = vld [vmem:[#allocation3 + $0x118] sm:$0xf0]  ;;  %v9768_v25 = vpop.f32.mrf.mxu0  ;;  %v7037_v51 = vld [vmem:[#allocation3 + $0x3c] sm:$0xf0]  ;;  %v7535_v35 = vld [vmem:[%s10383_s3 + $0x210] sm:$0xff] }
 0x2c4   : > { %10556 = vst [vmem:[#allocation25_spill] sm:$0xff] %v9768_v25  ;;  %5855 = vmatpush.bf16.msra.mxu2 %v7535_v35  ;;  %v9785_v25 = vpop.f32.mrf.mxu1  ;;  %v10559_v35 = vld [vmem:[#allocation29_spill] sm:$0xff] }
 0x2c5   : > { %2991 = vst [vmem:[#allocation3 + $0x11c] sm:$0xf] %v2911_v27  ;;  %v4192_v63 = vadd.f32 %v9287_v1, %v3703_v52  ;;  %v7040_v27 = vor.u32 %v7475_v31, %v7037_v51  ;;  %v5068_v1 = vrot.slane %v5066_v55, 4  ;;  %v1972_v52 = vld [vmem:[#allocation2 + $0x68] sm:$0xf] }
 0x2c6   : > { %2168 = vst [vmem:[#allocation3 + $0x128] sm:$0xf] %v2090_v34  ;;  %v2092_v53 = vrot.slane %v1972_v52, 5  ;;  %v6787_v34 = vor.u32 %v10559_v35, %v8656_v37 }
 0x2c7   : > { %3744 = vmatmul.bf16.gmra.mxu3 %v6503_v36  ;;  %v10558_v36 = vrot.slane %v9720_v21, 5  ;;  %v7155_v21 = vld [vmem:[#allocation3 + $0x120] sm:$0xf] }
 0x2c9   : > { %v5065_v32 = vrot.slane %v10558_v36, 4  ;;  %v2091_v36 = vrot.slane %v2089_v4, 4 }
 0x2ca   : > { %v3705_v48 = vpop.f32.mrf.mxu3  ;;  %v4280_v12 = vpop.f32.mrf.mxu2 }
 0x2cb   : > { %v3706_v40 = vadd.f32 %v3705_v48, %v3617_v8  ;;  %v9787_v33 = vadd.f32 %v4280_v12, %v4192_v63  ;;  %v5067_v17 = vsel %vm9254_vm0, %v5065_v32, %v5066_v55  ;;  %v7156_v8 = vor.u32 %v7506_v59, %v7155_v21  ;;  %v9793_v48 = vld [vmem:[#allocation3 + $0x110] sm:$0xf]  ;;  %v9803_v4 = vpop.f32.mrf.mxu0  ;;  %v1973_v21 = vld [vmem:[#allocation2 + $0x6c] sm:$0xf] }
 0x2cc   : > { %5779 = vmatmul.bf16.gmra.mxu1 %v7040_v27  ;;  %v5070_v12 = vsel %vm9254_vm0, %v5068_v1, %v10560_v43  ;;  %5149 = vst [vmem:[#allocation3 + $0x110] sm:$0xf] %v5067_v17  ;;  %v2093_v55 = vsel %vm9254_vm0, %v2091_v36, %v2092_v53  ;;  %v9801_v51 = vld [vmem:[#allocation3 + $0x118] sm:$0xf0]  ;;  %v3619_v32 = vadd.f32 %v9422_v50, %v8659_v5  ;;  %v2798_v43 = vld [vmem:[#allocation2 + $0x74] sm:$0xf]  ;;  %v9815_v35 = vpop.f32.mrf.mxu1 }
 0x2cd   : > { %5740 = vmatmul.bf16.gmra.mxu0 %v7156_v8  ;;  %2169 = vst [vmem:[#allocation3 + $0x134] sm:$0xf] %v2093_v55  ;;  %v4195_v63 = vadd.f32 %v9315_v24, %v3706_v40  ;;  %v9808_v17 = vld [vmem:[#allocation2 + $0x78] sm:$0xf]  ;;  %v2912_v27 = vrot.slane %v2910_v22, 4  ;;  %v2913_v1 = vrot.slane %v2798_v43, 5  ;;  %v6515_v36 = vor.u32 %v9746_v38, %v9738_v13 }
 0x2ce   : > { %5150 = vst [vmem:[#allocation3 + $0x11c] sm:$0xf] %v5070_v12  ;;  %v2916_v52 = vrot.slane %v9808_v17, 5  ;;  %v2094_v24 = vrot.slane %v2092_v53, 4  ;;  %v2095_v40 = vrot.slane %v1973_v21, 5 }
 0x2cf   : > { %4322 = vmatmul.bf16.gmra.mxu2 %v6787_v34  ;;  %v9817_v5 = vld [vmem:[#allocation3 + $0x128] sm:$0xf]  ;;  %v2914_v50 = vsel %vm9254_vm0, %v2912_v27, %v2913_v1  ;;  %v2915_v8 = vrot.slane %v2913_v1, 4  ;;  %v4957_v12 = vld [vmem:[#allocation2 + $0x84] sm:$0xf]  ;;  %v10561_v27 = vrot.slane %v9772_v15, 5 }
 0x2d0   : > { %2992 = vst [vmem:[#allocation3 + $0x128] sm:$0xf] %v2914_v50  ;;  %v2096_v55 = vsel %vm9254_vm0, %v2094_v24, %v2095_v40  ;;  %v9827_v38 = vld [vmem:[#allocation2 + $0x88] sm:$0xf]  ;;  %v5072_v53 = vrot.slane %v4957_v12, 5 }
 0x2d1   : > { %v2917_v13 = vsel %vm9254_vm0, %v2915_v8, %v2916_v52  ;;  %v5071_v1 = vrot.slane %v10561_v27, 4  ;;  %v5075_v21 = vrot.slane %v9827_v38, 5  ;;  %2170 = vst [vmem:[#allocation3 + $0x140] sm:$0xf] %v2096_v55  ;;  %v7509_v8 = vld [vmem:[#allocation3 + $0x140] sm:$0xf0]  ;;  %v6799_v55 = vor.u32 %v8718_v44, %v8733_v49 }
 0x2d2   : > { %v3707_v37 = vpop.f32.mrf.mxu3  ;;  %v4283_v31 = vpop.f32.mrf.mxu2  ;;  %v7167_v15 = vld [vmem:[#allocation3 + $0x138] sm:$0xf]  ;;  %v2097_v27 = vrot.slane %v2095_v40, 4 }
 0x2d3   : > { %v9810_v59 = vadd.f32 %v4283_v31, %v4195_v63  ;;  %v3708_v34 = vadd.f32 %v3707_v37, %v3619_v32  ;;  %v7390_v37 = vld [vmem:[%s10383_s3 + $0x88] sm:$0xff]  ;;  %v7049_v63 = vld [vmem:[#allocation3 + $0x54] sm:$0xf0]  ;;  %v3622_v32 = vadd.f32 %v9446_v46, %v8700_v41  ;;  %v9840_v41 = vpop.f32.mrf.mxu0 }
 0x2d4   : > { %v9821_v22 = vld [vmem:[#allocation3 + $0x130] sm:$0xf0]  ;;  %4364 = vmatpush.bf16.msra.mxu3 %v7390_v37  ;;  %v7168_v37 = vor.u32 %v7509_v8, %v7167_v15  ;;  %v6527_v15 = vor.u32 %v9801_v51, %v9793_v48  ;;  %v9884_v51 = vld [vmem:[#allocation2 + $0x90] sm:$0xf] }
 0x2d5   : > { %2993 = vst [vmem:[#allocation3 + $0x134] sm:$0xf] %v2917_v13  ;;  %v4197_v17 = vadd.f32 %v9340_v20, %v3708_v34  ;;  %v5073_v13 = vsel %vm9254_vm0, %v5071_v1, %v5072_v53  ;;  %v5074_v20 = vrot.slane %v5072_v53, 4  ;;  %v1974_v34 = vld [vmem:[#allocation2 + $0x70] sm:$0xf] }
 0x2d6   : > { %v2098_v31 = vrot.slane %v1974_v34, 5  ;;  %v1975_v34 = vld [vmem:[#allocation2 + $0x74] sm:$0xf] }
 0x2d7   : > { %3749 = vmatmul.bf16.gmra.mxu3 %v6515_v36  ;;  %v7478_v36 = vld [vmem:[#allocation3 + $0x4c] sm:$0xf] }
 0x2d8   : > { %v7052_v12 = vor.u32 %v7478_v36, %v7049_v63  ;;  %v5076_v63 = vsel %vm9254_vm0, %v5074_v20, %v5075_v21  ;;  %v2099_v53 = vsel %vm9254_vm0, %v2097_v27, %v2098_v31  ;;  %v2800_v36 = vld [vmem:[#allocation2 + $0x7c] sm:$0xf]  ;;  %v2100_v27 = vrot.slane %v2098_v31, 4 }
 0x2d9   : > { %2171 = vst [vmem:[#allocation3 + $0x14c] sm:$0xf] %v2099_v53 }
 0x2da   : > { %v3710_v43 = vpop.f32.mrf.mxu3  ;;  %v4285_v50 = vpop.f32.mrf.mxu2 }
 0x2db   : > { %v3711_v24 = vadd.f32 %v3710_v43, %v3622_v32  ;;  %v9842_v46 = vadd.f32 %v4285_v50, %v4197_v17  ;;  %v9848_v32 = vld [vmem:[#allocation3 + $0x128] sm:$0xf]  ;;  %v9854_v43 = vpop.f32.mrf.mxu1  ;;  %v3624_v17 = vadd.f32 %v9472_v9, %v8730_v58  ;;  %v9863_v50 = vld [vmem:[#allocation2 + $0x80] sm:$0xf]  ;;  %v9872_v58 = vld [vmem:[#allocation3 + $0x140] sm:$0xf] }
 0x2dc   : > { %5784 = vmatmul.bf16.gmra.mxu1 %v7052_v12  ;;  %5151 = vst [vmem:[#allocation3 + $0x128] sm:$0xf] %v5073_v13  ;;  %v9858_v40 = vld [vmem:[#allocation3 + $0x130] sm:$0xf0]  ;;  %v2918_v12 = vrot.slane %v2916_v52, 4  ;;  %v2919_v13 = vrot.slane %v2800_v36, 5 }
 0x2dd   : > { %5745 = vmatmul.bf16.gmra.mxu0 %v7168_v37  ;;  %5152 = vst [vmem:[#allocation3 + $0x134] sm:$0xf] %v5076_v63  ;;  %v4200_v49 = vadd.f32 %v9372_v26, %v3711_v24  ;;  %v10411_v20 = vrot.slane %v9863_v50, 5  ;;  %v9870_v26 = vpop.f32.mrf.mxu0  ;;  %v4959_v63 = vld [vmem:[#allocation2 + $0x8c] sm:$0xf] }
 0x2de   : > { %10562 = vst [vmem:[#allocation22_spill] sm:$0xff] %v9872_v58  ;;  %v2920_v9 = vsel %vm9254_vm0, %v2918_v12, %v2919_v13  ;;  %v2921_v37 = vrot.slane %v2919_v13, 4  ;;  %v5078_v31 = vrot.slane %v4959_v63, 5  ;;  %v1976_v58 = vld [vmem:[#allocation2 + $0x78] sm:$0xf] }
 0x2df   : > { %4327 = vmatmul.bf16.gmra.mxu2 %v6799_v55  ;;  %v2101_v55 = vrot.slane %v1975_v34, 5  ;;  %2994 = vst [vmem:[#allocation3 + $0x140] sm:$0xf] %v2920_v9  ;;  %v7481_v9 = vld [vmem:[#allocation3 + $0x64] sm:$0xf] }
 0x2e0   : > { %v9876_v52 = vld [vmem:[#allocation3 + $0x148] sm:$0xf0]  ;;  %v2923_v48 = vsel %vm9254_vm0, %v2921_v37, %v10411_v20  ;;  %v5080_v12 = vrot.slane %v5078_v31, 4 }
 0x2e1   : > { %10563 = vst [vmem:[#allocation26_spill] sm:$0xff] %v9876_v52  ;;  %v2102_v53 = vsel %vm9254_vm0, %v2100_v27, %v2101_v55  ;;  %v5081_v27 = vrot.slane %v9884_v51, 5  ;;  %v2103_v38 = vrot.slane %v2101_v55, 4  ;;  %v10566_v51 = vld [vmem:[#allocation33_spill] sm:$0xff] }
 0x2e2   : > { %v3712_v44 = vpop.f32.mrf.mxu3  ;;  %v4288_v1 = vpop.f32.mrf.mxu2  ;;  %2995 = vst [vmem:[#allocation3 + $0x14c] sm:$0xf] %v2923_v48 }
 0x2e3   : > { %v9865_v8 = vadd.f32 %v4288_v1, %v4200_v49  ;;  %v3713_v24 = vadd.f32 %v3712_v44, %v3624_v17  ;;  %v7061_v44 = vld [vmem:[#allocation3 + $0x6c] sm:$0xf0]  ;;  %v7534_v49 = vld [vmem:[%s10383_s3 + $0x208] sm:$0xff]  ;;  %v10564_v17 = vld [vmem:[#allocation30_spill] sm:$0xff]  ;;  %v9891_v36 = vpop.f32.mrf.mxu1  ;;  %2172 = vst [vmem:[#allocation3 + $0x158] sm:$0xf] %v2102_v53 }
 0x2e4   : > { %v3627_v1 = vadd.f32 %v9500_v23, %v10564_v17  ;;  %5856 = vmatpush.bf16.msra.mxu2 %v7534_v49  ;;  %v7512_v23 = vld [vmem:[#allocation3 + $0x158] sm:$0xf0]  ;;  %v7064_v17 = vor.u32 %v7481_v9, %v7061_v44  ;;  %v5082_v44 = vsel %vm9254_vm0, %v5080_v12, %v5081_v27 }
 0x2e5   : > { %v4202_v34 = vadd.f32 %v9401_v16, %v3713_v24  ;;  %v7179_v16 = vld [vmem:[#allocation3 + $0x150] sm:$0xf]  ;;  %v10565_v24 = vld [vmem:[#allocation35_spill] sm:$0xff] }
 0x2e6   : > { %v6811_v52 = vor.u32 %v10566_v51, %v10565_v24  ;;  %v7180_v49 = vor.u32 %v7512_v23, %v7179_v16  ;;  %v9905_v53 = vld [vmem:[#allocation3 + $0x140] sm:$0xf]  ;;  %v9920_v23 = vld [vmem:[#allocation2 + $0x88] sm:$0xf]  ;;  %v1977_v24 = vld [vmem:[#allocation2 + $0x7c] sm:$0xf] }
 0x2e7   : > { %3754 = vmatmul.bf16.gmra.mxu3 %v6527_v15  ;;  %v5077_v15 = vrot.slane %v5075_v21, 4  ;;  %v2104_v21 = vrot.slane %v1976_v58, 5 }
 0x2e9   : > { %v5079_v48 = vsel %vm9254_vm0, %v5077_v15, %v5078_v31  ;;  %v9913_v31 = vld [vmem:[#allocation3 + $0x148] sm:$0xf0] }
 0x2ea   : > { %v3715_v13 = vpop.f32.mrf.mxu3  ;;  %v4290_v63 = vpop.f32.mrf.mxu2  ;;  %5153 = vst [vmem:[#allocation3 + $0x140] sm:$0xf] %v5079_v48 }
 0x2eb   : > { %v3716_v37 = vadd.f32 %v3715_v13, %v3627_v1  ;;  %v9899_v20 = vadd.f32 %v4290_v63, %v4202_v34  ;;  %v2105_v1 = vsel %vm9254_vm0, %v2103_v38, %v2104_v21  ;;  %v9911_v13 = vpop.f32.mrf.mxu0  ;;  %5154 = vst [vmem:[#allocation3 + $0x14c] sm:$0xf] %v5082_v44  ;;  %v10567_v34 = vld [vmem:[#allocation31_spill] sm:$0xff]  ;;  %v9918_v9 = vpop.f32.mrf.mxu1  ;;  %v2928_v38 = vrot.slane %v9920_v23, 5 }
 0x2ec   : > { %5789 = vmatmul.bf16.gmra.mxu1 %v7064_v17  ;;  %2173 = vst [vmem:[#allocation3 + $0x164] sm:$0xf] %v2105_v1  ;;  %v3629_v15 = vadd.f32 %v9528_v60, %v10567_v34  ;;  %v2802_v63 = vld [vmem:[#allocation2 + $0x84] sm:$0xf]  ;;  %v2107_v60 = vrot.slane %v1977_v24, 5 }
 0x2ed   : > { %5750 = vmatmul.bf16.gmra.mxu0 %v7180_v49  ;;  %v4205_v58 = vadd.f32 %v9428_v2, %v3716_v37  ;;  %v2925_v16 = vrot.slane %v2802_v63, 5  ;;  %v6539_v2 = vor.u32 %v9858_v40, %v9848_v32  ;;  %v2106_v37 = vrot.slane %v2104_v21, 4  ;;  %v9929_v49 = vld [vmem:[#allocation3 + $0x158] sm:$0xf]  ;;  %v9939_v40 = vld [vmem:[#allocation2 + $0x98] sm:$0xf] }
 0x2ee   : > { %v5087_v24 = vrot.slane %v9939_v40, 5  ;;  %v2109_v40 = vrot.slane %v2107_v60, 4  ;;  %v7477_v23 = vld [vmem:[#allocation3 + $0x40] sm:$0xf0] }
 0x2ef   : > { %4332 = vmatmul.bf16.gmra.mxu2 %v6811_v52  ;;  %v10568_v52 = vrot.slane %v9863_v50, 5  ;;  %v2927_v1 = vrot.slane %v2925_v16, 4  ;;  %v4961_v50 = vld [vmem:[#allocation2 + $0x94] sm:$0xf]  ;;  %v2108_v34 = vsel %vm9254_vm0, %v2106_v37, %v2107_v60 }
 0x2f0   : > { %v5084_v21 = vrot.slane %v4961_v50, 5  ;;  %2174 = vst [vmem:[#allocation3 + $0x170] sm:$0xf] %v2108_v34 }
 0x2f1   : > { %v2924_v48 = vrot.slane %v10568_v52, 4  ;;  %v2929_v32 = vsel %vm9254_vm0, %v2927_v1, %v2928_v38 }
 0x2f2   : > { %v3717_v55 = vpop.f32.mrf.mxu3  ;;  %v4293_v12 = vpop.f32.mrf.mxu2 }
 0x2f3   : > { %v9922_v17 = vadd.f32 %v4293_v12, %v4205_v58  ;;  %v3718_v51 = vadd.f32 %v3717_v55, %v3629_v15  ;;  %v2926_v44 = vsel %vm9254_vm0, %v2924_v48, %v2925_v16  ;;  %v9933_v58 = vld [vmem:[#allocation3 + $0x160] sm:$0xf0]  ;;  %v7389_v55 = vld [vmem:[%s10383_s3 + $0x80] sm:$0xff]  ;;  %v7073_v15 = vld [vmem:[#allocation3 + $0x84] sm:$0xf0]  ;;  %v5083_v16 = vrot.slane %v5081_v27, 4 }
 0x2f4   : > { %2996 = vst [vmem:[#allocation3 + $0x158] sm:$0xf] %v2926_v44  ;;  %v10569_v12 = vld [vmem:[#allocation32_spill] sm:$0xff]  ;;  %4365 = vmatpush.bf16.msra.mxu3 %v7389_v55  ;;  %v1978_v27 = vld [vmem:[#allocation2 + $0x80] sm:$0x1] }
 0x2f5   : > { %v3632_v63 = vadd.f32 %v9551_v61, %v10569_v12  ;;  %2997 = vst [vmem:[#allocation3 + $0x164] sm:$0xf] %v2929_v32  ;;  %v4207_v48 = vadd.f32 %v9458_v19, %v3718_v51  ;;  %v7745_v61 = vld [vmem:[%s10383_s3 + $0x1b8] sm:$0xff]  ;;  %v5085_v32 = vsel %vm9254_vm0, %v5083_v16, %v5084_v21  ;;  %v5086_v19 = vrot.slane %v5084_v21, 4  ;;  %v9957_v51 = vpop.f32.mrf.mxu1  ;;  %v7746_v21 = vld [vmem:[%s10383_s3 + $0x1b0] sm:$0xff] }
 0x2f6   : > { %v2110_v34 = vrot.slane %v1978_v27, 5  ;;  %v10570_v55 = vld [vmem:[#allocation38_spill] sm:$0xff]  ;;  %v2930_v27 = vrot.slane %v2928_v38, 4 }
 0x2f7   : > { %3759 = vmatmul.bf16.gmra.mxu3 %v6539_v2  ;;  %v7484_v2 = vld [vmem:[#allocation3 + $0x7c] sm:$0xf] }
 0x2f8   : > { %v7076_v1 = vor.u32 %v7484_v2, %v7073_v15  ;;  %7652 = vmatpush.bf16.msrb.mxu3 %v7745_v61  ;;  %v6823_v15 = vor.u32 %v10570_v55, %v9035_v3  ;;  %v10571_v16 = vld [vmem:[#allocation34_spill] sm:$0xff]  ;;  %v2805_v61 = vld [vmem:[#allocation2 + $0x90] sm:$0x1]  ;;  %v6551_v55 = vor.u32 %v9913_v31, %v9905_v53 }
 0x2f9   : > { %v3634_v2 = vadd.f32 %v9582_v29, %v10571_v16  ;;  %v7085_v16 = vld [vmem:[#allocation3 + $0x9c] sm:$0xf0] }
 0x2fa   : > { %v3720_v52 = vpop.f32.mrf.mxu3  ;;  %v4295_v44 = vpop.f32.mrf.mxu2  ;;  %v7533_v53 = vld [vmem:[%s10383_s3 + $0x200] sm:$0xff] }
 0x2fb   : > { %v3721_v37 = vadd.f32 %v3720_v52, %v3632_v63  ;;  %v9953_v50 = vadd.f32 %v4295_v44, %v4207_v48  ;;  %v9961_v12 = vld [vmem:[#allocation3 + $0x158] sm:$0xf]  ;;  %v5088_v63 = vsel %vm9254_vm0, %v5086_v19, %v5087_v24  ;;  %v2111_v52 = vsel %vm9254_vm0, %v2109_v40, %v2110_v34  ;;  %v7748_v31 = vld [vmem:[%s10383_s3 + $0x1a0] sm:$0xff]  ;;  %5857 = vmatpush.bf16.msra.mxu2 %v7533_v53 }
 0x2fc   : > { %5794 = vmatmul.bf16.gmra.mxu1 %v7076_v1  ;;  %5155 = vst [vmem:[#allocation3 + $0x158] sm:$0xf] %v5085_v32  ;;  %7653 = vmatpush.bf16.msrb.mxu3 %v7746_v21  ;;  %v9970_v60 = vld [vmem:[#allocation3 + $0x160] sm:$0xf0]  ;;  %v2804_v1 = vld [vmem:[#allocation2 + $0x8c] sm:$0xf] }
 0x2fd   : > { %2175 = vst [vmem:[#allocation3 + $0x17c] sm:$0xf] %v2111_v52  ;;  %v4210_v48 = vadd.f32 %v9478_v45, %v3721_v37  ;;  %v7747_v32 = vld [vmem:[%s10383_s3 + $0x1a8] sm:$0xff]  ;;  %v2931_v40 = vrot.slane %v2804_v1, 5  ;;  %v2934_v34 = vrot.slane %v2805_v61, 5 }
 0x2fe   : > { %5156 = vst [vmem:[#allocation3 + $0x164] sm:$0xf] %v5088_v63  ;;  %v9982_v37 = vld [vmem:[#allocation3 + $0x170] sm:$0xf]  ;;  %v9986_v63 = vpop.f32.mrf.mxu1  ;;  %v4963_v21 = vld [vmem:[#allocation2 + $0x9c] sm:$0xf] }
 0x2ff   : > { %4337 = vmatmul.bf16.gmra.mxu2 %v6823_v15  ;;  %v2932_v29 = vsel %vm9254_vm0, %v2930_v27, %v2931_v40  ;;  %v2933_v15 = vrot.slane %v2931_v40, 4  ;;  %v4964_v1 = vld [vmem:[#allocation2 + $0xa0] sm:$0x1]  ;;  %v5089_v27 = vrot.slane %v5087_v24, 4 }
 0x300   : > { %7654 = vmatpush.bf16.msrb.mxu3 %v7747_v32  ;;  %2998 = vst [vmem:[#allocation3 + $0x170] sm:$0xf] %v2932_v29 }
 0x301   : > { %v2935_v38 = vsel %vm9254_vm0, %v2933_v15, %v2934_v34  ;;  %v7487_v34 = vld [vmem:[#allocation3 + $0x94] sm:$0xf] }
 0x302   : > { %v3722_v3 = vpop.f32.mrf.mxu3  ;;  %v4298_v44 = vpop.f32.mrf.mxu2  ;;  %v7088_v15 = vor.u32 %v7487_v34, %v7085_v16 }
 0x303   : > { %v9978_v19 = vadd.f32 %v4298_v44, %v4210_v48  ;;  %v3723_v45 = vadd.f32 %v3722_v3, %v3634_v2  ;;  %v5090_v48 = vrot.slane %v4963_v21, 5  ;;  %v10572_v2 = vld [vmem:[#allocation36_spill] sm:$0xff]  ;;  %v5093_v3 = vrot.slane %v4964_v1, 5 }
 0x304   : > { %v9988_v52 = vld [vmem:[#allocation3 + $0x178] sm:$0xf0]  ;;  %7655 = vmatpush.bf16.msrb.mxu3 %v7748_v31  ;;  %v3637_v44 = vadd.f32 %v9605_v54, %v10572_v2  ;;  %v7749_v54 = vld [vmem:[%s10383_s3 + $0x198] sm:$0xff]  ;;  %v6563_v1 = vor.u32 %v9970_v60, %v9961_v12 }
 0x305   : > { %2999 = vst [vmem:[#allocation3 + $0x17c] sm:$0xf] %v2935_v38  ;;  %v4212_v32 = vadd.f32 %v9510_v0, %v3723_v45  ;;  %v5092_v40 = vrot.slane %v5090_v48, 4  ;;  %v5091_v31 = vsel %vm9254_vm0, %v5089_v27, %v5090_v48  ;;  %v6835_v0 = vor.u32 %v9144_v30, %v9154_v18  ;;  %v7750_v48 = vld [vmem:[%s10383_s3 + $0x190] sm:$0xff]  ;;  %v10574_v27 = vld [vmem:[#allocation39_spill] sm:$0xff] }
 0x306   : > { %v10017_v16 = vpop.f32.mrf.mxu1  ;;  %v10573_v30 = vld [vmem:[#allocation37_spill] sm:$0xff] }
 0x307   : > { %3764 = vmatmul.bf16.gmra.mxu3 %v6551_v55  ;;  %v6574_v24 = vld [vmem:[#allocation3 + $0x170] sm:$0xf]  ;;  %v5094_v45 = vsel %vm9254_vm0, %v5092_v40, %v5093_v3  ;;  %v3639_v18 = vadd.f32 %v9648_v62, %v10573_v30  ;;  %v7751_v3 = vld [vmem:[%s10383_s3 + $0x188] sm:$0xff]  ;;  %v3642_v62 = vadd.f32 %v9680_v7, %v10574_v27 }
 0x308   : > { %7656 = vmatpush.bf16.msrb.mxu3 %v7749_v54  ;;  %5157 = vst [vmem:[#allocation3 + $0x170] sm:$0xf] %v5091_v31  ;;  %v10575_v54 = vld [vmem:[#allocation42_spill] sm:$0xff]  ;;  %v10579_v27 = vld [vmem:[#allocation43_spill] sm:$0xff] }
 0x30a   : > { %v3725_v61 = vpop.f32.mrf.mxu3  ;;  %v4300_v29 = vpop.f32.mrf.mxu2 }
 0x30b   : > { %v3726_v55 = vadd.f32 %v3725_v61, %v3637_v44  ;;  %v10003_v21 = vadd.f32 %v4300_v29, %v4212_v32  ;;  %v7097_v32 = vld [vmem:[#allocation3 + $0xb4] sm:$0xf0] }
 0x30c   : > { %5799 = vmatmul.bf16.gmra.mxu1 %v7088_v15  ;;  %v7444_v38 = vld [vmem:[#allocation3 + $0x178] sm:$0xf0]  ;;  %7657 = vmatpush.bf16.msrb.mxu3 %v7750_v48 }
 0x30d   : > { %5158 = vst [vmem:[#allocation3 + $0x17c] sm:$0xf] %v5094_v45  ;;  %v4215_v2 = vadd.f32 %v9537_v14, %v3726_v55  ;;  %v7752_v14 = vld [vmem:[%s10383_s3 + $0x180] sm:$0xff]  ;;  %v7490_v55 = vld [vmem:[#allocation3 + $0xac] sm:$0xf] }
 0x30e   : > { %v10035_v29 = vpop.f32.mrf.mxu1  ;;  %v7100_v12 = vor.u32 %v7490_v55, %v7097_v32  ;;  %v10576_v45 = vld [vmem:[#allocation40_spill] sm:$0xff]  ;;  %v10580_v55 = vld [vmem:[#allocation45_spill] sm:$0xff] }
 0x30f   : > { %4342 = vmatmul.bf16.gmra.mxu2 %v6835_v0  ;;  %v6847_v0 = vor.u32 %v10575_v54, %v9219_v6  ;;  %v3644_v48 = vadd.f32 %v9701_v11, %v10576_v45  ;;  %v10578_v32 = vld [vmem:[#allocation68_spill] sm:$0xff]  ;;  %v7493_v6 = vld [vmem:[#allocation3 + $0xc4] sm:$0xf]  ;;  %v10584_v45 = vld [vmem:[#allocation70_spill] sm:$0xff] }
 0x310   : > { %7658 = vmatpush.bf16.msrb.mxu3 %v7751_v3  ;;  %v6575_v3 = vor.u32 %v7444_v38, %v6574_v24  ;;  %v10582_v24 = vld [vmem:[#allocation41_spill] sm:$0xff]  ;;  %v10583_v38 = vld [vmem:[#allocation44_spill] sm:$0xff] }
 0x311   : > { %v3649_v54 = vadd.f32 %v10583_v38, %v10582_v24  ;;  %v7019_v24 = vld [vmem:[#allocation3 + $0x8] sm:$0xf] }
 0x312   : > { %v3727_v53 = vpop.f32.mrf.mxu3  ;;  %v4303_v44 = vpop.f32.mrf.mxu2 }
 0x313   : > { %v10022_v39 = vadd.f32 %v4303_v44, %v4215_v2  ;;  %v3728_v61 = vadd.f32 %v3727_v53, %v3639_v18  ;;  %v10577_v53 = vld [vmem:[#allocation63_spill] sm:$0xff] }
 0x314   : > { %7659 = vmatpush.bf16.msrb.mxu3 %v7752_v14 }
 0x315   : > { %v4217_v34 = vadd.f32 %v9555_v56, %v3728_v61 }
 0x316   : > { %v10046_v18 = vpop.f32.mrf.mxu1 }
 0x317   : > { %3769 = vmatmul.bf16.gmra.mxu3 %v6563_v1  ;;  %v7109_v1 = vld [vmem:[#allocation3 + $0xcc] sm:$0xf0] }
 0x318   : > { %v7112_v11 = vor.u32 %v7493_v6, %v7109_v1  ;;  %v7121_v1 = vld [vmem:[#allocation3 + $0xe4] sm:$0xf0] }
 0x31a   : > { %v3730_v40 = vpop.f32.mrf.mxu3  ;;  %v4305_v31 = vpop.f32.mrf.mxu2 }
 0x31b   : > { %v3731_v15 = vadd.f32 %v3730_v40, %v3642_v62  ;;  %v10037_v60 = vadd.f32 %v4305_v31, %v4217_v34 }
 0x31c   : > { %5804 = vmatmul.bf16.gmra.mxu1 %v7100_v12 }
 0x31d   : > { %v4220_v2 = vadd.f32 %v10577_v53, %v3731_v15  ;;  %v10581_v15 = vld [vmem:[#allocation17_spill] sm:$0xff] }
 0x31e   : > { %v6859_v31 = vor.u32 %v10581_v15, %v10580_v55  ;;  %v10054_v12 = vpop.f32.mrf.mxu1  ;;  %v7471_v15 = vld [vmem:[#allocation3 + $0x10] sm:$0xf0] }
 0x31f   : > { %4347 = vmatmul.bf16.gmra.mxu2 %v6847_v0  ;;  %v7020_v38 = vor.u32 %v7471_v15, %v7019_v24  ;;  %v7499_v15 = vld [vmem:[#allocation3 + $0xf4] sm:$0xf] }
 0x322   : > { %v3732_v7 = vpop.f32.mrf.mxu3  ;;  %v4308_v44 = vpop.f32.mrf.mxu2 }
 0x323   : > { %v3733_v56 = vadd.f32 %v3732_v7, %v3644_v48  ;;  %v10044_v30 = vadd.f32 %v4308_v44, %v4220_v2  ;;  %v10586_v44 = vld [vmem:[#allocation46_spill] sm:$0xff] }
 0x325   : > { %v4222_v14 = vadd.f32 %v10578_v32, %v3733_v56  ;;  %v10585_v56 = vld [vmem:[#allocation19_spill] sm:$0xff] }
 0x327   : > { %3774 = vmatmul.bf16.gmra.mxu3 %v6575_v3  ;;  %v10587_v3 = vor.u32 %v10585_v56, %v10586_v44 }
 0x32a   : > { %v3735_v61 = vpop.f32.mrf.mxu3  ;;  %v4310_v40 = vpop.f32.mrf.mxu2 }
 0x32b   : > { %v3736_v62 = vadd.f32 %v3735_v61, %v10579_v27  ;;  %v10050_v34 = vadd.f32 %v4310_v40, %v4222_v14  ;;  %v10064_v61 = vpop.f32.mrf.mxu1  ;;  %v10588_v14 = vld [vmem:[#allocation74_spill] sm:$0xff]  ;;  %v10589_v40 = vld [vmem:[#allocation16_spill] sm:$0xff] }
 0x32c   : > { %5809 = vmatmul.bf16.gmra.mxu1 %v7112_v11  ;;  %v7496_v27 = vld [vmem:[#allocation3 + $0xdc] sm:$0xf] }
 0x32d   : > { %v4225_v48 = vadd.f32 %v10584_v45, %v3736_v62  ;;  %v7124_v62 = vor.u32 %v7496_v27, %v7121_v1  ;;  %v10594_v1 = vld [vmem:[#allocation48_spill] sm:$0xff]  ;;  %v7133_v27 = vld [vmem:[#allocation3 + $0xfc] sm:$0xf0] }
 0x32f   : > { %4352 = vmatmul.bf16.gmra.mxu2 %v6859_v31 }
 0x332   : > { %v3737_v0 = vpop.f32.mrf.mxu3  ;;  %v4313_v53 = vpop.f32.mrf.mxu2 }
 0x333   : > { %v3738_v7 = vadd.f32 %v3737_v0, %v3649_v54  ;;  %v10059_v2 = vadd.f32 %v4313_v53, %v4225_v48  ;;  %v10590_v54 = vld [vmem:[#allocation7_spill] sm:$0xff]  ;;  %v10073_v44 = vpop.f32.mrf.mxu1 }
 0x334   : > { %v10591_v0 = vld [vmem:[#allocation47_spill] sm:$0xff] }
 0x335   : > { %v4227_v6 = vadd.f32 %v10588_v14, %v3738_v7  ;;  %v3654_v45 = vadd.f32 %v10591_v0, %v10590_v54  ;;  %v10592_v53 = vld [vmem:[#allocation75_spill] sm:$0xff]  ;;  %v10593_v14 = vld [vmem:[#allocation50_spill] sm:$0xff]  ;;  %v7474_v54 = vld [vmem:[#allocation3 + $0x28] sm:$0xf0] }
 0x337   : > { %4366 = vmatmul.bf16.vlgmr.msra.gmra.mxu3 %v10587_v3 }
 0x33a   : > { %v3740_v32 = vpop.f32.mrf.mxu3  ;;  %v4315_v55 = vpop.f32.mrf.mxu2 }
 0x33b   : > { %v3741_v11 = vadd.f32 %v3740_v32, %v10589_v40  ;;  %v10068_v31 = vadd.f32 %v4315_v55, %v4227_v6  ;;  %v10595_v6 = vor.u32 %v10593_v14, %v10594_v1  ;;  %v10598_v1 = vld [vmem:[#allocation49_spill] sm:$0xff] }
 0x33c   : > { %5814 = vmatmul.bf16.gmra.mxu1 %v7124_v62  ;;  %v10596_v62 = vld [vmem:[#allocation21_spill] sm:$0xff] }
 0x33d   : > { %v4230_v56 = vadd.f32 %v10592_v53, %v3741_v11  ;;  %v7136_v11 = vor.u32 %v7499_v15, %v7133_v27  ;;  %v10601_v27 = vld [vmem:[#allocation27_spill] sm:$0xff] }
 0x33f   : > { %5858 = vmatmul.bf16.vlgmr.msra.gmra.mxu2 %v7020_v38 }
 0x342   : > { %v3742_v48 = vpop.f32.mrf.mxu3  ;;  %v4318_v3 = vpop.f32.mrf.mxu2 }
 0x343   : > { %v3743_v7 = vadd.f32 %v3742_v48, %v3654_v45  ;;  %v10075_v32 = vadd.f32 %v4318_v3, %v4230_v56  ;;  %v10084_v45 = vpop.f32.mrf.mxu1  ;;  %v7031_v48 = vld [vmem:[#allocation3 + $0x20] sm:$0xf] }
 0x344   : > { %v7032_v53 = vor.u32 %v7474_v54, %v7031_v48  ;;  %v7502_v48 = vld [vmem:[#allocation3 + $0x10c] sm:$0xf] }
 0x345   : > { %v4232_v55 = vadd.f32 %v9748_v57, %v3743_v7  ;;  %v10599_v57 = vld [vmem:[#allocation51_spill] sm:$0xff] }
 0x346   : > { %v3659_v7 = vadd.f32 %v10599_v57, %v10598_v1 }
 0x347   : > { %4371 = vmatmul.bf16.gmra.mxu3 %v10595_v6 }
 0x34a   : > { %v3745_v40 = vpop.f32.mrf.mxu3  ;;  %v4320_v38 = vpop.f32.mrf.mxu2 }
 0x34b   : > { %v3746_v24 = vadd.f32 %v3745_v40, %v10596_v62  ;;  %v10082_v0 = vadd.f32 %v4320_v38, %v4232_v55  ;;  %v10091_v62 = vpop.f32.mrf.mxu1  ;;  %v10602_v55 = vld [vmem:[#allocation24_spill] sm:$0xff]  ;;  %v7145_v38 = vld [vmem:[#allocation3 + $0x114] sm:$0xf0] }
 0x34c   : > { %5819 = vmatmul.bf16.gmra.mxu1 %v7136_v11  ;;  %v10603_v15 = vor.u32 %v10601_v27, %v10602_v55  ;;  %v10606_v55 = vld [vmem:[#allocation11_spill] sm:$0xff] }
 0x34d   : > { %10597 = vst [vmem:[#allocation28_spill] sm:$0xff] %v10082_v0  ;;  %v4235_v3 = vadd.f32 %v9785_v25, %v3746_v24  ;;  %v7148_v0 = vor.u32 %v7502_v48, %v7145_v38  ;;  %v10609_v38 = vld [vmem:[#allocation8_spill] sm:$0xff]  ;;  %v7157_v48 = vld [vmem:[#allocation3 + $0x12c] sm:$0xf0] }
 0x34f   : > { %5863 = vmatmul.bf16.gmra.mxu2 %v7032_v53  ;;  %v10604_v53 = vld [vmem:[#allocation9_spill] sm:$0xff] }
 0x352   : > { %v3747_v56 = vpop.f32.mrf.mxu3  ;;  %v4323_v14 = vpop.f32.mrf.mxu2 }
 0x353   : > { %v10089_v6 = vadd.f32 %v4323_v14, %v4235_v3  ;;  %v3748_v40 = vadd.f32 %v3747_v56, %v3659_v7  ;;  %v7043_v3 = vld [vmem:[#allocation3 + $0x38] sm:$0xf]  ;;  %v10100_v14 = vpop.f32.mrf.mxu1 }
 0x354   : > { %v7044_v56 = vor.u32 %v7477_v23, %v7043_v3 }
 0x355   : > { %10600 = vst [vmem:[#allocation29_spill] sm:$0xff] %v10089_v6  ;;  %v4237_v54 = vadd.f32 %v9815_v35, %v3748_v40  ;;  %v10607_v35 = vld [vmem:[#allocation10_spill] sm:$0xff] }
 0x356   : > { %v3664_v40 = vadd.f32 %v10607_v35, %v10606_v55 }
 0x357   : > { %4376 = vmatmul.bf16.gmra.mxu3 %v10603_v15 }
 0x35a   : > { %v3750_v11 = vpop.f32.mrf.mxu3  ;;  %v4325_v24 = vpop.f32.mrf.mxu2 }
 0x35b   : > { %v3751_v25 = vadd.f32 %v3750_v11, %v10604_v53  ;;  %v10098_v1 = vadd.f32 %v4325_v24, %v4237_v54  ;;  %v10608_v53 = vld [vmem:[#allocation52_spill] sm:$0xff]  ;;  %v7505_v24 = vld [vmem:[#allocation3 + $0x124] sm:$0xf]  ;;  %v10111_v3 = vpop.f32.mrf.mxu1 }
 0x35c   : > { %5824 = vmatmul.bf16.gmra.mxu1 %v7148_v0  ;;  %v10610_v54 = vor.u32 %v10608_v53, %v10609_v38  ;;  %v7160_v6 = vor.u32 %v7505_v24, %v7157_v48  ;;  %v10613_v53 = vld [vmem:[#allocation13_spill] sm:$0xff]  ;;  %v7169_v24 = vld [vmem:[#allocation3 + $0x144] sm:$0xf0] }
 0x35d   : > { %10605 = vst [vmem:[#allocation30_spill] sm:$0xff] %v10098_v1  ;;  %v4240_v7 = vadd.f32 %v9854_v43, %v3751_v25  ;;  %v7480_v1 = vld [vmem:[#allocation3 + $0x58] sm:$0xf0]  ;;  %v10617_v48 = vld [vmem:[#allocation53_spill] sm:$0xff] }
 0x35f   : > { %5868 = vmatmul.bf16.gmra.mxu2 %v7044_v56  ;;  %v10611_v56 = vld [vmem:[#allocation55_spill] sm:$0xff] }
 0x362   : > { %v3752_v57 = vpop.f32.mrf.mxu3  ;;  %v4328_v27 = vpop.f32.mrf.mxu2 }
 0x363   : > { %v10105_v15 = vadd.f32 %v4328_v27, %v4240_v7  ;;  %v3753_v11 = vadd.f32 %v3752_v57, %v3664_v40  ;;  %v7055_v7 = vld [vmem:[#allocation3 + $0x50] sm:$0xf] }
 0x364   : > { %v7056_v57 = vor.u32 %v7480_v1, %v7055_v7  ;;  %v10619_v7 = vld [vmem:[#allocation58_spill] sm:$0xff] }
 0x365   : > { %v4242_v23 = vadd.f32 %v9891_v36, %v3753_v11  ;;  %v10614_v36 = vld [vmem:[#allocation57_spill] sm:$0xff] }
 0x366   : > { %v3669_v11 = vadd.f32 %v10614_v36, %v10613_v53 }
 0x367   : > { %4381 = vmatmul.bf16.gmra.mxu3 %v10610_v54  ;;  %v10121_v54 = vpop.f32.mrf.mxu1 }
 0x36a   : > { %v3755_v0 = vpop.f32.mrf.mxu3  ;;  %v4330_v25 = vpop.f32.mrf.mxu2 }
 0x36b   : > { %v3756_v43 = vadd.f32 %v3755_v0, %v10611_v56  ;;  %v10114_v55 = vadd.f32 %v4330_v25, %v4242_v23  ;;  %v10616_v56 = vld [vmem:[#allocation54_spill] sm:$0xff] }
 0x36c   : > { %5829 = vmatmul.bf16.gmra.mxu1 %v7160_v6  ;;  %v10618_v23 = vor.u32 %v10616_v56, %v10617_v48  ;;  %v7508_v25 = vld [vmem:[#allocation3 + $0x13c] sm:$0xf] }
 0x36d   : > { %10612 = vst [vmem:[#allocation35_spill] sm:$0xff] %v10114_v55  ;;  %v4245_v35 = vadd.f32 %v9918_v9, %v3756_v43  ;;  %v7172_v55 = vor.u32 %v7508_v25, %v7169_v24  ;;  %v10621_v48 = vld [vmem:[#allocation14_spill] sm:$0xff]  ;;  %v10624_v24 = vld [vmem:[#allocation12_spill] sm:$0xff]  ;;  %v7181_v25 = vld [vmem:[#allocation3 + $0x15c] sm:$0xf0] }
 0x36f   : > { %5873 = vmatmul.bf16.gmra.mxu2 %v7056_v57  ;;  %v7483_v57 = vld [vmem:[#allocation3 + $0x70] sm:$0xf0] }
 0x372   : > { %v3757_v27 = vpop.f32.mrf.mxu3  ;;  %v4333_v40 = vpop.f32.mrf.mxu2 }
 0x373   : > { %v10119_v38 = vadd.f32 %v4333_v40, %v4245_v35  ;;  %v3758_v0 = vadd.f32 %v3757_v27, %v3669_v11  ;;  %v7067_v35 = vld [vmem:[#allocation3 + $0x68] sm:$0xf]  ;;  %v10130_v27 = vpop.f32.mrf.mxu1 }
 0x374   : > { %v7068_v40 = vor.u32 %v7483_v57, %v7067_v35  ;;  %v7511_v35 = vld [vmem:[#allocation3 + $0x154] sm:$0xf] }
 0x375   : > { %10615 = vst [vmem:[#allocation33_spill] sm:$0xff] %v10119_v38  ;;  %v4247_v1 = vadd.f32 %v9957_v51, %v3758_v0  ;;  %v10622_v51 = vld [vmem:[#allocation60_spill] sm:$0xff]  ;;  %v7184_v38 = vor.u32 %v7511_v35, %v7181_v25  ;;  %v7193_v25 = vld [vmem:[#allocation3 + $0x174] sm:$0xf0]  ;;  %v10632_v35 = vld [vmem:[#allocation69_spill] sm:$0xff] }
 0x376   : > { %v3674_v0 = vadd.f32 %v10622_v51, %v10621_v48 }
 0x377   : > { %4386 = vmatmul.bf16.gmra.mxu3 %v10618_v23 }
 0x37a   : > { %v3760_v6 = vpop.f32.mrf.mxu3  ;;  %v4335_v43 = vpop.f32.mrf.mxu2 }
 0x37b   : > { %v3761_v9 = vadd.f32 %v3760_v6, %v10619_v7  ;;  %v10128_v53 = vadd.f32 %v4335_v43, %v4247_v1  ;;  %v10623_v7 = vld [vmem:[#allocation56_spill] sm:$0xff] }
 0x37c   : > { %5834 = vmatmul.bf16.gmra.mxu1 %v7172_v55  ;;  %v10625_v1 = vor.u32 %v10623_v7, %v10624_v24  ;;  %v10140_v55 = vpop.f32.mrf.mxu1  ;;  %v10627_v7 = vld [vmem:[#allocation67_spill] sm:$0xff] }
 0x37d   : > { %10620 = vst [vmem:[#allocation31_spill] sm:$0xff] %v10128_v53  ;;  %v4250_v11 = vadd.f32 %v9986_v63, %v3761_v9  ;;  %v7486_v53 = vld [vmem:[#allocation3 + $0x88] sm:$0xf0] }
 0x37f   : > { %5878 = vmatmul.bf16.gmra.mxu2 %v7068_v40  ;;  %v10626_v40 = vld [vmem:[#allocation64_spill] sm:$0xff] }
 0x382   : > { %v3762_v36 = vpop.f32.mrf.mxu3  ;;  %v4338_v56 = vpop.f32.mrf.mxu2 }
 0x383   : > { %v10135_v23 = vadd.f32 %v4338_v56, %v4250_v11  ;;  %v3763_v6 = vadd.f32 %v3762_v36, %v3674_v0  ;;  %v7079_v11 = vld [vmem:[#allocation3 + $0x80] sm:$0xf] }
 0x384   : > { %v7080_v36 = vor.u32 %v7486_v53, %v7079_v11  ;;  %v10147_v0 = vpop.f32.mrf.mxu1  ;;  %v7514_v53 = vld [vmem:[#allocation3 + $0x16c] sm:$0xf] }
 0x385   : > { %v4252_v57 = vadd.f32 %v10017_v16, %v3763_v6 }
 0x387   : > { %4391 = vmatmul.bf16.gmra.mxu3 %v10625_v1  ;;  %v10629_v1 = vld [vmem:[#allocation59_spill] sm:$0xff] }
 0x38a   : > { %v3765_v43 = vpop.f32.mrf.mxu3  ;;  %v4340_v9 = vpop.f32.mrf.mxu2 }
 0x38b   : > { %v3766_v63 = vadd.f32 %v3765_v43, %v10626_v40  ;;  %v10144_v48 = vadd.f32 %v4340_v9, %v4252_v57  ;;  %v10630_v43 = vld [vmem:[#allocation15_spill] sm:$0xff] }
 0x38c   : > { %5839 = vmatmul.bf16.gmra.mxu1 %v7184_v38  ;;  %v10631_v40 = vor.u32 %v10629_v1, %v10630_v43  ;;  %v10633_v43 = vld [vmem:[#allocation73_spill] sm:$0xff] }
 0x38d   : > { %v4255_v51 = vadd.f32 %v10035_v29, %v3766_v63  ;;  %v7489_v29 = vld [vmem:[#allocation3 + $0xa0] sm:$0xf0]  ;;  %v7196_v63 = vor.u32 %v7514_v53, %v7193_v25  ;;  %v10637_v53 = vld [vmem:[#allocation20_spill] sm:$0xff] }
 0x38f   : > { %5883 = vmatmul.bf16.gmra.mxu2 %v7080_v36 }
 0x392   : > { %v3767_v56 = vpop.f32.mrf.mxu3  ;;  %v4343_v16 = vpop.f32.mrf.mxu2 }
 0x393   : > { %v3768_v24 = vadd.f32 %v3767_v56, %v10627_v7  ;;  %v10150_v6 = vadd.f32 %v4343_v16, %v4255_v51  ;;  %v10159_v56 = vpop.f32.mrf.mxu1  ;;  %v7091_v51 = vld [vmem:[#allocation3 + $0x98] sm:$0xf] }
 0x394   : > { %v7092_v7 = vor.u32 %v7489_v29, %v7091_v51  ;;  %v7492_v29 = vld [vmem:[#allocation3 + $0xb8] sm:$0xf0] }
 0x395   : > { %10628 = vst [vmem:[#allocation32_spill] sm:$0xff] %v10150_v6  ;;  %v4257_v38 = vadd.f32 %v10046_v18, %v3768_v24 }
 0x397   : > { %4396 = vmatmul.bf16.gmra.mxu3 %v10631_v40 }
 0x39a   : > { %v3770_v57 = vpop.f32.mrf.mxu3  ;;  %v4345_v11 = vpop.f32.mrf.mxu2 }
 0x39b   : > { %v3771_v9 = vadd.f32 %v3770_v57, %v10632_v35  ;;  %v10157_v36 = vadd.f32 %v4345_v11, %v4257_v38  ;;  %v10634_v57 = vld [vmem:[#allocation62_spill] sm:$0xff]  ;;  %v10635_v35 = vld [vmem:[#allocation61_spill] sm:$0xff] }
 0x39c   : > { %5844 = vmatmul.bf16.gmra.mxu1 %v7196_v63  ;;  %v10636_v6 = vor.u32 %v10634_v57, %v10635_v35  ;;  %v10639_v57 = vld [vmem:[#allocation65_spill] sm:$0xff] }
 0x39d   : > { %v4260_v1 = vadd.f32 %v10054_v12, %v3771_v9 }
 0x39f   : > { %5888 = vmatmul.bf16.gmra.mxu2 %v7092_v7  ;;  %v7103_v7 = vld [vmem:[#allocation3 + $0xb0] sm:$0xf] }
 0x3a0   : > { %v7104_v12 = vor.u32 %v7492_v29, %v7103_v7 }
 0x3a2   : > { %v3772_v16 = vpop.f32.mrf.mxu3  ;;  %v4348_v18 = vpop.f32.mrf.mxu2 }
 0x3a3   : > { %v3773_v40 = vadd.f32 %v3772_v16, %v10633_v43  ;;  %v10163_v24 = vadd.f32 %v4348_v18, %v4260_v1 }
 0x3a5   : > { %v4262_v38 = vadd.f32 %v10064_v61, %v3773_v40 }
 0x3a7   : > { %4401 = vmatmul.bf16.gmra.mxu3 %v10636_v6  ;;  %v10638_v6 = vld [vmem:[#allocation66_spill] sm:$0xff] }
 0x3a8   : > { %v10640_v61 = vor.u32 %v10638_v6, %v10639_v57  ;;  %v10644_v6 = vld [vmem:[#allocation25_spill] sm:$0xff] }
 0x3a9   : > { %v5773_v57 = vadd.f32 %v10100_v14, %v10644_v6  ;;  %v10208_v6 = vpop.f32.mrf.mxu1 }
 0x3aa   : > { %v3775_v25 = vpop.f32.mrf.mxu3  ;;  %v4350_v63 = vpop.f32.mrf.mxu2 }
 0x3ab   : > { %v3776_v11 = vadd.f32 %v3775_v25, %v10637_v53  ;;  %v10170_v51 = vadd.f32 %v4350_v63, %v4262_v38  ;;  %v7495_v38 = vld [vmem:[#allocation3 + $0xd0] sm:$0xf0]  ;;  %v7115_v63 = vld [vmem:[#allocation3 + $0xc8] sm:$0xf] }
 0x3ac   : > { %v7116_v29 = vor.u32 %v7495_v38, %v7115_v63  ;;  %v7127_v38 = vld [vmem:[#allocation3 + $0xe0] sm:$0xf] }
 0x3ad   : > { %v4265_v16 = vadd.f32 %v10073_v44, %v3776_v11  ;;  %v10184_v11 = vpop.f32.mrf.mxu0 }
 0x3af   : > { %5893 = vmatmul.bf16.gmra.mxu2 %v7104_v12 }
 0x3b2   : > { %v3777_v9 = vpop.f32.mrf.mxu3  ;;  %v4353_v43 = vpop.f32.mrf.mxu2 }
 0x3b3   : > { %v3778_v1 = vadd.f32 %v3777_v9, %v9730_v42  ;;  %v10174_v18 = vadd.f32 %v4353_v43, %v4265_v16  ;;  %v5771_v42 = vadd.f32 %v10091_v62, %v9734_v10  ;;  %v10641_v16 = vld [vmem:[#allocation72_spill] sm:$0xff]  ;;  %v10195_v10 = vld [vmem:[%s10384_s4] ss:$0 sm:$0xff] }
 0x3b5   : > { %v4267_v35 = vadd.f32 %v10084_v45, %v3778_v1  ;;  %v10642_v1 = vld [vmem:[#allocation71_spill] sm:$0xff] }
 0x3b6   : > { %v10643_v43 = vor.u32 %v10641_v16, %v10642_v1 }
 0x3b7   : > { %4406 = vmatmul.bf16.gmra.mxu3 %v10640_v61 }
 0x3ba   : > { %v4367_v40 = vpop.f32.mrf.mxu3  ;;  %v4355_v25 = vpop.f32.mrf.mxu2 }
 0x3bb   : > { %v10180_v53 = vadd.f32 %v4355_v25, %v4267_v35  ;;  %v4368_v12 = vadd.f32 %v4367_v40, %v9755_v47  ;;  %v7498_v35 = vld [vmem:[#allocation3 + $0xe8] sm:$0xf0]  ;;  %v10198_v25 = vpop.f32.mrf.mxu0 }
 0x3bf   : > { %5898 = vmatmul.bf16.gmra.mxu2 %v7116_v29 }
 0x3c2   : > { %v4369_v44 = vpop.f32.mrf.mxu3  ;;  %v5859_v7 = vpop.f32.mrf.mxu2 }
 0x3c3   : > { %v5860_v9 = vadd.f32 %v5859_v7, %v5771_v42  ;;  %v4370_v47 = vadd.f32 %v4369_v44, %v9787_v33  ;;  %v7128_v42 = vor.u32 %v7498_v35, %v7127_v38  ;;  %v5776_v7 = vadd.f32 %v10111_v3, %v9803_v4  ;;  %v10646_v35 = vld [vmem:[#allocation18_spill] sm:$0xff] }
 0x3c4   : > { %v5778_v3 = vadd.f32 %v10121_v54, %v9840_v41  ;;  %v5781_v41 = vadd.f32 %v10130_v27, %v9870_v26 }
 0x3c5   : > { %v5939_v45 = vadd.f32 %v5860_v9, %v4368_v12 }
 0x3c7   : > { %4411 = vmatmul.bf16.gmra.mxu3 %v10643_v43  ;;  %v5975_v63 = vadd.f32 %v10195_v10, %v5939_v45 }
 0x3c9   : > { %v6007_v12 = vmax.f32 %v5975_v63, 0.0  ;;  %v7139_v63 = vld [vmem:[#allocation3 + $0xf8] sm:$0xf] }
 0x3ca   : > { %v4372_v62 = vpop.f32.mrf.mxu3  ;;  %v5861_v61 = vpop.f32.mrf.mxu2 }
 0x3cb   : > { %v5862_v40 = vadd.f32 %v5861_v61, %v5773_v57  ;;  %v4373_v16 = vadd.f32 %v4372_v62, %v9810_v59  ;;  %v10213_v57 = vpop.f32.mrf.mxu0  ;;  %v10645_v61 = vld [vmem:[#allocation76_spill] sm:$0xff]  ;;  %v7501_v62 = vld [vmem:[#allocation3 + $0x100] sm:$0xf0] }
 0x3cc   : > { %v10647_v4 = vor.u32 %v10645_v61, %v10646_v35  ;;  %v10648_v61 = vld [vmem:[#allocation23_spill] sm:$0xff] }
 0x3cd   : > { %v5940_v29 = vadd.f32 %v5862_v40, %v4370_v47  ;;  %v10649_v35 = vor.u32 %v9764_v28, %v10648_v61 }
 0x3cf   : > { %v5976_v14 = vadd.f32 %v10195_v10, %v5940_v29  ;;  %5903 = vmatmul.bf16.gmra.mxu2 %v7128_v42 }
 0x3d1   : > { %v6008_v9 = vmax.f32 %v5976_v14, 0.0  ;;  %v7140_v14 = vor.u32 %v7501_v62, %v7139_v63  ;;  %v7504_v62 = vld [vmem:[#allocation3 + $0x118] sm:$0xf0] }
 0x3d2   : > { %v4374_v33 = vpop.f32.mrf.mxu3  ;;  %v5864_v44 = vpop.f32.mrf.mxu2 }
 0x3d3   : > { %v7544_v1 = vpack.c.bf16 %v6008_v9, %v6007_v12  ;;  %v5865_v43 = vadd.f32 %v5864_v44, %v5776_v7  ;;  %v4375_v40 = vadd.f32 %v4374_v33, %v9842_v46  ;;  %v10222_v7 = vpop.f32.mrf.mxu1  ;;  %v10225_v9 = vpop.f32.mrf.mxu0 }
 0x3d5   : > { %7545 = vst [vmem:[%s10210_s14] sm:$0xff] %v7544_v1   ;;  %v5941_v45 = vadd.f32 %v5865_v43, %v4373_v16 }
 0x3d7   : > { %4416 = vmatmul.bf16.gmra.mxu3 %v10647_v4  ;;  %v5977_v29 = vadd.f32 %v10195_v10, %v5941_v45 }
 0x3d9   : > { %v6009_v54 = vmax.f32 %v5977_v29, 0.0 }
 0x3da   : > { %v4377_v47 = vpop.f32.mrf.mxu3  ;;  %v5866_v59 = vpop.f32.mrf.mxu2 }
 0x3db   : > { %v5867_v38 = vadd.f32 %v5866_v59, %v5778_v3  ;;  %v4378_v16 = vadd.f32 %v4377_v47, %v9865_v8  ;;  %v10234_v4 = vpop.f32.mrf.mxu1  ;;  %v5783_v3 = vadd.f32 %v10140_v55, %v9911_v13  ;;  %v10238_v27 = vpop.f32.mrf.mxu0  ;;  %v5786_v13 = vadd.f32 %v10147_v0, %v10184_v11 }
 0x3dd   : > { %v5942_v42 = vadd.f32 %v5867_v38, %v4375_v40  ;;  %v7151_v40 = vld [vmem:[#allocation3 + $0x110] sm:$0xf] }
 0x3de   : > { %v7152_v28 = vor.u32 %v7504_v62, %v7151_v40 }
 0x3df   : > { %v5978_v12 = vadd.f32 %v10195_v10, %v5942_v42  ;;  %5908 = vmatmul.bf16.gmra.mxu2 %v7140_v14 }
 0x3e1   : > { %v6010_v44 = vmax.f32 %v5978_v12, 0.0 }
 0x3e2   : > { %v4379_v46 = vpop.f32.mrf.mxu3  ;;  %v5869_v33 = vpop.f32.mrf.mxu2 }
 0x3e3   : > { %v7549_v1 = vpack.c.bf16 %v6010_v44, %v6009_v54  ;;  %v5870_v43 = vadd.f32 %v5869_v33, %v5781_v41  ;;  %v4380_v8 = vadd.f32 %v4379_v46, %v9899_v20  ;;  %v5797_v12 = vpop.f32.mrf.mxu1  ;;  %v5708_v46 = vpop.f32.mrf.mxu0 }
 0x3e5   : > { %7621 = vst [vmem:[%s10210_s14 + $0x8] sm:$0xff] %v7549_v1   ;;  %v5943_v45 = vadd.f32 %v5870_v43, %v4378_v16  ;;  %v10650_v16 = vor.u32 %v9821_v22, %v9817_v5  ;;  %v5788_v1 = vadd.f32 %v10159_v56, %v10198_v25  ;;  %v7507_v43 = vld [vmem:[#allocation3 + $0x130] sm:$0xf0] }
 0x3e7   : > { %4421 = vmatmul.bf16.gmra.mxu3 %v10649_v35  ;;  %v5979_v38 = vadd.f32 %v10195_v10, %v5943_v45  ;;  %v7163_v35 = vld [vmem:[#allocation3 + $0x128] sm:$0xf] }
 0x3e9   : > { %v6011_v55 = vmax.f32 %v5979_v38, 0.0 }
 0x3ea   : > { %v4382_v26 = vpop.f32.mrf.mxu3  ;;  %v5871_v59 = vpop.f32.mrf.mxu2 }
 0x3eb   : > { %v5872_v47 = vadd.f32 %v5871_v59, %v5783_v3  ;;  %v4383_v20 = vadd.f32 %v4382_v26, %v9922_v17  ;;  %v10253_v17 = vpop.f32.mrf.mxu1  ;;  %v7164_v59 = vor.u32 %v7507_v43, %v7163_v35  ;;  %v5711_v62 = vpop.f32.mrf.mxu0 }
 0x3ed   : > { %v5944_v63 = vadd.f32 %v5872_v47, %v4380_v8 }
 0x3ef   : > { %v5980_v29 = vadd.f32 %v10195_v10, %v5944_v63  ;;  %5913 = vmatmul.bf16.gmra.mxu2 %v7152_v28  ;;  %v10651_v63 = vld [vmem:[#allocation26_spill] sm:$0xff] }
 0x3f0   : > { %v10652_v28 = vld [vmem:[#allocation22_spill] sm:$0xff] }
 0x3f1   : > { %v6012_v42 = vmax.f32 %v5980_v29, 0.0  ;;  %v10653_v29 = vor.u32 %v10651_v63, %v10652_v28 }
 0x3f2   : > { %v4384_v14 = vpop.f32.mrf.mxu3  ;;  %v5874_v41 = vpop.f32.mrf.mxu2 }
 0x3f3   : > { %v7554_v54 = vpack.c.bf16 %v6012_v42, %v6011_v55  ;;  %v5875_v44 = vadd.f32 %v5874_v41, %v5786_v13  ;;  %v4385_v45 = vadd.f32 %v4384_v14, %v9953_v50  ;;  %v5791_v50 = vadd.f32 %v10208_v6, %v10213_v57  ;;  %v5802_v38 = vpop.f32.mrf.mxu1  ;;  %v5713_v55 = vpop.f32.mrf.mxu0 }
 0x3f4   : > { %v5793_v42 = vadd.f32 %v10222_v7, %v10225_v9 }
 0x3f5   : > { %7622 = vst [vmem:[%s10210_s14 + $0x10] sm:$0xff] %v7554_v54   ;;  %v5945_v33 = vadd.f32 %v5875_v44, %v4383_v20  ;;  %v7510_v54 = vld [vmem:[#allocation3 + $0x148] sm:$0xf0]  ;;  %v7175_v44 = vld [vmem:[#allocation3 + $0x140] sm:$0xf] }
 0x3f7   : > { %4426 = vmatmul.bf16.gmra.mxu3 %v10650_v16  ;;  %v5981_v3 = vadd.f32 %v10195_v10, %v5945_v33 }
 0x3f9   : > { %v6013_v22 = vmax.f32 %v5981_v3, 0.0  ;;  %v10654_v3 = vor.u32 %v9933_v58, %v9929_v49 }
 0x3fa   : > { %v4387_v0 = vpop.f32.mrf.mxu3  ;;  %v5876_v11 = vpop.f32.mrf.mxu2 }
 0x3fb   : > { %v5877_v61 = vadd.f32 %v5876_v11, %v5788_v1  ;;  %v4388_v13 = vadd.f32 %v4387_v0, %v9978_v19  ;;  %v7176_v1 = vor.u32 %v7510_v54, %v7175_v44  ;;  %v5805_v19 = vpop.f32.mrf.mxu1  ;;  %v5716_v9 = vpop.f32.mrf.mxu0  ;;  %v5803_v54 = vadd.f32 %v5802_v38, %v5713_v55 }
 0x3fd   : > { %v5946_v26 = vadd.f32 %v5877_v61, %v4385_v45  ;;  %v5796_v61 = vadd.f32 %v10234_v4, %v10238_v27  ;;  %v7187_v27 = vld [vmem:[#allocation3 + $0x158] sm:$0xf] }
 0x3ff   : > { %v5982_v5 = vadd.f32 %v10195_v10, %v5946_v26  ;;  %5918 = vmatmul.bf16.gmra.mxu2 %v7164_v59  ;;  %v5798_v59 = vadd.f32 %v5797_v12, %v5708_v46 }
 0x401   : > { %v6014_v56 = vmax.f32 %v5982_v5, 0.0 }
 0x402   : > { %v4389_v25 = vpop.f32.mrf.mxu3  ;;  %v5879_v8 = vpop.f32.mrf.mxu2 }
 0x403   : > { %v7559_v47 = vpack.c.bf16 %v6014_v56, %v6013_v22  ;;  %v5880_v40 = vadd.f32 %v5879_v8, %v5791_v50  ;;  %v4390_v6 = vadd.f32 %v4389_v25, %v10003_v21  ;;  %v5807_v56 = vpop.f32.mrf.mxu1  ;;  %v7513_v8 = vld [vmem:[#allocation3 + $0x160] sm:$0xf0]  ;;  %v5718_v4 = vpop.f32.mrf.mxu0 }
 0x404   : > { %v7188_v28 = vor.u32 %v7513_v8, %v7187_v27 }
 0x405   : > { %7623 = vst [vmem:[%s10210_s14 + $0x18] sm:$0xff] %v7559_v47   ;;  %v5947_v14 = vadd.f32 %v5880_v40, %v4388_v13 }
 0x407   : > { %4431 = vmatmul.bf16.gmra.mxu3 %v10653_v29  ;;  %v5983_v33 = vadd.f32 %v10195_v10, %v5947_v14  ;;  %v5801_v29 = vadd.f32 %v10253_v17, %v5711_v62  ;;  %v7199_v17 = vld [vmem:[#allocation3 + $0x170] sm:$0xf] }
 0x409   : > { %v6015_v0 = vmax.f32 %v5983_v33, 0.0  ;;  %v7516_v33 = vld [vmem:[#allocation3 + $0x178] sm:$0xf0] }
 0x40a   : > { %v4392_v41 = vpop.f32.mrf.mxu3  ;;  %v5881_v20 = vpop.f32.mrf.mxu2 }
 0x40b   : > { %v5882_v57 = vadd.f32 %v5881_v20, %v5793_v42  ;;  %v4393_v26 = vadd.f32 %v4392_v41, %v10022_v39  ;;  %v5810_v42 = vpop.f32.mrf.mxu1  ;;  %v5721_v14 = vpop.f32.mrf.mxu0  ;;  %v10655_v41 = vor.u32 %v9988_v52, %v9982_v37 }
 0x40d   : > { %v5948_v16 = vadd.f32 %v5882_v57, %v4390_v6 }
 0x40f   : > { %v5984_v11 = vadd.f32 %v10195_v10, %v5948_v16  ;;  %5923 = vmatmul.bf16.gmra.mxu2 %v7176_v1 }
 0x411   : > { %v6016_v43 = vmax.f32 %v5984_v11, 0.0 }
 0x412   : > { %v4394_v7 = vpop.f32.mrf.mxu3  ;;  %v5884_v45 = vpop.f32.mrf.mxu2 }
 0x413   : > { %v7564_v21 = vpack.c.bf16 %v6016_v43, %v6015_v0  ;;  %v5885_v35 = vadd.f32 %v5884_v45, %v5796_v61  ;;  %v4395_v50 = vadd.f32 %v4394_v7, %v10037_v60  ;;  %v7200_v0 = vor.u32 %v7516_v33, %v7199_v17  ;;  %v5812_v43 = vpop.f32.mrf.mxu1  ;;  %v5723_v52 = vpop.f32.mrf.mxu0  ;;  %v7515_v7 = vld [vmem:[#allocation3 + $0x170] sm:$0xf0] }
 0x414   : > { %v5806_v61 = vadd.f32 %v5805_v19, %v5716_v9 }
 0x415   : > { %7624 = vst [vmem:[%s10210_s14 + $0x20] sm:$0xff] %v7564_v21   ;;  %v5949_v5 = vadd.f32 %v5885_v35, %v4393_v26 }
 0x417   : > { %4436 = vmatmul.bf16.gmra.mxu3 %v10654_v3  ;;  %v5985_v40 = vadd.f32 %v10195_v10, %v5949_v5  ;;  %v5808_v5 = vadd.f32 %v5807_v56, %v5718_v4 }
 0x419   : > { %v6017_v58 = vmax.f32 %v5985_v40, 0.0 }
 0x41a   : > { %v4397_v22 = vpop.f32.mrf.mxu3  ;;  %v5886_v25 = vpop.f32.mrf.mxu2 }
 0x41b   : > { %v5887_v47 = vadd.f32 %v5886_v25, %v5798_v59  ;;  %v4398_v20 = vadd.f32 %v4397_v22, %v10044_v30  ;;  %v5815_v59 = vpop.f32.mrf.mxu1  ;;  %v5726_v8 = vpop.f32.mrf.mxu0 }
 0x41d   : > { %v5950_v63 = vadd.f32 %v5887_v47, %v4395_v50 }
 0x41f   : > { %v5986_v49 = vadd.f32 %v10195_v10, %v5950_v63  ;;  %5928 = vmatmul.bf16.gmra.mxu2 %v7188_v28 }
 0x421   : > { %v6018_v39 = vmax.f32 %v5986_v49, 0.0 }
 0x422   : > { %v4399_v12 = vpop.f32.mrf.mxu3  ;;  %v5889_v46 = vpop.f32.mrf.mxu2 }
 0x423   : > { %v7569_v13 = vpack.c.bf16 %v6018_v39, %v6017_v58  ;;  %v5890_v60 = vadd.f32 %v5889_v46, %v5801_v29  ;;  %v4400_v16 = vadd.f32 %v4399_v12, %v10050_v34  ;;  %v7191_v34 = vld [vmem:[#allocation3 + $0x168] sm:$0xf]  ;;  %v5817_v58 = vpop.f32.mrf.mxu1  ;;  %v5811_v39 = vadd.f32 %v5810_v42, %v5721_v14  ;;  %v5728_v4 = vpop.f32.mrf.mxu0 }
 0x424   : > { %v7192_v35 = vor.u32 %v7515_v7, %v7191_v34  ;;  %v5813_v29 = vadd.f32 %v5812_v43, %v5723_v52  ;;  %v10657_v43 = vld [vmem:[#allocation29_spill] sm:$0xff] }
 0x425   : > { %7625 = vst [vmem:[%s10210_s14 + $0x28] sm:$0xff] %v7569_v13   ;;  %v5951_v6 = vadd.f32 %v5890_v60, %v4398_v20 }
 0x427   : > { %4441 = vmatmul.bf16.gmra.mxu3 %v10655_v41  ;;  %v5987_v62 = vadd.f32 %v10195_v10, %v5951_v6  ;;  %v10656_v41 = vld [vmem:[#allocation28_spill] sm:$0xff] }
 0x429   : > { %v6019_v30 = vmax.f32 %v5987_v62, 0.0 }
 0x42a   : > { %v4402_v57 = vpop.f32.mrf.mxu3  ;;  %v5891_v44 = vpop.f32.mrf.mxu2 }
 0x42b   : > { %v5892_v1 = vadd.f32 %v5891_v44, %v5803_v54  ;;  %v4403_v26 = vadd.f32 %v4402_v57, %v10059_v2  ;;  %v5820_v6 = vpop.f32.mrf.mxu1  ;;  %v5731_v33 = vpop.f32.mrf.mxu0 }
 0x42d   : > { %v5952_v11 = vadd.f32 %v5892_v1, %v4400_v16 }
 0x42f   : > { %v5988_v37 = vadd.f32 %v10195_v10, %v5952_v11  ;;  %5933 = vmatmul.bf16.gmra.mxu2 %v7200_v0 }
 0x431   : > { %v6020_v38 = vmax.f32 %v5988_v37, 0.0 }
 0x432   : > { %v4404_v55 = vpop.f32.mrf.mxu3  ;;  %v5894_v45 = vpop.f32.mrf.mxu2 }
 0x433   : > { %v7574_v21 = vpack.c.bf16 %v6020_v38, %v6019_v30  ;;  %v5895_v3 = vadd.f32 %v5894_v45, %v5806_v61  ;;  %v4405_v47 = vadd.f32 %v4404_v55, %v10068_v31  ;;  %v5822_v0 = vpop.f32.mrf.mxu1  ;;  %v5733_v52 = vpop.f32.mrf.mxu0  ;;  %v5818_v30 = vadd.f32 %v5817_v58, %v5728_v4  ;;  %v10658_v45 = vld [vmem:[#allocation30_spill] sm:$0xff]  ;;  %v10659_v58 = vld [vmem:[#allocation35_spill] sm:$0xff] }
 0x435   : > { %7626 = vst [vmem:[%s10210_s14 + $0x30] sm:$0xff] %v7574_v21   ;;  %v5953_v22 = vadd.f32 %v5895_v3, %v4403_v26 }
 0x437   : > { %5755 = vmatmul.bf16.vlgmr.msrb.gmra.mxu3 %v7192_v35  ;;  %v5989_v19 = vadd.f32 %v10195_v10, %v5953_v22 }
 0x439   : > { %v6021_v63 = vmax.f32 %v5989_v19, 0.0 }
 0x43a   : > { %v4407_v25 = vpop.f32.mrf.mxu3  ;;  %v5896_v50 = vpop.f32.mrf.mxu2 }
 0x43b   : > { %v5897_v27 = vadd.f32 %v5896_v50, %v5808_v5  ;;  %v4408_v46 = vadd.f32 %v4407_v25, %v10075_v32  ;;  %v5816_v32 = vadd.f32 %v5815_v59, %v5726_v8  ;;  %v5825_v26 = vpop.f32.mrf.mxu1  ;;  %v5736_v25 = vpop.f32.mrf.mxu0  ;;  %v5821_v50 = vadd.f32 %v5820_v6, %v5731_v33 }
 0x43d   : > { %v5954_v9 = vadd.f32 %v5897_v27, %v4405_v47 }
 0x43f   : > { %v5990_v40 = vadd.f32 %v10195_v10, %v5954_v9  ;;  %v5823_v9 = vadd.f32 %v5822_v0, %v5733_v52 }
 0x441   : > { %v6022_v28 = vmax.f32 %v5990_v40, 0.0 }
 0x442   : > { %v4409_v49 = vpop.f32.mrf.mxu3  ;;  %v5899_v2 = vpop.f32.mrf.mxu2 }
 0x443   : > { %v7579_v56 = vpack.c.bf16 %v6022_v28, %v6021_v63  ;;  %v5900_v12 = vadd.f32 %v5899_v2, %v5811_v39  ;;  %v4410_v20 = vadd.f32 %v4409_v49, %v10656_v41  ;;  %v5827_v28 = vpop.f32.mrf.mxu1 }
 0x445   : > { %7627 = vst [vmem:[%s10210_s14 + $0x38] sm:$0xff] %v7579_v56   ;;  %v5955_v31 = vadd.f32 %v5900_v12, %v4408_v46  ;;  %v5738_v56 = vpop.f32.mrf.mxu0 }
 0x446   : > { %v5828_v33 = vadd.f32 %v5827_v28, %v5738_v56 }
 0x447   : > { %v5991_v57 = vadd.f32 %v10195_v10, %v5955_v31 }
 0x449   : > { %v6023_v14 = vmax.f32 %v5991_v57, 0.0  ;;  %v10660_v57 = vld [vmem:[#allocation33_spill] sm:$0xff] }
 0x44a   : > { %v4412_v13 = vpop.f32.mrf.mxu3  ;;  %v5901_v60 = vpop.f32.mrf.mxu2 }
 0x44b   : > { %v5902_v54 = vadd.f32 %v5901_v60, %v5813_v29  ;;  %v4413_v37 = vadd.f32 %v4412_v13, %v10657_v43 }
 0x44d   : > { %v5956_v44 = vadd.f32 %v5902_v54, %v4410_v20  ;;  %v5830_v20 = vpop.f32.mrf.mxu1  ;;  %v5741_v6 = vpop.f32.mrf.mxu0 }
 0x44f   : > { %v5992_v42 = vadd.f32 %v10195_v10, %v5956_v44 }
 0x451   : > { %v6024_v16 = vmax.f32 %v5992_v42, 0.0 }
 0x452   : > { %v4414_v1 = vpop.f32.mrf.mxu3  ;;  %v5904_v17 = vpop.f32.mrf.mxu2 }
 0x453   : > { %v7584_v62 = vpack.c.bf16 %v6024_v16, %v6023_v14  ;;  %v5905_v11 = vadd.f32 %v5904_v17, %v5816_v32  ;;  %v4415_v61 = vadd.f32 %v4414_v1, %v10658_v45  ;;  %v10661_v1 = vld [vmem:[#allocation31_spill] sm:$0xff] }
 0x455   : > { %7628 = vst [vmem:[%s10210_s14 + $0x40] sm:$0xff] %v7584_v62   ;;  %v5957_v38 = vadd.f32 %v5905_v11, %v4413_v37  ;;  %v5832_v0 = vpop.f32.mrf.mxu1  ;;  %v5743_v37 = vpop.f32.mrf.mxu0 }
 0x457   : > { %v5993_v34 = vadd.f32 %v10195_v10, %v5957_v38 }
 0x459   : > { %v6025_v59 = vmax.f32 %v5993_v34, 0.0 }
 0x45a   : > { %v4417_v55 = vpop.f32.mrf.mxu3  ;;  %v5906_v7 = vpop.f32.mrf.mxu2 }
 0x45b   : > { %v5907_v21 = vadd.f32 %v5906_v7, %v5818_v30  ;;  %v4418_v19 = vadd.f32 %v4417_v55, %v10105_v15  ;;  %v5826_v15 = vadd.f32 %v5825_v26, %v5736_v25  ;;  %v5831_v7 = vadd.f32 %v5830_v20, %v5741_v6 }
 0x45d   : > { %v5958_v35 = vadd.f32 %v5907_v21, %v4415_v61  ;;  %v5835_v34 = vpop.f32.mrf.mxu1 }
 0x45f   : > { %v5994_v3 = vadd.f32 %v10195_v10, %v5958_v35  ;;  %v5833_v35 = vadd.f32 %v5832_v0, %v5743_v37 }
 0x461   : > { %v6026_v5 = vmax.f32 %v5994_v3, 0.0 }
 0x462   : > { %v4419_v22 = vpop.f32.mrf.mxu3  ;;  %v5909_v8 = vpop.f32.mrf.mxu2 }
 0x463   : > { %v7589_v47 = vpack.c.bf16 %v6026_v5, %v6025_v59  ;;  %v5910_v27 = vadd.f32 %v5909_v8, %v5821_v50  ;;  %v4420_v2 = vadd.f32 %v4419_v22, %v10659_v58  ;;  %v5746_v59 = vpop.f32.mrf.mxu0 }
 0x465   : > { %7629 = vst [vmem:[%s10210_s14 + $0x48] sm:$0xff] %v7589_v47   ;;  %v5959_v40 = vadd.f32 %v5910_v27, %v4418_v19 }
 0x467   : > { %v5995_v4 = vadd.f32 %v10195_v10, %v5959_v40  ;;  %v5837_v40 = vpop.f32.mrf.mxu1 }
 0x469   : > { %v6027_v29 = vmax.f32 %v5995_v4, 0.0 }
 0x46a   : > { %v4422_v63 = vpop.f32.mrf.mxu3  ;;  %v5911_v49 = vpop.f32.mrf.mxu2 }
 0x46b   : > { %v5912_v39 = vadd.f32 %v5911_v49, %v5823_v9  ;;  %v4423_v44 = vadd.f32 %v4422_v63, %v10660_v57  ;;  %v5836_v63 = vadd.f32 %v5835_v34, %v5746_v59  ;;  %v5748_v49 = vpop.f32.mrf.mxu0 }
 0x46c   : > { %v5838_v56 = vadd.f32 %v5837_v40, %v5748_v49 }
 0x46d   : > { %v5960_v12 = vadd.f32 %v5912_v39, %v4420_v2  ;;  %v10662_v2 = vld [vmem:[#allocation32_spill] sm:$0xff] }
 0x46f   : > { %v5996_v46 = vadd.f32 %v10195_v10, %v5960_v12 }
 0x471   : > { %v6028_v31 = vmax.f32 %v5996_v46, 0.0 }
 0x472   : > { %v4424_v13 = vpop.f32.mrf.mxu3  ;;  %v5914_v60 = vpop.f32.mrf.mxu2 }
 0x473   : > { %v7594_v41 = vpack.c.bf16 %v6028_v31, %v6027_v29  ;;  %v5915_v54 = vadd.f32 %v5914_v60, %v5826_v15  ;;  %v4425_v17 = vadd.f32 %v4424_v13, %v10661_v1  ;;  %v5840_v31 = vpop.f32.mrf.mxu1  ;;  %v5751_v15 = vpop.f32.mrf.mxu0 }
 0x475   : > { %7630 = vst [vmem:[%s10210_s14 + $0x50] sm:$0xff] %v7594_v41   ;;  %v5961_v42 = vadd.f32 %v5915_v54, %v4423_v44  ;;  %v5841_v44 = vadd.f32 %v5840_v31, %v5751_v15 }
 0x477   : > { %v5997_v62 = vadd.f32 %v10195_v10, %v5961_v42 }
 0x479   : > { %v6029_v52 = vmax.f32 %v5997_v62, 0.0 }
 0x47a   : > { %v4427_v14 = vpop.f32.mrf.mxu3  ;;  %v5916_v16 = vpop.f32.mrf.mxu2 }
 0x47b   : > { %v5917_v32 = vadd.f32 %v5916_v16, %v5828_v33  ;;  %v4428_v21 = vadd.f32 %v4427_v14, %v10135_v23  ;;  %v5842_v14 = vpop.f32.mrf.mxu1  ;;  %v5753_v16 = vpop.f32.mrf.mxu0 }
 0x47c   : > { %v5843_v1 = vadd.f32 %v5842_v14, %v5753_v16 }
 0x47d   : > { %v5962_v11 = vadd.f32 %v5917_v32, %v4425_v17 }
 0x47f   : > { %v5998_v43 = vadd.f32 %v10195_v10, %v5962_v11 }
 0x481   : > { %v6030_v30 = vmax.f32 %v5998_v43, 0.0 }
 0x482   : > { %v4429_v38 = vpop.f32.mrf.mxu3  ;;  %v5919_v55 = vpop.f32.mrf.mxu2 }
 0x483   : > { %v7599_v45 = vpack.c.bf16 %v6030_v30, %v6029_v52  ;;  %v5920_v61 = vadd.f32 %v5919_v55, %v5831_v7  ;;  %v4430_v22 = vadd.f32 %v4429_v38, %v10144_v48 }
 0x485   : > { %7631 = vst [vmem:[%s10210_s14 + $0x58] sm:$0xff] %v7599_v45   ;;  %v5963_v3 = vadd.f32 %v5920_v61, %v4428_v21 }
 0x487   : > { %v5999_v8 = vadd.f32 %v10195_v10, %v5963_v3 }
 0x489   : > { %v6031_v27 = vmax.f32 %v5999_v8, 0.0 }
 0x48a   : > { %v4432_v26 = vpop.f32.mrf.mxu3  ;;  %v5921_v5 = vpop.f32.mrf.mxu2 }
 0x48b   : > { %v5922_v25 = vadd.f32 %v5921_v5, %v5833_v35  ;;  %v4433_v39 = vadd.f32 %v4432_v26, %v10662_v2 }
 0x48d   : > { %v5964_v50 = vadd.f32 %v5922_v25, %v4430_v22 }
 0x48f   : > { %v6000_v47 = vadd.f32 %v10195_v10, %v5964_v50 }
 0x491   : > { %v6032_v19 = vmax.f32 %v6000_v47, 0.0 }
 0x492   : > { %v4434_v9 = vpop.f32.mrf.mxu3  ;;  %v5924_v23 = vpop.f32.mrf.mxu2 }
 0x493   : > { %v7604_v28 = vpack.c.bf16 %v6032_v19, %v6031_v27  ;;  %v5925_v58 = vadd.f32 %v5924_v23, %v5836_v63  ;;  %v4435_v46 = vadd.f32 %v4434_v9, %v10157_v36 }
 0x495   : > { %7632 = vst [vmem:[%s10210_s14 + $0x60] sm:$0xff] %v7604_v28   ;;  %v5965_v48 = vadd.f32 %v5925_v58, %v4433_v39 }
 0x497   : > { %v6001_v13 = vadd.f32 %v10195_v10, %v5965_v48 }
 0x499   : > { %v6033_v20 = vmax.f32 %v6001_v13, 0.0 }
 0x49a   : > { %v4437_v4 = vpop.f32.mrf.mxu3  ;;  %v5926_v12 = vpop.f32.mrf.mxu2 }
 0x49b   : > { %v5927_v29 = vadd.f32 %v5926_v12, %v5838_v56  ;;  %v4438_v36 = vadd.f32 %v4437_v4, %v10163_v24  ;;  %v5845_v24 = vpop.f32.mrf.mxu1 }
 0x49d   : > { %v5966_v60 = vadd.f32 %v5927_v29, %v4435_v46 }
 0x49f   : > { %v6002_v41 = vadd.f32 %v10195_v10, %v5966_v60 }
 0x4a1   : > { %v6034_v54 = vmax.f32 %v6002_v41, 0.0 }
 0x4a2   : > { %v4439_v6 = vpop.f32.mrf.mxu3  ;;  %v5929_v57 = vpop.f32.mrf.mxu2 }
 0x4a3   : > { %v7609_v33 = vpack.c.bf16 %v6034_v54, %v6033_v20  ;;  %v5930_v42 = vadd.f32 %v5929_v57, %v5841_v44  ;;  %v4440_v11 = vadd.f32 %v4439_v6, %v10170_v51  ;;  %v5847_v35 = vpop.f32.mrf.mxu1 }
 0x4a5   : > { %7633 = vst [vmem:[%s10210_s14 + $0x68] sm:$0xff] %v7609_v33   ;;  %v5967_v17 = vadd.f32 %v5930_v42, %v4438_v36 }
 0x4a7   : > { %v6003_v43 = vadd.f32 %v10195_v10, %v5967_v17 }
 0x4a9   : > { %v6035_v30 = vmax.f32 %v6003_v43, 0.0 }
 0x4aa   : > { %v4442_v32 = vpop.f32.mrf.mxu3  ;;  %v5931_v62 = vpop.f32.mrf.mxu2 }
 0x4ab   : > { %v5932_v0 = vadd.f32 %v5931_v62, %v5843_v1  ;;  %v4443_v51 = vadd.f32 %v4442_v32, %v10174_v18 }
 0x4ad   : > { %v5968_v37 = vadd.f32 %v5932_v0, %v4440_v11 }
 0x4af   : > { %v6004_v52 = vadd.f32 %v10195_v10, %v5968_v37 }
 0x4b1   : > { %v6036_v38 = vmax.f32 %v6004_v52, 0.0 }
 0x4b2   : > { %v4444_v55 = vpop.f32.mrf.mxu3  ;;  %v5934_v45 = vpop.f32.mrf.mxu2 }
 0x4b3   : > { %v7614_v7 = vpack.c.bf16 %v6036_v38, %v6035_v30  ;;  %v4445_v22 = vadd.f32 %v4444_v55, %v10180_v53 }
 0x4b5   : > { %7634 = vst [vmem:[%s10210_s14 + $0x70] sm:$0xff] %v7614_v7  }
 0x4ba   : > { %v5756_v61 = vpop.f32.mrf.mxu3  ;;  %v5936_v5 = vpop.f32.mrf.mxu2 }
 0x4bb   : > { %v5846_v21 = vadd.f32 %v5845_v24, %v5756_v61 }
 0x4bd   : > { %v5935_v34 = vadd.f32 %v5934_v45, %v5846_v21 }
 0x4bf   : > { %v5969_v26 = vadd.f32 %v5935_v34, %v4443_v51 }
 0x4c1   : > { %v6005_v8 = vadd.f32 %v10195_v10, %v5969_v26 }
 0x4c2   : > { %v5758_v3 = vpop.f32.mrf.mxu3 }
 0x4c3   : > { %v5848_v59 = vadd.f32 %v5847_v35, %v5758_v3  ;;  %v6037_v47 = vmax.f32 %v6005_v8, 0.0 }
 0x4c5   : > { %v5937_v25 = vadd.f32 %v5936_v5, %v5848_v59 }
 0x4c7   : > { %v5970_v50 = vadd.f32 %v5937_v25, %v4445_v22 }
 0x4c9   : > { %v6006_v18 = vadd.f32 %v10195_v10, %v5970_v50 }
 0x4cb   : > { %v6038_v27 = vmax.f32 %v6006_v18, 0.0 }
 0x4cd   : > { %v7619_v19 = vpack.c.bf16 %v6038_v27, %v6037_v47 }
 0x4cf   : > { %7635 = vst [vmem:[%s10210_s14 + $0x78] sm:$0xff] %v7619_v19  }
 0x4d0   : > { %7780 = shalt.err (!%p7777_p7)
}
 0x4d1   : > { %s7850_s19 = smov 64   ;;  %s7851_s14 = smov 4  }
 0x4d2   : > { %7663 = dma.vmem_to_hbm [thread:$0]  (%p7938_p3), %s6119_s20, 2048, %s6121_s30, %s6104_s9, %s7850_s19, %s7850_s19, %s7851_s14  }
 0x4d3 PF: > { %p7669_p9 = scmp.ge.s32.totalorder %s7847_s28, 2  ;;  %s6135_s12 = sand.u32 1, %s7819_s21  }
 0x4d4   : > { %s6136_s17 = scalar_lea.sflag [#allocation5], %s6135_s12 }
 0x4d5   : > { %p7666_p10 = pnand %p7669_p9, %p7947_p8 }
 0x4d7   : > { %p7667_p11 = pneg %p7666_p10 }
 0x4d9   : > { %7814 = dma.done.wait (%p7667_p11), %s6136_s17, 2048  }
 0x4da   : > { %7816 = vsyncadd (%p7667_p11), %s6136_s17, 4294965248  ;;  %s19_s28 = sadd.s32 1, %s7847_s28   ;;  %s10663_s21 = smov %s7823_s22 }
 0x4db   : > { %p16_p12 = scmp.ge.s32.totalorder %s19_s28, 6   ;;  %s10664_s22 = smov %s7827_s23 }
 0x4dc   : > { %s10665_s23 = smov %s7956_s15  ;;  %s10666_s24 = smov %s7839_s26 }
 0x4dd   : > { %s10667_s25 = smov %s7843_s27  ;;  %s10668_s26 = smov %s10671_s7 }
 0x4de   : > { %s10669_s27 = smov %s10675_s8  ;;  %18 = sbr.rel (!%p16_p12) target bundleno = 5 (0x5), region = 84 }
 0x4e3   :  { %6142 = vsyncpa [#allocation5], 1 }
 0x4e4   :  { %6144 = vsyncpa [#allocation5 + $0x1], 1 }

</bundles_post_ra>
